<compile_context>
chip_gen: v5e
topology: v5e:2x2
jax: 0.10.0
libtpu: 0.0.40
codegen_flags: <defaults>
</compile_context>

<pallas_src>
import jax
import jax.numpy as jnp
from jax.experimental import pallas as pl
from jax.experimental.pallas import tpu as pltpu


def _round_up(n, m):
    return ((n + m - 1) // m) * m


_PY_UNROLL_MAX_T = 32   # full Python unroll below this, lax.fori_loop above


# ------------------------------ shared recurrence ------------------------------
def _gru_recurrence(gi_ref, whh_ref, b_hn, T, Bp, Hp, out_ref=None):
    """Serial GRU recurrence.

    gi_ref : (T*Bp, 3Hp) f32 VMEM scratch with the precomputed input projection
             (input bias already added, r/z hidden biases pre-summed in).
    whh_ref: (Hp, 3Hp) bf16 ref — indexed per step (never hoisted to a value).
    b_hn   : (1, Hp) f32 value (hidden bias of the n gate, scaled by r).
    out_ref: optional (T*Bp, Hp) bf16 scratch to receive the layer's outputs.
    Returns the final hidden state h (Bp, Hp) f32.
    """
    def step(t, h):
        if isinstance(t, int):                       # static (Python-unrolled) path
            start = t * Bp
        else:                                        # dynamic (fori_loop) path
            start = pl.multiple_of(t * Bp, Bp)
        gi = gi_ref[pl.ds(start, Bp), :]                                    # (Bp, 3Hp)
        gh = jnp.dot(h.astype(jnp.bfloat16), whh_ref[...],
                     preferred_element_type=jnp.float32)                    # (Bp, 3Hp)
        # Fused r/z sigmoid on the contiguous (Bp, 2Hp) slab.
        rz = jax.nn.sigmoid(gi[:, :2 * Hp] + gh[:, :2 * Hp])
        r, z = rz[:, :Hp], rz[:, Hp:]
        n = jnp.tanh(gi[:, 2 * Hp:] + r * (gh[:, 2 * Hp:] + b_hn))
        h_new = (1.0 - z) * n + z * h
        if out_ref is not None:
            out_ref[pl.ds(start, Bp), :] = h_new.astype(out_ref.dtype)
        return h_new

    h0 = jnp.zeros((Bp, Hp), jnp.float32)
    if T <= _PY_UNROLL_MAX_T:
        h = h0
        for t in range(T):
            h = step(t, h)
        return h
    return jax.lax.fori_loop(0, T, step, h0, unroll=8)


# ---------------------------- fused multi-layer kernel --------------------------
def _make_fused_kernel(num_layers, n_seq, T, Bp, Hp):
    """Kernel ref layout:
       [x(T*Bp,Din_p)] + num_layers*[wih, whh, bi, bhn] + [fc_w, fc_b]   (inputs)
       + [out(Bp,Op)]                                                     (output)
       + n_seq*[seq(T*Bp,Hp) bf16] + [gi(T*Bp,3Hp) f32]                   (scratch)
    """
    def kernel(*refs):
        x_ref = refs[0]
        layer_refs = refs[1:1 + 4 * num_layers]
        fcw_ref = refs[1 + 4 * num_layers]
        fcb_ref = refs[2 + 4 * num_layers]
        out_ref = refs[3 + 4 * num_layers]
        seq_bufs = refs[4 + 4 * num_layers: 4 + 4 * num_layers + n_seq]
        gi_ref = refs[4 + 4 * num_layers + n_seq]

        src_ref = x_ref
        h = None
        for l in range(num_layers):
            wih_ref, whh_ref, bi_ref, bhn_ref = layer_refs[4 * l: 4 * l + 4]
            # Prologue: one batched matmul over the whole sequence (off the
            # serial critical path), bf16 operands, f32 accumulate.
            gi_ref[...] = (jnp.dot(src_ref[...], wih_ref[...],
                                   preferred_element_type=jnp.float32)
                           + bi_ref[...])
            is_last = (l == num_layers - 1)
            dst_ref = None if is_last else seq_bufs[l % n_seq]
            h = _gru_recurrence(gi_ref, whh_ref, bhn_ref[...], T, Bp, Hp,
                                out_ref=dst_ref)
            src_ref = dst_ref

        # Fused final Linear on the last timestep's hidden state.
        out_ref[...] = (jnp.dot(h.astype(jnp.bfloat16), fcw_ref[...],
                                preferred_element_type=jnp.float32)
                        + fcb_ref[...])
    return kernel


_VMEM = pl.BlockSpec(memory_space=pltpu.MemorySpace.VMEM)


# ----------------------------------- model ---------------------------------------
def _stack_pad_gates(w, H, Hp):
    """w: (D, 3H) with cols [r|z|n]; zero-pad each gate block to Hp columns."""
    r, z, n = w[:, :H], w[:, H:2 * H], w[:, 2 * H:]
    pad = lambda a: jnp.pad(a, ((0, 0), (0, Hp - H)))
    return jnp.concatenate([pad(r), pad(z), pad(n)], axis=1)


def _pad1(v, n):
    return jnp.pad(v, (0, n - v.shape[0]))


class GRUModel:
    def __init__(self, input_dim, hidden_dim, num_layers, output_dim, key):
        self.input_dim = input_dim
        self.hidden_dim = hidden_dim
        self.num_layers = num_layers
        self.output_dim = output_dim

        # ----- raw parameters (PyTorch layout, used by the reference) -----
        k = 1.0 / jnp.sqrt(jnp.float32(hidden_dim))
        self.layers = []
        for layer in range(num_layers):
            d_in = input_dim if layer == 0 else hidden_dim
            key, k1, k2, k3, k4 = jax.random.split(key, 5)
            w_ih = jax.random.uniform(k1, (3 * hidden_dim, d_in), jnp.float32, -k, k)
            w_hh = jax.random.uniform(k2, (3 * hidden_dim, hidden_dim), jnp.float32, -k, k)
            b_ih = jax.random.uniform(k3, (3 * hidden_dim,), jnp.float32, -k, k)
            b_hh = jax.random.uniform(k4, (3 * hidden_dim,), jnp.float32, -k, k)
            self.layers.append((w_ih, w_hh, b_ih, b_hh))
        key, k5, k6 = jax.random.split(key, 3)
        self.fc_w = jax.random.uniform(k5, (output_dim, hidden_dim), jnp.float32, -k, k)
        self.fc_b = jax.random.uniform(k6, (output_dim,), jnp.float32, -k, k)

        # ----- kernel-ready params: stacked, transposed, bias-fused, padded, bf16 -----
        H = hidden_dim
        Hp = _round_up(H, 128)
        Op = _round_up(output_dim, 128)
        self.H_pad, self.O_pad = Hp, Op
        # TODO(synk): for tiny H (<128) per-gate padding to 128 wastes MXU work;
        # a compact 3H->128 packing would need non-lane-aligned gate slices.

        self.kernel_layers = []
        for layer, (w_ih, w_hh, b_ih, b_hh) in enumerate(self.layers):
            d_in = input_dim if layer == 0 else hidden_dim
            d_in_pad = _round_up(d_in, 128) if layer == 0 else Hp
            # (Din_pad, 3Hp), cols [r|z|n]; zero rows/cols for padded dims.
            wih = _stack_pad_gates(w_ih.T, H, Hp)
            wih = jnp.pad(wih, ((0, d_in_pad - d_in), (0, 0))).astype(jnp.bfloat16)
            whh = _stack_pad_gates(w_hh.T, H, Hp)
            whh = jnp.pad(whh, ((0, Hp - H), (0, 0))).astype(jnp.bfloat16)
            # Pre-sum hidden biases for r/z into the prologue bias; keep b_hh_n apart.
            b_r = b_ih[:H] + b_hh[:H]
            b_z = b_ih[H:2 * H] + b_hh[H:2 * H]
            b_in_n = b_ih[2 * H:]
            bi = jnp.concatenate(
                [_pad1(b_r, Hp), _pad1(b_z, Hp), _pad1(b_in_n, Hp)])[None]   # (1,3Hp) f32
            bhn = _pad1(b_hh[2 * H:], Hp)[None]                              # (1,Hp)  f32
            self.kernel_layers.append((wih, whh, bi, bhn))

        self.fc_w_pad = jnp.pad(self.fc_w.T,
                                ((0, Hp - H), (0, Op - output_dim))).astype(jnp.bfloat16)
        self.fc_b_pad = jnp.pad(self.fc_b, (0, Op - output_dim))[None]       # (1, Op) f32

    def __call__(self, x):
        # x: (B, T, input_dim), batch_first — same as the PyTorch module.
        B, T, Din = x.shape
        Bp = _round_up(B, 8)
        Din_pad = _round_up(Din, 128)
        Hp, Op = self.H_pad, self.O_pad
        L = self.num_layers

        xt = jnp.transpose(x, (1, 0, 2)).astype(jnp.float32)          # (T, B, Din)
        xt = jnp.pad(xt, ((0, 0), (0, Bp - B), (0, Din_pad - Din)))   # lane/sublane dense
        x2d = xt.reshape(T * Bp, Din_pad).astype(jnp.bfloat16)

        ins = [x2d]
        for (wih, whh, bi, bhn) in self.kernel_layers:
            ins += [wih, whh, bi, bhn]
        ins += [self.fc_w_pad, self.fc_b_pad]

        n_seq = min(2, L - 1)  # ping-pong buffers for the inter-layer sequence
        scratch = ([pltpu.VMEM((T * Bp, Hp), jnp.bfloat16) for _ in range(n_seq)]
                   + [pltpu.VMEM((T * Bp, 3 * Hp), jnp.float32)])

        # VMEM budget sized from the actual buffers (with headroom).
        in_bytes = sum(int(a.size) * a.dtype.itemsize for a in ins)
        scratch_bytes = n_seq * T * Bp * Hp * 2 + T * Bp * 3 * Hp * 4
        out_bytes = Bp * Op * 4
        needed = in_bytes + scratch_bytes + out_bytes
        vmem_limit = int(min(max(2 * needed + (8 << 20), 32 << 20), 128 << 20))

        kernel = _make_fused_kernel(L, n_seq, T, Bp, Hp)
        out = pl.pallas_call(
            kernel,
            out_shape=jax.ShapeDtypeStruct((Bp, Op), jnp.float32),
            in_specs=[_VMEM] * len(ins),
            out_specs=_VMEM,
            scratch_shapes=scratch,
            compiler_params=pltpu.CompilerParams(vmem_limit_bytes=vmem_limit),
        )(*ins)
        return out[:B, :self.output_dim]


# ------------------------- Pure-JAX reference (check) --------------------------
def _gru_ref(x, model):
    B, T, _ = x.shape
    H = model.hidden_dim
    h_seq = x
    for (w_ih, w_hh, b_ih, b_hh) in model.layers:
        h = jnp.zeros((B, H), jnp.float32)
        outs = []
        for t in range(T):
            x_t = h_seq[:, t, :]
            gi = x_t @ w_ih.T + b_ih
            gh = h @ w_hh.T + b_hh
            r = jax.nn.sigmoid(gi[:, :H] + gh[:, :H])
            z = jax.nn.sigmoid(gi[:, H:2 * H] + gh[:, H:2 * H])
            n = jnp.tanh(gi[:, 2 * H:] + r * gh[:, 2 * H:])
            h = (1.0 - z) * n + z * h
            outs.append(h)
        h_seq = jnp.stack(outs, axis=1)
    return h_seq[:, -1, :] @ model.fc_w.T + model.fc_b


if __name__ == "__main__":
    key = jax.random.PRNGKey(0)
    key, pkey, xkey = jax.random.split(key, 3)

    batch, seq, input_dim, hidden_dim, num_layers, output_dim = 2, 8, 4, 32, 2, 5
    model = GRUModel(input_dim, hidden_dim, num_layers, output_dim, pkey)
    x = jax.random.normal(xkey, (batch, seq, input_dim), jnp.float32)

    out = jax.block_until_ready(model(x))
    assert out.shape == (batch, output_dim)

    ref = _gru_ref(x, model)
    max_diff = jnp.max(jnp.abs(out - ref))
    # bf16 matmul operands -> slightly looser tolerance than pure-f32.
    assert jnp.allclose(out, ref, atol=5e-2, rtol=5e-2), f"max abs diff {max_diff}"

    print("KERNEL_OK")
</pallas_src>

<mosaic_0001>
module attributes {stable_mosaic.version = 11 : i64} {
  func.func @kernel(%arg0: memref<64x128xbf16, #tpu.memory_space<vmem>>, %arg1: memref<128x384xbf16, #tpu.memory_space<vmem>>, %arg2: memref<128x384xbf16, #tpu.memory_space<vmem>>, %arg3: memref<1x384xf32, #tpu.memory_space<vmem>>, %arg4: memref<1x128xf32, #tpu.memory_space<vmem>>, %arg5: memref<128x384xbf16, #tpu.memory_space<vmem>>, %arg6: memref<128x384xbf16, #tpu.memory_space<vmem>>, %arg7: memref<1x384xf32, #tpu.memory_space<vmem>>, %arg8: memref<1x128xf32, #tpu.memory_space<vmem>>, %arg9: memref<128x128xbf16, #tpu.memory_space<vmem>>, %arg10: memref<1x128xf32, #tpu.memory_space<vmem>>, %arg11: memref<8x128xf32, #tpu.memory_space<vmem>>, %arg12: memref<64x128xbf16, #tpu.memory_space<vmem>>, %arg13: memref<64x384xf32, #tpu.memory_space<vmem>>) attributes {dimension_semantics = [], scalar_prefetch = 0 : i64, scratch_operands = 2 : i64, tpu.core_type = #tpu.core_type<tc>} {
    %c0 = arith.constant 0 : index
    %c0_0 = arith.constant 0 : index
    %0 = vector.load %arg0[%c0, %c0_0] : memref<64x128xbf16, #tpu.memory_space<vmem>>, vector<64x128xbf16>
    %c0_1 = arith.constant 0 : index
    %c0_2 = arith.constant 0 : index
    %1 = vector.load %arg1[%c0_1, %c0_2] : memref<128x384xbf16, #tpu.memory_space<vmem>>, vector<128x384xbf16>
    %cst = arith.constant dense<0.000000e+00> : vector<64x384xf32>
    %2 = tpu.matmul %0, %1, %cst {dimension_numbers = #tpu.dot_dimension_numbers<[1], [0], [0], [1], [0, 0, 1, 1], [], []>} : vector<64x128xbf16>, vector<128x384xbf16>, vector<64x384xf32> -> vector<64x384xf32>
    %c0_3 = arith.constant 0 : index
    %c0_4 = arith.constant 0 : index
    %3 = vector.load %arg3[%c0_3, %c0_4] : memref<1x384xf32, #tpu.memory_space<vmem>>, vector<1x384xf32>
    %4 = vector.broadcast %3 : vector<1x384xf32> to vector<64x384xf32>
    %5 = arith.addf %2, %4 : vector<64x384xf32>
    %c0_5 = arith.constant 0 : index
    %c0_6 = arith.constant 0 : index
    %6 = vector.load %arg13[%c0_5, %c0_6] : memref<64x384xf32, #tpu.memory_space<vmem>>, vector<64x384xf32>
    tpu.vector_store %arg13[%c0_5, %c0_6], %5 {strides = array<i32>} : memref<64x384xf32, #tpu.memory_space<vmem>>, vector<64x384xf32>,
    %c0_7 = arith.constant 0 : index
    %c0_8 = arith.constant 0 : index
    %7 = vector.load %arg4[%c0_7, %c0_8] : memref<1x128xf32, #tpu.memory_space<vmem>>, vector<1x128xf32>
    %cst_9 = arith.constant 0.000000e+00 : f32
    %8 = vector.broadcast %cst_9 : f32 to vector<8x128xf32>
    %c0_10 = arith.constant 0 : index
    %c0_11 = arith.constant 0 : index
    %9 = vector.load %arg13[%c0_10, %c0_11] : memref<64x384xf32, #tpu.memory_space<vmem>>, vector<8x384xf32>
    %10 = arith.truncf %8 : vector<8x128xf32> to vector<8x128xbf16>
    %c0_12 = arith.constant 0 : index
    %c0_13 = arith.constant 0 : index
    %11 = vector.load %arg2[%c0_12, %c0_13] : memref<128x384xbf16, #tpu.memory_space<vmem>>, vector<128x384xbf16>
    %cst_14 = arith.constant dense<0.000000e+00> : vector<8x384xf32>
    %12 = tpu.matmul %10, %11, %cst_14 {dimension_numbers = #tpu.dot_dimension_numbers<[1], [0], [0], [1], [0, 0, 1, 1], [], []>} : vector<8x128xbf16>, vector<128x384xbf16>, vector<8x384xf32> -> vector<8x384xf32>
    %13 = vector.extract_strided_slice %9 {offsets = [0, 0], sizes = [8, 256], strides = [1, 1]} : vector<8x384xf32> to vector<8x256xf32>
    %14 = vector.extract_strided_slice %12 {offsets = [0, 0], sizes = [8, 256], strides = [1, 1]} : vector<8x384xf32> to vector<8x256xf32>
    %15 = arith.addf %13, %14 : vector<8x256xf32>
    %16 = arith.negf %15 : vector<8x256xf32>
    %17 = math.exp %16 : vector<8x256xf32>
    %cst_15 = arith.constant 1.000000e+00 : f32
    %18 = vector.broadcast %cst_15 : f32 to vector<8x256xf32>
    %19 = arith.addf %18, %17 : vector<8x256xf32>
    %20 = arith.divf %18, %19 : vector<8x256xf32>
    %21 = vector.extract_strided_slice %20 {offsets = [0, 0], sizes = [8, 128], strides = [1, 1]} : vector<8x256xf32> to vector<8x128xf32>
    %22 = vector.extract_strided_slice %20 {offsets = [0, 128], sizes = [8, 128], strides = [1, 1]} : vector<8x256xf32> to vector<8x128xf32>
    %23 = vector.extract_strided_slice %9 {offsets = [0, 256], sizes = [8, 128], strides = [1, 1]} : vector<8x384xf32> to vector<8x128xf32>
    %24 = vector.extract_strided_slice %12 {offsets = [0, 256], sizes = [8, 128], strides = [1, 1]} : vector<8x384xf32> to vector<8x128xf32>
    %25 = vector.broadcast %7 : vector<1x128xf32> to vector<8x128xf32>
    %26 = arith.addf %24, %25 : vector<8x128xf32>
    %27 = arith.mulf %21, %26 : vector<8x128xf32>
    %28 = arith.addf %23, %27 : vector<8x128xf32>
    %29 = math.tanh %28 : vector<8x128xf32>
    %cst_16 = arith.constant 1.000000e+00 : f32
    %30 = vector.broadcast %cst_16 : f32 to vector<8x128xf32>
    %31 = arith.subf %30, %22 : vector<8x128xf32>
    %32 = arith.mulf %31, %29 : vector<8x128xf32>
    %33 = arith.mulf %22, %8 : vector<8x128xf32>
    %34 = arith.addf %32, %33 : vector<8x128xf32>
    %35 = arith.truncf %34 : vector<8x128xf32> to vector<8x128xbf16>
    %c0_17 = arith.constant 0 : index
    %c0_18 = arith.constant 0 : index
    %36 = vector.load %arg12[%c0_17, %c0_18] : memref<64x128xbf16, #tpu.memory_space<vmem>>, vector<8x128xbf16>
    tpu.vector_store %arg12[%c0_17, %c0_18], %35 {strides = array<i32>} : memref<64x128xbf16, #tpu.memory_space<vmem>>, vector<8x128xbf16>,
    %c8 = arith.constant 8 : index
    %c0_19 = arith.constant 0 : index
    %37 = vector.load %arg13[%c8, %c0_19] : memref<64x384xf32, #tpu.memory_space<vmem>>, vector<8x384xf32>
    %38 = arith.truncf %34 : vector<8x128xf32> to vector<8x128xbf16>
    %c0_20 = arith.constant 0 : index
    %c0_21 = arith.constant 0 : index
    %39 = vector.load %arg2[%c0_20, %c0_21] : memref<128x384xbf16, #tpu.memory_space<vmem>>, vector<128x384xbf16>
    %cst_22 = arith.constant dense<0.000000e+00> : vector<8x384xf32>
    %40 = tpu.matmul %38, %39, %cst_22 {dimension_numbers = #tpu.dot_dimension_numbers<[1], [0], [0], [1], [0, 0, 1, 1], [], []>} : vector<8x128xbf16>, vector<128x384xbf16>, vector<8x384xf32> -> vector<8x384xf32>
    %41 = vector.extract_strided_slice %37 {offsets = [0, 0], sizes = [8, 256], strides = [1, 1]} : vector<8x384xf32> to vector<8x256xf32>
    %42 = vector.extract_strided_slice %40 {offsets = [0, 0], sizes = [8, 256], strides = [1, 1]} : vector<8x384xf32> to vector<8x256xf32>
    %43 = arith.addf %41, %42 : vector<8x256xf32>
    %44 = arith.negf %43 : vector<8x256xf32>
    %45 = math.exp %44 : vector<8x256xf32>
    %cst_23 = arith.constant 1.000000e+00 : f32
    %46 = vector.broadcast %cst_23 : f32 to vector<8x256xf32>
    %47 = arith.addf %46, %45 : vector<8x256xf32>
    %48 = arith.divf %46, %47 : vector<8x256xf32>
    %49 = vector.extract_strided_slice %48 {offsets = [0, 0], sizes = [8, 128], strides = [1, 1]} : vector<8x256xf32> to vector<8x128xf32>
    %50 = vector.extract_strided_slice %48 {offsets = [0, 128], sizes = [8, 128], strides = [1, 1]} : vector<8x256xf32> to vector<8x128xf32>
    %51 = vector.extract_strided_slice %37 {offsets = [0, 256], sizes = [8, 128], strides = [1, 1]} : vector<8x384xf32> to vector<8x128xf32>
    %52 = vector.extract_strided_slice %40 {offsets = [0, 256], sizes = [8, 128], strides = [1, 1]} : vector<8x384xf32> to vector<8x128xf32>
    %53 = vector.broadcast %7 : vector<1x128xf32> to vector<8x128xf32>
    %54 = arith.addf %52, %53 : vector<8x128xf32>
    %55 = arith.mulf %49, %54 : vector<8x128xf32>
    %56 = arith.addf %51, %55 : vector<8x128xf32>
    %57 = math.tanh %56 : vector<8x128xf32>
    %cst_24 = arith.constant 1.000000e+00 : f32
    %58 = vector.broadcast %cst_24 : f32 to vector<8x128xf32>
    %59 = arith.subf %58, %50 : vector<8x128xf32>
    %60 = arith.mulf %59, %57 : vector<8x128xf32>
    %61 = arith.mulf %50, %34 : vector<8x128xf32>
    %62 = arith.addf %60, %61 : vector<8x128xf32>
    %63 = arith.truncf %62 : vector<8x128xf32> to vector<8x128xbf16>
    %c8_25 = arith.constant 8 : index
    %c0_26 = arith.constant 0 : index
    %64 = vector.load %arg12[%c8_25, %c0_26] : memref<64x128xbf16, #tpu.memory_space<vmem>>, vector<8x128xbf16>
    tpu.vector_store %arg12[%c8_25, %c0_26], %63 {strides = array<i32>} : memref<64x128xbf16, #tpu.memory_space<vmem>>, vector<8x128xbf16>,
    %c16 = arith.constant 16 : index
    %c0_27 = arith.constant 0 : index
    %65 = vector.load %arg13[%c16, %c0_27] : memref<64x384xf32, #tpu.memory_space<vmem>>, vector<8x384xf32>
    %66 = arith.truncf %62 : vector<8x128xf32> to vector<8x128xbf16>
    %c0_28 = arith.constant 0 : index
    %c0_29 = arith.constant 0 : index
    %67 = vector.load %arg2[%c0_28, %c0_29] : memref<128x384xbf16, #tpu.memory_space<vmem>>, vector<128x384xbf16>
    %cst_30 = arith.constant dense<0.000000e+00> : vector<8x384xf32>
    %68 = tpu.matmul %66, %67, %cst_30 {dimension_numbers = #tpu.dot_dimension_numbers<[1], [0], [0], [1], [0, 0, 1, 1], [], []>} : vector<8x128xbf16>, vector<128x384xbf16>, vector<8x384xf32> -> vector<8x384xf32>
    %69 = vector.extract_strided_slice %65 {offsets = [0, 0], sizes = [8, 256], strides = [1, 1]} : vector<8x384xf32> to vector<8x256xf32>
    %70 = vector.extract_strided_slice %68 {offsets = [0, 0], sizes = [8, 256], strides = [1, 1]} : vector<8x384xf32> to vector<8x256xf32>
    %71 = arith.addf %69, %70 : vector<8x256xf32>
    %72 = arith.negf %71 : vector<8x256xf32>
    %73 = math.exp %72 : vector<8x256xf32>
    %cst_31 = arith.constant 1.000000e+00 : f32
    %74 = vector.broadcast %cst_31 : f32 to vector<8x256xf32>
    %75 = arith.addf %74, %73 : vector<8x256xf32>
    %76 = arith.divf %74, %75 : vector<8x256xf32>
    %77 = vector.extract_strided_slice %76 {offsets = [0, 0], sizes = [8, 128], strides = [1, 1]} : vector<8x256xf32> to vector<8x128xf32>
    %78 = vector.extract_strided_slice %76 {offsets = [0, 128], sizes = [8, 128], strides = [1, 1]} : vector<8x256xf32> to vector<8x128xf32>
    %79 = vector.extract_strided_slice %65 {offsets = [0, 256], sizes = [8, 128], strides = [1, 1]} : vector<8x384xf32> to vector<8x128xf32>
    %80 = vector.extract_strided_slice %68 {offsets = [0, 256], sizes = [8, 128], strides = [1, 1]} : vector<8x384xf32> to vector<8x128xf32>
    %81 = vector.broadcast %7 : vector<1x128xf32> to vector<8x128xf32>
    %82 = arith.addf %80, %81 : vector<8x128xf32>
    %83 = arith.mulf %77, %82 : vector<8x128xf32>
    %84 = arith.addf %79, %83 : vector<8x128xf32>
    %85 = math.tanh %84 : vector<8x128xf32>
    %cst_32 = arith.constant 1.000000e+00 : f32
    %86 = vector.broadcast %cst_32 : f32 to vector<8x128xf32>
    %87 = arith.subf %86, %78 : vector<8x128xf32>
    %88 = arith.mulf %87, %85 : vector<8x128xf32>
    %89 = arith.mulf %78, %62 : vector<8x128xf32>
    %90 = arith.addf %88, %89 : vector<8x128xf32>
    %91 = arith.truncf %90 : vector<8x128xf32> to vector<8x128xbf16>
    %c16_33 = arith.constant 16 : index
    %c0_34 = arith.constant 0 : index
    %92 = vector.load %arg12[%c16_33, %c0_34] : memref<64x128xbf16, #tpu.memory_space<vmem>>, vector<8x128xbf16>
    tpu.vector_store %arg12[%c16_33, %c0_34], %91 {strides = array<i32>} : memref<64x128xbf16, #tpu.memory_space<vmem>>, vector<8x128xbf16>,
    %c24 = arith.constant 24 : index
    %c0_35 = arith.constant 0 : index
    %93 = vector.load %arg13[%c24, %c0_35] : memref<64x384xf32, #tpu.memory_space<vmem>>, vector<8x384xf32>
    %94 = arith.truncf %90 : vector<8x128xf32> to vector<8x128xbf16>
    %c0_36 = arith.constant 0 : index
    %c0_37 = arith.constant 0 : index
    %95 = vector.load %arg2[%c0_36, %c0_37] : memref<128x384xbf16, #tpu.memory_space<vmem>>, vector<128x384xbf16>
    %cst_38 = arith.constant dense<0.000000e+00> : vector<8x384xf32>
    %96 = tpu.matmul %94, %95, %cst_38 {dimension_numbers = #tpu.dot_dimension_numbers<[1], [0], [0], [1], [0, 0, 1, 1], [], []>} : vector<8x128xbf16>, vector<128x384xbf16>, vector<8x384xf32> -> vector<8x384xf32>
    %97 = vector.extract_strided_slice %93 {offsets = [0, 0], sizes = [8, 256], strides = [1, 1]} : vector<8x384xf32> to vector<8x256xf32>
    %98 = vector.extract_strided_slice %96 {offsets = [0, 0], sizes = [8, 256], strides = [1, 1]} : vector<8x384xf32> to vector<8x256xf32>
    %99 = arith.addf %97, %98 : vector<8x256xf32>
    %100 = arith.negf %99 : vector<8x256xf32>
    %101 = math.exp %100 : vector<8x256xf32>
    %cst_39 = arith.constant 1.000000e+00 : f32
    %102 = vector.broadcast %cst_39 : f32 to vector<8x256xf32>
    %103 = arith.addf %102, %101 : vector<8x256xf32>
    %104 = arith.divf %102, %103 : vector<8x256xf32>
    %105 = vector.extract_strided_slice %104 {offsets = [0, 0], sizes = [8, 128], strides = [1, 1]} : vector<8x256xf32> to vector<8x128xf32>
    %106 = vector.extract_strided_slice %104 {offsets = [0, 128], sizes = [8, 128], strides = [1, 1]} : vector<8x256xf32> to vector<8x128xf32>
    %107 = vector.extract_strided_slice %93 {offsets = [0, 256], sizes = [8, 128], strides = [1, 1]} : vector<8x384xf32> to vector<8x128xf32>
    %108 = vector.extract_strided_slice %96 {offsets = [0, 256], sizes = [8, 128], strides = [1, 1]} : vector<8x384xf32> to vector<8x128xf32>
    %109 = vector.broadcast %7 : vector<1x128xf32> to vector<8x128xf32>
    %110 = arith.addf %108, %109 : vector<8x128xf32>
    %111 = arith.mulf %105, %110 : vector<8x128xf32>
    %112 = arith.addf %107, %111 : vector<8x128xf32>
    %113 = math.tanh %112 : vector<8x128xf32>
    %cst_40 = arith.constant 1.000000e+00 : f32
    %114 = vector.broadcast %cst_40 : f32 to vector<8x128xf32>
    %115 = arith.subf %114, %106 : vector<8x128xf32>
    %116 = arith.mulf %115, %113 : vector<8x128xf32>
    %117 = arith.mulf %106, %90 : vector<8x128xf32>
    %118 = arith.addf %116, %117 : vector<8x128xf32>
    %119 = arith.truncf %118 : vector<8x128xf32> to vector<8x128xbf16>
    %c24_41 = arith.constant 24 : index
    %c0_42 = arith.constant 0 : index
    %120 = vector.load %arg12[%c24_41, %c0_42] : memref<64x128xbf16, #tpu.memory_space<vmem>>, vector<8x128xbf16>
    tpu.vector_store %arg12[%c24_41, %c0_42], %119 {strides = array<i32>} : memref<64x128xbf16, #tpu.memory_space<vmem>>, vector<8x128xbf16>,
    %c32 = arith.constant 32 : index
    %c0_43 = arith.constant 0 : index
    %121 = vector.load %arg13[%c32, %c0_43] : memref<64x384xf32, #tpu.memory_space<vmem>>, vector<8x384xf32>
    %122 = arith.truncf %118 : vector<8x128xf32> to vector<8x128xbf16>
    %c0_44 = arith.constant 0 : index
    %c0_45 = arith.constant 0 : index
    %123 = vector.load %arg2[%c0_44, %c0_45] : memref<128x384xbf16, #tpu.memory_space<vmem>>, vector<128x384xbf16>
    %cst_46 = arith.constant dense<0.000000e+00> : vector<8x384xf32>
    %124 = tpu.matmul %122, %123, %cst_46 {dimension_numbers = #tpu.dot_dimension_numbers<[1], [0], [0], [1], [0, 0, 1, 1], [], []>} : vector<8x128xbf16>, vector<128x384xbf16>, vector<8x384xf32> -> vector<8x384xf32>
    %125 = vector.extract_strided_slice %121 {offsets = [0, 0], sizes = [8, 256], strides = [1, 1]} : vector<8x384xf32> to vector<8x256xf32>
    %126 = vector.extract_strided_slice %124 {offsets = [0, 0], sizes = [8, 256], strides = [1, 1]} : vector<8x384xf32> to vector<8x256xf32>
    %127 = arith.addf %125, %126 : vector<8x256xf32>
    %128 = arith.negf %127 : vector<8x256xf32>
    %129 = math.exp %128 : vector<8x256xf32>
    %cst_47 = arith.constant 1.000000e+00 : f32
    %130 = vector.broadcast %cst_47 : f32 to vector<8x256xf32>
    %131 = arith.addf %130, %129 : vector<8x256xf32>
    %132 = arith.divf %130, %131 : vector<8x256xf32>
    %133 = vector.extract_strided_slice %132 {offsets = [0, 0], sizes = [8, 128], strides = [1, 1]} : vector<8x256xf32> to vector<8x128xf32>
    %134 = vector.extract_strided_slice %132 {offsets = [0, 128], sizes = [8, 128], strides = [1, 1]} : vector<8x256xf32> to vector<8x128xf32>
    %135 = vector.extract_strided_slice %121 {offsets = [0, 256], sizes = [8, 128], strides = [1, 1]} : vector<8x384xf32> to vector<8x128xf32>
    %136 = vector.extract_strided_slice %124 {offsets = [0, 256], sizes = [8, 128], strides = [1, 1]} : vector<8x384xf32> to vector<8x128xf32>
    %137 = vector.broadcast %7 : vector<1x128xf32> to vector<8x128xf32>
    %138 = arith.addf %136, %137 : vector<8x128xf32>
    %139 = arith.mulf %133, %138 : vector<8x128xf32>
    %140 = arith.addf %135, %139 : vector<8x128xf32>
    %141 = math.tanh %140 : vector<8x128xf32>
    %cst_48 = arith.constant 1.000000e+00 : f32
    %142 = vector.broadcast %cst_48 : f32 to vector<8x128xf32>
    %143 = arith.subf %142, %134 : vector<8x128xf32>
    %144 = arith.mulf %143, %141 : vector<8x128xf32>
    %145 = arith.mulf %134, %118 : vector<8x128xf32>
    %146 = arith.addf %144, %145 : vector<8x128xf32>
    %147 = arith.truncf %146 : vector<8x128xf32> to vector<8x128xbf16>
    %c32_49 = arith.constant 32 : index
    %c0_50 = arith.constant 0 : index
    %148 = vector.load %arg12[%c32_49, %c0_50] : memref<64x128xbf16, #tpu.memory_space<vmem>>, vector<8x128xbf16>
    tpu.vector_store %arg12[%c32_49, %c0_50], %147 {strides = array<i32>} : memref<64x128xbf16, #tpu.memory_space<vmem>>, vector<8x128xbf16>,
    %c40 = arith.constant 40 : index
    %c0_51 = arith.constant 0 : index
    %149 = vector.load %arg13[%c40, %c0_51] : memref<64x384xf32, #tpu.memory_space<vmem>>, vector<8x384xf32>
    %150 = arith.truncf %146 : vector<8x128xf32> to vector<8x128xbf16>
    %c0_52 = arith.constant 0 : index
    %c0_53 = arith.constant 0 : index
    %151 = vector.load %arg2[%c0_52, %c0_53] : memref<128x384xbf16, #tpu.memory_space<vmem>>, vector<128x384xbf16>
    %cst_54 = arith.constant dense<0.000000e+00> : vector<8x384xf32>
    %152 = tpu.matmul %150, %151, %cst_54 {dimension_numbers = #tpu.dot_dimension_numbers<[1], [0], [0], [1], [0, 0, 1, 1], [], []>} : vector<8x128xbf16>, vector<128x384xbf16>, vector<8x384xf32> -> vector<8x384xf32>
    %153 = vector.extract_strided_slice %149 {offsets = [0, 0], sizes = [8, 256], strides = [1, 1]} : vector<8x384xf32> to vector<8x256xf32>
    %154 = vector.extract_strided_slice %152 {offsets = [0, 0], sizes = [8, 256], strides = [1, 1]} : vector<8x384xf32> to vector<8x256xf32>
    %155 = arith.addf %153, %154 : vector<8x256xf32>
    %156 = arith.negf %155 : vector<8x256xf32>
    %157 = math.exp %156 : vector<8x256xf32>
    %cst_55 = arith.constant 1.000000e+00 : f32
    %158 = vector.broadcast %cst_55 : f32 to vector<8x256xf32>
    %159 = arith.addf %158, %157 : vector<8x256xf32>
    %160 = arith.divf %158, %159 : vector<8x256xf32>
    %161 = vector.extract_strided_slice %160 {offsets = [0, 0], sizes = [8, 128], strides = [1, 1]} : vector<8x256xf32> to vector<8x128xf32>
    %162 = vector.extract_strided_slice %160 {offsets = [0, 128], sizes = [8, 128], strides = [1, 1]} : vector<8x256xf32> to vector<8x128xf32>
    %163 = vector.extract_strided_slice %149 {offsets = [0, 256], sizes = [8, 128], strides = [1, 1]} : vector<8x384xf32> to vector<8x128xf32>
    %164 = vector.extract_strided_slice %152 {offsets = [0, 256], sizes = [8, 128], strides = [1, 1]} : vector<8x384xf32> to vector<8x128xf32>
    %165 = vector.broadcast %7 : vector<1x128xf32> to vector<8x128xf32>
    %166 = arith.addf %164, %165 : vector<8x128xf32>
    %167 = arith.mulf %161, %166 : vector<8x128xf32>
    %168 = arith.addf %163, %167 : vector<8x128xf32>
    %169 = math.tanh %168 : vector<8x128xf32>
    %cst_56 = arith.constant 1.000000e+00 : f32
    %170 = vector.broadcast %cst_56 : f32 to vector<8x128xf32>
    %171 = arith.subf %170, %162 : vector<8x128xf32>
    %172 = arith.mulf %171, %169 : vector<8x128xf32>
    %173 = arith.mulf %162, %146 : vector<8x128xf32>
    %174 = arith.addf %172, %173 : vector<8x128xf32>
    %175 = arith.truncf %174 : vector<8x128xf32> to vector<8x128xbf16>
    %c40_57 = arith.constant 40 : index
    %c0_58 = arith.constant 0 : index
    %176 = vector.load %arg12[%c40_57, %c0_58] : memref<64x128xbf16, #tpu.memory_space<vmem>>, vector<8x128xbf16>
    tpu.vector_store %arg12[%c40_57, %c0_58], %175 {strides = array<i32>} : memref<64x128xbf16, #tpu.memory_space<vmem>>, vector<8x128xbf16>,
    %c48 = arith.constant 48 : index
    %c0_59 = arith.constant 0 : index
    %177 = vector.load %arg13[%c48, %c0_59] : memref<64x384xf32, #tpu.memory_space<vmem>>, vector<8x384xf32>
    %178 = arith.truncf %174 : vector<8x128xf32> to vector<8x128xbf16>
    %c0_60 = arith.constant 0 : index
    %c0_61 = arith.constant 0 : index
    %179 = vector.load %arg2[%c0_60, %c0_61] : memref<128x384xbf16, #tpu.memory_space<vmem>>, vector<128x384xbf16>
    %cst_62 = arith.constant dense<0.000000e+00> : vector<8x384xf32>
    %180 = tpu.matmul %178, %179, %cst_62 {dimension_numbers = #tpu.dot_dimension_numbers<[1], [0], [0], [1], [0, 0, 1, 1], [], []>} : vector<8x128xbf16>, vector<128x384xbf16>, vector<8x384xf32> -> vector<8x384xf32>
    %181 = vector.extract_strided_slice %177 {offsets = [0, 0], sizes = [8, 256], strides = [1, 1]} : vector<8x384xf32> to vector<8x256xf32>
    %182 = vector.extract_strided_slice %180 {offsets = [0, 0], sizes = [8, 256], strides = [1, 1]} : vector<8x384xf32> to vector<8x256xf32>
    %183 = arith.addf %181, %182 : vector<8x256xf32>
    %184 = arith.negf %183 : vector<8x256xf32>
    %185 = math.exp %184 : vector<8x256xf32>
    %cst_63 = arith.constant 1.000000e+00 : f32
    %186 = vector.broadcast %cst_63 : f32 to vector<8x256xf32>
    %187 = arith.addf %186, %185 : vector<8x256xf32>
    %188 = arith.divf %186, %187 : vector<8x256xf32>
    %189 = vector.extract_strided_slice %188 {offsets = [0, 0], sizes = [8, 128], strides = [1, 1]} : vector<8x256xf32> to vector<8x128xf32>
    %190 = vector.extract_strided_slice %188 {offsets = [0, 128], sizes = [8, 128], strides = [1, 1]} : vector<8x256xf32> to vector<8x128xf32>
    %191 = vector.extract_strided_slice %177 {offsets = [0, 256], sizes = [8, 128], strides = [1, 1]} : vector<8x384xf32> to vector<8x128xf32>
    %192 = vector.extract_strided_slice %180 {offsets = [0, 256], sizes = [8, 128], strides = [1, 1]} : vector<8x384xf32> to vector<8x128xf32>
    %193 = vector.broadcast %7 : vector<1x128xf32> to vector<8x128xf32>
    %194 = arith.addf %192, %193 : vector<8x128xf32>
    %195 = arith.mulf %189, %194 : vector<8x128xf32>
    %196 = arith.addf %191, %195 : vector<8x128xf32>
    %197 = math.tanh %196 : vector<8x128xf32>
    %cst_64 = arith.constant 1.000000e+00 : f32
    %198 = vector.broadcast %cst_64 : f32 to vector<8x128xf32>
    %199 = arith.subf %198, %190 : vector<8x128xf32>
    %200 = arith.mulf %199, %197 : vector<8x128xf32>
    %201 = arith.mulf %190, %174 : vector<8x128xf32>
    %202 = arith.addf %200, %201 : vector<8x128xf32>
    %203 = arith.truncf %202 : vector<8x128xf32> to vector<8x128xbf16>
    %c48_65 = arith.constant 48 : index
    %c0_66 = arith.constant 0 : index
    %204 = vector.load %arg12[%c48_65, %c0_66] : memref<64x128xbf16, #tpu.memory_space<vmem>>, vector<8x128xbf16>
    tpu.vector_store %arg12[%c48_65, %c0_66], %203 {strides = array<i32>} : memref<64x128xbf16, #tpu.memory_space<vmem>>, vector<8x128xbf16>,
    %c56 = arith.constant 56 : index
    %c0_67 = arith.constant 0 : index
    %205 = vector.load %arg13[%c56, %c0_67] : memref<64x384xf32, #tpu.memory_space<vmem>>, vector<8x384xf32>
    %206 = arith.truncf %202 : vector<8x128xf32> to vector<8x128xbf16>
    %c0_68 = arith.constant 0 : index
    %c0_69 = arith.constant 0 : index
    %207 = vector.load %arg2[%c0_68, %c0_69] : memref<128x384xbf16, #tpu.memory_space<vmem>>, vector<128x384xbf16>
    %cst_70 = arith.constant dense<0.000000e+00> : vector<8x384xf32>
    %208 = tpu.matmul %206, %207, %cst_70 {dimension_numbers = #tpu.dot_dimension_numbers<[1], [0], [0], [1], [0, 0, 1, 1], [], []>} : vector<8x128xbf16>, vector<128x384xbf16>, vector<8x384xf32> -> vector<8x384xf32>
    %209 = vector.extract_strided_slice %205 {offsets = [0, 0], sizes = [8, 256], strides = [1, 1]} : vector<8x384xf32> to vector<8x256xf32>
    %210 = vector.extract_strided_slice %208 {offsets = [0, 0], sizes = [8, 256], strides = [1, 1]} : vector<8x384xf32> to vector<8x256xf32>
    %211 = arith.addf %209, %210 : vector<8x256xf32>
    %212 = arith.negf %211 : vector<8x256xf32>
    %213 = math.exp %212 : vector<8x256xf32>
    %cst_71 = arith.constant 1.000000e+00 : f32
    %214 = vector.broadcast %cst_71 : f32 to vector<8x256xf32>
    %215 = arith.addf %214, %213 : vector<8x256xf32>
    %216 = arith.divf %214, %215 : vector<8x256xf32>
    %217 = vector.extract_strided_slice %216 {offsets = [0, 0], sizes = [8, 128], strides = [1, 1]} : vector<8x256xf32> to vector<8x128xf32>
    %218 = vector.extract_strided_slice %216 {offsets = [0, 128], sizes = [8, 128], strides = [1, 1]} : vector<8x256xf32> to vector<8x128xf32>
    %219 = vector.extract_strided_slice %205 {offsets = [0, 256], sizes = [8, 128], strides = [1, 1]} : vector<8x384xf32> to vector<8x128xf32>
    %220 = vector.extract_strided_slice %208 {offsets = [0, 256], sizes = [8, 128], strides = [1, 1]} : vector<8x384xf32> to vector<8x128xf32>
    %221 = vector.broadcast %7 : vector<1x128xf32> to vector<8x128xf32>
    %222 = arith.addf %220, %221 : vector<8x128xf32>
    %223 = arith.mulf %217, %222 : vector<8x128xf32>
    %224 = arith.addf %219, %223 : vector<8x128xf32>
    %225 = math.tanh %224 : vector<8x128xf32>
    %cst_72 = arith.constant 1.000000e+00 : f32
    %226 = vector.broadcast %cst_72 : f32 to vector<8x128xf32>
    %227 = arith.subf %226, %218 : vector<8x128xf32>
    %228 = arith.mulf %227, %225 : vector<8x128xf32>
    %229 = arith.mulf %218, %202 : vector<8x128xf32>
    %230 = arith.addf %228, %229 : vector<8x128xf32>
    %231 = arith.truncf %230 : vector<8x128xf32> to vector<8x128xbf16>
    %c56_73 = arith.constant 56 : index
    %c0_74 = arith.constant 0 : index
    %232 = vector.load %arg12[%c56_73, %c0_74] : memref<64x128xbf16, #tpu.memory_space<vmem>>, vector<8x128xbf16>
    tpu.vector_store %arg12[%c56_73, %c0_74], %231 {strides = array<i32>} : memref<64x128xbf16, #tpu.memory_space<vmem>>, vector<8x128xbf16>,
    %c0_75 = arith.constant 0 : index
    %c0_76 = arith.constant 0 : index
    %233 = vector.load %arg12[%c0_75, %c0_76] : memref<64x128xbf16, #tpu.memory_space<vmem>>, vector<64x128xbf16>
    %c0_77 = arith.constant 0 : index
    %c0_78 = arith.constant 0 : index
    %234 = vector.load %arg5[%c0_77, %c0_78] : memref<128x384xbf16, #tpu.memory_space<vmem>>, vector<128x384xbf16>
    %cst_79 = arith.constant dense<0.000000e+00> : vector<64x384xf32>
    %235 = tpu.matmul %233, %234, %cst_79 {dimension_numbers = #tpu.dot_dimension_numbers<[1], [0], [0], [1], [0, 0, 1, 1], [], []>} : vector<64x128xbf16>, vector<128x384xbf16>, vector<64x384xf32> -> vector<64x384xf32>
    %c0_80 = arith.constant 0 : index
    %c0_81 = arith.constant 0 : index
    %236 = vector.load %arg7[%c0_80, %c0_81] : memref<1x384xf32, #tpu.memory_space<vmem>>, vector<1x384xf32>
    %237 = vector.broadcast %236 : vector<1x384xf32> to vector<64x384xf32>
    %238 = arith.addf %235, %237 : vector<64x384xf32>
    %c0_82 = arith.constant 0 : index
    %c0_83 = arith.constant 0 : index
    %239 = vector.load %arg13[%c0_82, %c0_83] : memref<64x384xf32, #tpu.memory_space<vmem>>, vector<64x384xf32>
    tpu.vector_store %arg13[%c0_82, %c0_83], %238 {strides = array<i32>} : memref<64x384xf32, #tpu.memory_space<vmem>>, vector<64x384xf32>,
    %c0_84 = arith.constant 0 : index
    %c0_85 = arith.constant 0 : index
    %240 = vector.load %arg8[%c0_84, %c0_85] : memref<1x128xf32, #tpu.memory_space<vmem>>, vector<1x128xf32>
    %cst_86 = arith.constant 0.000000e+00 : f32
    %241 = vector.broadcast %cst_86 : f32 to vector<8x128xf32>
    %c0_87 = arith.constant 0 : index
    %c0_88 = arith.constant 0 : index
    %242 = vector.load %arg13[%c0_87, %c0_88] : memref<64x384xf32, #tpu.memory_space<vmem>>, vector<8x384xf32>
    %243 = arith.truncf %241 : vector<8x128xf32> to vector<8x128xbf16>
    %c0_89 = arith.constant 0 : index
    %c0_90 = arith.constant 0 : index
    %244 = vector.load %arg6[%c0_89, %c0_90] : memref<128x384xbf16, #tpu.memory_space<vmem>>, vector<128x384xbf16>
    %cst_91 = arith.constant dense<0.000000e+00> : vector<8x384xf32>
    %245 = tpu.matmul %243, %244, %cst_91 {dimension_numbers = #tpu.dot_dimension_numbers<[1], [0], [0], [1], [0, 0, 1, 1], [], []>} : vector<8x128xbf16>, vector<128x384xbf16>, vector<8x384xf32> -> vector<8x384xf32>
    %246 = vector.extract_strided_slice %242 {offsets = [0, 0], sizes = [8, 256], strides = [1, 1]} : vector<8x384xf32> to vector<8x256xf32>
    %247 = vector.extract_strided_slice %245 {offsets = [0, 0], sizes = [8, 256], strides = [1, 1]} : vector<8x384xf32> to vector<8x256xf32>
    %248 = arith.addf %246, %247 : vector<8x256xf32>
    %249 = arith.negf %248 : vector<8x256xf32>
    %250 = math.exp %249 : vector<8x256xf32>
    %cst_92 = arith.constant 1.000000e+00 : f32
    %251 = vector.broadcast %cst_92 : f32 to vector<8x256xf32>
    %252 = arith.addf %251, %250 : vector<8x256xf32>
    %253 = arith.divf %251, %252 : vector<8x256xf32>
    %254 = vector.extract_strided_slice %253 {offsets = [0, 0], sizes = [8, 128], strides = [1, 1]} : vector<8x256xf32> to vector<8x128xf32>
    %255 = vector.extract_strided_slice %253 {offsets = [0, 128], sizes = [8, 128], strides = [1, 1]} : vector<8x256xf32> to vector<8x128xf32>
    %256 = vector.extract_strided_slice %242 {offsets = [0, 256], sizes = [8, 128], strides = [1, 1]} : vector<8x384xf32> to vector<8x128xf32>
    %257 = vector.extract_strided_slice %245 {offsets = [0, 256], sizes = [8, 128], strides = [1, 1]} : vector<8x384xf32> to vector<8x128xf32>
    %258 = vector.broadcast %240 : vector<1x128xf32> to vector<8x128xf32>
    %259 = arith.addf %257, %258 : vector<8x128xf32>
    %260 = arith.mulf %254, %259 : vector<8x128xf32>
    %261 = arith.addf %256, %260 : vector<8x128xf32>
    %262 = math.tanh %261 : vector<8x128xf32>
    %cst_93 = arith.constant 1.000000e+00 : f32
    %263 = vector.broadcast %cst_93 : f32 to vector<8x128xf32>
    %264 = arith.subf %263, %255 : vector<8x128xf32>
    %265 = arith.mulf %264, %262 : vector<8x128xf32>
    %266 = arith.mulf %255, %241 : vector<8x128xf32>
    %267 = arith.addf %265, %266 : vector<8x128xf32>
    %c8_94 = arith.constant 8 : index
    %c0_95 = arith.constant 0 : index
    %268 = vector.load %arg13[%c8_94, %c0_95] : memref<64x384xf32, #tpu.memory_space<vmem>>, vector<8x384xf32>
    %269 = arith.truncf %267 : vector<8x128xf32> to vector<8x128xbf16>
    %c0_96 = arith.constant 0 : index
    %c0_97 = arith.constant 0 : index
    %270 = vector.load %arg6[%c0_96, %c0_97] : memref<128x384xbf16, #tpu.memory_space<vmem>>, vector<128x384xbf16>
    %cst_98 = arith.constant dense<0.000000e+00> : vector<8x384xf32>
    %271 = tpu.matmul %269, %270, %cst_98 {dimension_numbers = #tpu.dot_dimension_numbers<[1], [0], [0], [1], [0, 0, 1, 1], [], []>} : vector<8x128xbf16>, vector<128x384xbf16>, vector<8x384xf32> -> vector<8x384xf32>
    %272 = vector.extract_strided_slice %268 {offsets = [0, 0], sizes = [8, 256], strides = [1, 1]} : vector<8x384xf32> to vector<8x256xf32>
    %273 = vector.extract_strided_slice %271 {offsets = [0, 0], sizes = [8, 256], strides = [1, 1]} : vector<8x384xf32> to vector<8x256xf32>
    %274 = arith.addf %272, %273 : vector<8x256xf32>
    %275 = arith.negf %274 : vector<8x256xf32>
    %276 = math.exp %275 : vector<8x256xf32>
    %cst_99 = arith.constant 1.000000e+00 : f32
    %277 = vector.broadcast %cst_99 : f32 to vector<8x256xf32>
    %278 = arith.addf %277, %276 : vector<8x256xf32>
    %279 = arith.divf %277, %278 : vector<8x256xf32>
    %280 = vector.extract_strided_slice %279 {offsets = [0, 0], sizes = [8, 128], strides = [1, 1]} : vector<8x256xf32> to vector<8x128xf32>
    %281 = vector.extract_strided_slice %279 {offsets = [0, 128], sizes = [8, 128], strides = [1, 1]} : vector<8x256xf32> to vector<8x128xf32>
    %282 = vector.extract_strided_slice %268 {offsets = [0, 256], sizes = [8, 128], strides = [1, 1]} : vector<8x384xf32> to vector<8x128xf32>
    %283 = vector.extract_strided_slice %271 {offsets = [0, 256], sizes = [8, 128], strides = [1, 1]} : vector<8x384xf32> to vector<8x128xf32>
    %284 = vector.broadcast %240 : vector<1x128xf32> to vector<8x128xf32>
    %285 = arith.addf %283, %284 : vector<8x128xf32>
    %286 = arith.mulf %280, %285 : vector<8x128xf32>
    %287 = arith.addf %282, %286 : vector<8x128xf32>
    %288 = math.tanh %287 : vector<8x128xf32>
    %cst_100 = arith.constant 1.000000e+00 : f32
    %289 = vector.broadcast %cst_100 : f32 to vector<8x128xf32>
    %290 = arith.subf %289, %281 : vector<8x128xf32>
    %291 = arith.mulf %290, %288 : vector<8x128xf32>
    %292 = arith.mulf %281, %267 : vector<8x128xf32>
    %293 = arith.addf %291, %292 : vector<8x128xf32>
    %c16_101 = arith.constant 16 : index
    %c0_102 = arith.constant 0 : index
    %294 = vector.load %arg13[%c16_101, %c0_102] : memref<64x384xf32, #tpu.memory_space<vmem>>, vector<8x384xf32>
    %295 = arith.truncf %293 : vector<8x128xf32> to vector<8x128xbf16>
    %c0_103 = arith.constant 0 : index
    %c0_104 = arith.constant 0 : index
    %296 = vector.load %arg6[%c0_103, %c0_104] : memref<128x384xbf16, #tpu.memory_space<vmem>>, vector<128x384xbf16>
    %cst_105 = arith.constant dense<0.000000e+00> : vector<8x384xf32>
    %297 = tpu.matmul %295, %296, %cst_105 {dimension_numbers = #tpu.dot_dimension_numbers<[1], [0], [0], [1], [0, 0, 1, 1], [], []>} : vector<8x128xbf16>, vector<128x384xbf16>, vector<8x384xf32> -> vector<8x384xf32>
    %298 = vector.extract_strided_slice %294 {offsets = [0, 0], sizes = [8, 256], strides = [1, 1]} : vector<8x384xf32> to vector<8x256xf32>
    %299 = vector.extract_strided_slice %297 {offsets = [0, 0], sizes = [8, 256], strides = [1, 1]} : vector<8x384xf32> to vector<8x256xf32>
    %300 = arith.addf %298, %299 : vector<8x256xf32>
    %301 = arith.negf %300 : vector<8x256xf32>
    %302 = math.exp %301 : vector<8x256xf32>
    %cst_106 = arith.constant 1.000000e+00 : f32
    %303 = vector.broadcast %cst_106 : f32 to vector<8x256xf32>
    %304 = arith.addf %303, %302 : vector<8x256xf32>
    %305 = arith.divf %303, %304 : vector<8x256xf32>
    %306 = vector.extract_strided_slice %305 {offsets = [0, 0], sizes = [8, 128], strides = [1, 1]} : vector<8x256xf32> to vector<8x128xf32>
    %307 = vector.extract_strided_slice %305 {offsets = [0, 128], sizes = [8, 128], strides = [1, 1]} : vector<8x256xf32> to vector<8x128xf32>
    %308 = vector.extract_strided_slice %294 {offsets = [0, 256], sizes = [8, 128], strides = [1, 1]} : vector<8x384xf32> to vector<8x128xf32>
    %309 = vector.extract_strided_slice %297 {offsets = [0, 256], sizes = [8, 128], strides = [1, 1]} : vector<8x384xf32> to vector<8x128xf32>
    %310 = vector.broadcast %240 : vector<1x128xf32> to vector<8x128xf32>
    %311 = arith.addf %309, %310 : vector<8x128xf32>
    %312 = arith.mulf %306, %311 : vector<8x128xf32>
    %313 = arith.addf %308, %312 : vector<8x128xf32>
    %314 = math.tanh %313 : vector<8x128xf32>
    %cst_107 = arith.constant 1.000000e+00 : f32
    %315 = vector.broadcast %cst_107 : f32 to vector<8x128xf32>
    %316 = arith.subf %315, %307 : vector<8x128xf32>
    %317 = arith.mulf %316, %314 : vector<8x128xf32>
    %318 = arith.mulf %307, %293 : vector<8x128xf32>
    %319 = arith.addf %317, %318 : vector<8x128xf32>
    %c24_108 = arith.constant 24 : index
    %c0_109 = arith.constant 0 : index
    %320 = vector.load %arg13[%c24_108, %c0_109] : memref<64x384xf32, #tpu.memory_space<vmem>>, vector<8x384xf32>
    %321 = arith.truncf %319 : vector<8x128xf32> to vector<8x128xbf16>
    %c0_110 = arith.constant 0 : index
    %c0_111 = arith.constant 0 : index
    %322 = vector.load %arg6[%c0_110, %c0_111] : memref<128x384xbf16, #tpu.memory_space<vmem>>, vector<128x384xbf16>
    %cst_112 = arith.constant dense<0.000000e+00> : vector<8x384xf32>
    %323 = tpu.matmul %321, %322, %cst_112 {dimension_numbers = #tpu.dot_dimension_numbers<[1], [0], [0], [1], [0, 0, 1, 1], [], []>} : vector<8x128xbf16>, vector<128x384xbf16>, vector<8x384xf32> -> vector<8x384xf32>
    %324 = vector.extract_strided_slice %320 {offsets = [0, 0], sizes = [8, 256], strides = [1, 1]} : vector<8x384xf32> to vector<8x256xf32>
    %325 = vector.extract_strided_slice %323 {offsets = [0, 0], sizes = [8, 256], strides = [1, 1]} : vector<8x384xf32> to vector<8x256xf32>
    %326 = arith.addf %324, %325 : vector<8x256xf32>
    %327 = arith.negf %326 : vector<8x256xf32>
    %328 = math.exp %327 : vector<8x256xf32>
    %cst_113 = arith.constant 1.000000e+00 : f32
    %329 = vector.broadcast %cst_113 : f32 to vector<8x256xf32>
    %330 = arith.addf %329, %328 : vector<8x256xf32>
    %331 = arith.divf %329, %330 : vector<8x256xf32>
    %332 = vector.extract_strided_slice %331 {offsets = [0, 0], sizes = [8, 128], strides = [1, 1]} : vector<8x256xf32> to vector<8x128xf32>
    %333 = vector.extract_strided_slice %331 {offsets = [0, 128], sizes = [8, 128], strides = [1, 1]} : vector<8x256xf32> to vector<8x128xf32>
    %334 = vector.extract_strided_slice %320 {offsets = [0, 256], sizes = [8, 128], strides = [1, 1]} : vector<8x384xf32> to vector<8x128xf32>
    %335 = vector.extract_strided_slice %323 {offsets = [0, 256], sizes = [8, 128], strides = [1, 1]} : vector<8x384xf32> to vector<8x128xf32>
    %336 = vector.broadcast %240 : vector<1x128xf32> to vector<8x128xf32>
    %337 = arith.addf %335, %336 : vector<8x128xf32>
    %338 = arith.mulf %332, %337 : vector<8x128xf32>
    %339 = arith.addf %334, %338 : vector<8x128xf32>
    %340 = math.tanh %339 : vector<8x128xf32>
    %cst_114 = arith.constant 1.000000e+00 : f32
    %341 = vector.broadcast %cst_114 : f32 to vector<8x128xf32>
    %342 = arith.subf %341, %333 : vector<8x128xf32>
    %343 = arith.mulf %342, %340 : vector<8x128xf32>
    %344 = arith.mulf %333, %319 : vector<8x128xf32>
    %345 = arith.addf %343, %344 : vector<8x128xf32>
    %c32_115 = arith.constant 32 : index
    %c0_116 = arith.constant 0 : index
    %346 = vector.load %arg13[%c32_115, %c0_116] : memref<64x384xf32, #tpu.memory_space<vmem>>, vector<8x384xf32>
    %347 = arith.truncf %345 : vector<8x128xf32> to vector<8x128xbf16>
    %c0_117 = arith.constant 0 : index
    %c0_118 = arith.constant 0 : index
    %348 = vector.load %arg6[%c0_117, %c0_118] : memref<128x384xbf16, #tpu.memory_space<vmem>>, vector<128x384xbf16>
    %cst_119 = arith.constant dense<0.000000e+00> : vector<8x384xf32>
    %349 = tpu.matmul %347, %348, %cst_119 {dimension_numbers = #tpu.dot_dimension_numbers<[1], [0], [0], [1], [0, 0, 1, 1], [], []>} : vector<8x128xbf16>, vector<128x384xbf16>, vector<8x384xf32> -> vector<8x384xf32>
    %350 = vector.extract_strided_slice %346 {offsets = [0, 0], sizes = [8, 256], strides = [1, 1]} : vector<8x384xf32> to vector<8x256xf32>
    %351 = vector.extract_strided_slice %349 {offsets = [0, 0], sizes = [8, 256], strides = [1, 1]} : vector<8x384xf32> to vector<8x256xf32>
    %352 = arith.addf %350, %351 : vector<8x256xf32>
    %353 = arith.negf %352 : vector<8x256xf32>
    %354 = math.exp %353 : vector<8x256xf32>
    %cst_120 = arith.constant 1.000000e+00 : f32
    %355 = vector.broadcast %cst_120 : f32 to vector<8x256xf32>
    %356 = arith.addf %355, %354 : vector<8x256xf32>
    %357 = arith.divf %355, %356 : vector<8x256xf32>
    %358 = vector.extract_strided_slice %357 {offsets = [0, 0], sizes = [8, 128], strides = [1, 1]} : vector<8x256xf32> to vector<8x128xf32>
    %359 = vector.extract_strided_slice %357 {offsets = [0, 128], sizes = [8, 128], strides = [1, 1]} : vector<8x256xf32> to vector<8x128xf32>
    %360 = vector.extract_strided_slice %346 {offsets = [0, 256], sizes = [8, 128], strides = [1, 1]} : vector<8x384xf32> to vector<8x128xf32>
    %361 = vector.extract_strided_slice %349 {offsets = [0, 256], sizes = [8, 128], strides = [1, 1]} : vector<8x384xf32> to vector<8x128xf32>
    %362 = vector.broadcast %240 : vector<1x128xf32> to vector<8x128xf32>
    %363 = arith.addf %361, %362 : vector<8x128xf32>
    %364 = arith.mulf %358, %363 : vector<8x128xf32>
    %365 = arith.addf %360, %364 : vector<8x128xf32>
    %366 = math.tanh %365 : vector<8x128xf32>
    %cst_121 = arith.constant 1.000000e+00 : f32
    %367 = vector.broadcast %cst_121 : f32 to vector<8x128xf32>
    %368 = arith.subf %367, %359 : vector<8x128xf32>
    %369 = arith.mulf %368, %366 : vector<8x128xf32>
    %370 = arith.mulf %359, %345 : vector<8x128xf32>
    %371 = arith.addf %369, %370 : vector<8x128xf32>
    %c40_122 = arith.constant 40 : index
    %c0_123 = arith.constant 0 : index
    %372 = vector.load %arg13[%c40_122, %c0_123] : memref<64x384xf32, #tpu.memory_space<vmem>>, vector<8x384xf32>
    %373 = arith.truncf %371 : vector<8x128xf32> to vector<8x128xbf16>
    %c0_124 = arith.constant 0 : index
    %c0_125 = arith.constant 0 : index
    %374 = vector.load %arg6[%c0_124, %c0_125] : memref<128x384xbf16, #tpu.memory_space<vmem>>, vector<128x384xbf16>
    %cst_126 = arith.constant dense<0.000000e+00> : vector<8x384xf32>
    %375 = tpu.matmul %373, %374, %cst_126 {dimension_numbers = #tpu.dot_dimension_numbers<[1], [0], [0], [1], [0, 0, 1, 1], [], []>} : vector<8x128xbf16>, vector<128x384xbf16>, vector<8x384xf32> -> vector<8x384xf32>
    %376 = vector.extract_strided_slice %372 {offsets = [0, 0], sizes = [8, 256], strides = [1, 1]} : vector<8x384xf32> to vector<8x256xf32>
    %377 = vector.extract_strided_slice %375 {offsets = [0, 0], sizes = [8, 256], strides = [1, 1]} : vector<8x384xf32> to vector<8x256xf32>
    %378 = arith.addf %376, %377 : vector<8x256xf32>
    %379 = arith.negf %378 : vector<8x256xf32>
    %380 = math.exp %379 : vector<8x256xf32>
    %cst_127 = arith.constant 1.000000e+00 : f32
    %381 = vector.broadcast %cst_127 : f32 to vector<8x256xf32>
    %382 = arith.addf %381, %380 : vector<8x256xf32>
    %383 = arith.divf %381, %382 : vector<8x256xf32>
    %384 = vector.extract_strided_slice %383 {offsets = [0, 0], sizes = [8, 128], strides = [1, 1]} : vector<8x256xf32> to vector<8x128xf32>
    %385 = vector.extract_strided_slice %383 {offsets = [0, 128], sizes = [8, 128], strides = [1, 1]} : vector<8x256xf32> to vector<8x128xf32>
    %386 = vector.extract_strided_slice %372 {offsets = [0, 256], sizes = [8, 128], strides = [1, 1]} : vector<8x384xf32> to vector<8x128xf32>
    %387 = vector.extract_strided_slice %375 {offsets = [0, 256], sizes = [8, 128], strides = [1, 1]} : vector<8x384xf32> to vector<8x128xf32>
    %388 = vector.broadcast %240 : vector<1x128xf32> to vector<8x128xf32>
    %389 = arith.addf %387, %388 : vector<8x128xf32>
    %390 = arith.mulf %384, %389 : vector<8x128xf32>
    %391 = arith.addf %386, %390 : vector<8x128xf32>
    %392 = math.tanh %391 : vector<8x128xf32>
    %cst_128 = arith.constant 1.000000e+00 : f32
    %393 = vector.broadcast %cst_128 : f32 to vector<8x128xf32>
    %394 = arith.subf %393, %385 : vector<8x128xf32>
    %395 = arith.mulf %394, %392 : vector<8x128xf32>
    %396 = arith.mulf %385, %371 : vector<8x128xf32>
    %397 = arith.addf %395, %396 : vector<8x128xf32>
    %c48_129 = arith.constant 48 : index
    %c0_130 = arith.constant 0 : index
    %398 = vector.load %arg13[%c48_129, %c0_130] : memref<64x384xf32, #tpu.memory_space<vmem>>, vector<8x384xf32>
    %399 = arith.truncf %397 : vector<8x128xf32> to vector<8x128xbf16>
    %c0_131 = arith.constant 0 : index
    %c0_132 = arith.constant 0 : index
    %400 = vector.load %arg6[%c0_131, %c0_132] : memref<128x384xbf16, #tpu.memory_space<vmem>>, vector<128x384xbf16>
    %cst_133 = arith.constant dense<0.000000e+00> : vector<8x384xf32>
    %401 = tpu.matmul %399, %400, %cst_133 {dimension_numbers = #tpu.dot_dimension_numbers<[1], [0], [0], [1], [0, 0, 1, 1], [], []>} : vector<8x128xbf16>, vector<128x384xbf16>, vector<8x384xf32> -> vector<8x384xf32>
    %402 = vector.extract_strided_slice %398 {offsets = [0, 0], sizes = [8, 256], strides = [1, 1]} : vector<8x384xf32> to vector<8x256xf32>
    %403 = vector.extract_strided_slice %401 {offsets = [0, 0], sizes = [8, 256], strides = [1, 1]} : vector<8x384xf32> to vector<8x256xf32>
    %404 = arith.addf %402, %403 : vector<8x256xf32>
    %405 = arith.negf %404 : vector<8x256xf32>
    %406 = math.exp %405 : vector<8x256xf32>
    %cst_134 = arith.constant 1.000000e+00 : f32
    %407 = vector.broadcast %cst_134 : f32 to vector<8x256xf32>
    %408 = arith.addf %407, %406 : vector<8x256xf32>
    %409 = arith.divf %407, %408 : vector<8x256xf32>
    %410 = vector.extract_strided_slice %409 {offsets = [0, 0], sizes = [8, 128], strides = [1, 1]} : vector<8x256xf32> to vector<8x128xf32>
    %411 = vector.extract_strided_slice %409 {offsets = [0, 128], sizes = [8, 128], strides = [1, 1]} : vector<8x256xf32> to vector<8x128xf32>
    %412 = vector.extract_strided_slice %398 {offsets = [0, 256], sizes = [8, 128], strides = [1, 1]} : vector<8x384xf32> to vector<8x128xf32>
    %413 = vector.extract_strided_slice %401 {offsets = [0, 256], sizes = [8, 128], strides = [1, 1]} : vector<8x384xf32> to vector<8x128xf32>
    %414 = vector.broadcast %240 : vector<1x128xf32> to vector<8x128xf32>
    %415 = arith.addf %413, %414 : vector<8x128xf32>
    %416 = arith.mulf %410, %415 : vector<8x128xf32>
    %417 = arith.addf %412, %416 : vector<8x128xf32>
    %418 = math.tanh %417 : vector<8x128xf32>
    %cst_135 = arith.constant 1.000000e+00 : f32
    %419 = vector.broadcast %cst_135 : f32 to vector<8x128xf32>
    %420 = arith.subf %419, %411 : vector<8x128xf32>
    %421 = arith.mulf %420, %418 : vector<8x128xf32>
    %422 = arith.mulf %411, %397 : vector<8x128xf32>
    %423 = arith.addf %421, %422 : vector<8x128xf32>
    %c56_136 = arith.constant 56 : index
    %c0_137 = arith.constant 0 : index
    %424 = vector.load %arg13[%c56_136, %c0_137] : memref<64x384xf32, #tpu.memory_space<vmem>>, vector<8x384xf32>
    %425 = arith.truncf %423 : vector<8x128xf32> to vector<8x128xbf16>
    %c0_138 = arith.constant 0 : index
    %c0_139 = arith.constant 0 : index
    %426 = vector.load %arg6[%c0_138, %c0_139] : memref<128x384xbf16, #tpu.memory_space<vmem>>, vector<128x384xbf16>
    %cst_140 = arith.constant dense<0.000000e+00> : vector<8x384xf32>
    %427 = tpu.matmul %425, %426, %cst_140 {dimension_numbers = #tpu.dot_dimension_numbers<[1], [0], [0], [1], [0, 0, 1, 1], [], []>} : vector<8x128xbf16>, vector<128x384xbf16>, vector<8x384xf32> -> vector<8x384xf32>
    %428 = vector.extract_strided_slice %424 {offsets = [0, 0], sizes = [8, 256], strides = [1, 1]} : vector<8x384xf32> to vector<8x256xf32>
    %429 = vector.extract_strided_slice %427 {offsets = [0, 0], sizes = [8, 256], strides = [1, 1]} : vector<8x384xf32> to vector<8x256xf32>
    %430 = arith.addf %428, %429 : vector<8x256xf32>
    %431 = arith.negf %430 : vector<8x256xf32>
    %432 = math.exp %431 : vector<8x256xf32>
    %cst_141 = arith.constant 1.000000e+00 : f32
    %433 = vector.broadcast %cst_141 : f32 to vector<8x256xf32>
    %434 = arith.addf %433, %432 : vector<8x256xf32>
    %435 = arith.divf %433, %434 : vector<8x256xf32>
    %436 = vector.extract_strided_slice %435 {offsets = [0, 0], sizes = [8, 128], strides = [1, 1]} : vector<8x256xf32> to vector<8x128xf32>
    %437 = vector.extract_strided_slice %435 {offsets = [0, 128], sizes = [8, 128], strides = [1, 1]} : vector<8x256xf32> to vector<8x128xf32>
    %438 = vector.extract_strided_slice %424 {offsets = [0, 256], sizes = [8, 128], strides = [1, 1]} : vector<8x384xf32> to vector<8x128xf32>
    %439 = vector.extract_strided_slice %427 {offsets = [0, 256], sizes = [8, 128], strides = [1, 1]} : vector<8x384xf32> to vector<8x128xf32>
    %440 = vector.broadcast %240 : vector<1x128xf32> to vector<8x128xf32>
    %441 = arith.addf %439, %440 : vector<8x128xf32>
    %442 = arith.mulf %436, %441 : vector<8x128xf32>
    %443 = arith.addf %438, %442 : vector<8x128xf32>
    %444 = math.tanh %443 : vector<8x128xf32>
    %cst_142 = arith.constant 1.000000e+00 : f32
    %445 = vector.broadcast %cst_142 : f32 to vector<8x128xf32>
    %446 = arith.subf %445, %437 : vector<8x128xf32>
    %447 = arith.mulf %446, %444 : vector<8x128xf32>
    %448 = arith.mulf %437, %423 : vector<8x128xf32>
    %449 = arith.addf %447, %448 : vector<8x128xf32>
    %450 = arith.truncf %449 : vector<8x128xf32> to vector<8x128xbf16>
    %c0_143 = arith.constant 0 : index
    %c0_144 = arith.constant 0 : index
    %451 = vector.load %arg9[%c0_143, %c0_144] : memref<128x128xbf16, #tpu.memory_space<vmem>>, vector<128x128xbf16>
    %cst_145 = arith.constant dense<0.000000e+00> : vector<8x128xf32>
    %452 = tpu.matmul %450, %451, %cst_145 {dimension_numbers = #tpu.dot_dimension_numbers<[1], [0], [0], [1], [0, 0, 1, 1], [], []>} : vector<8x128xbf16>, vector<128x128xbf16>, vector<8x128xf32> -> vector<8x128xf32>
    %c0_146 = arith.constant 0 : index
    %c0_147 = arith.constant 0 : index
    %453 = vector.load %arg10[%c0_146, %c0_147] : memref<1x128xf32, #tpu.memory_space<vmem>>, vector<1x128xf32>
    %454 = vector.broadcast %453 : vector<1x128xf32> to vector<8x128xf32>
    %455 = arith.addf %452, %454 : vector<8x128xf32>
    %c0_148 = arith.constant 0 : index
    %c0_149 = arith.constant 0 : index
    %456 = vector.load %arg11[%c0_148, %c0_149] : memref<8x128xf32, #tpu.memory_space<vmem>>, vector<8x128xf32>
    tpu.vector_store %arg11[%c0_148, %c0_149], %455 {strides = array<i32>} : memref<8x128xf32, #tpu.memory_space<vmem>>, vector<8x128xf32>,
    return
  }
}

</mosaic_0001>

<bundles_post_ra>
// kernel: tpu_custom_call.1
= control target key start
LH: loop header
LB: loop body
LE: loop exit
PB: predicated region body
PF: predicated region fallthrough
CT: control target
= control target key end

     0   :  { %16 = vsyncpa [#allocation5], 0  ;;  %s6319_s0 = inlined_call_operand.hbm [shape: bf16[64,128], index: 0, kind: input, shape index: {}]   ;;  %s6320_s1 = inlined_call_operand.hbm [shape: bf16[128,384], index: 1, kind: input, shape index: {}]   ;;  %s6321_s2 = inlined_call_operand.hbm [shape: bf16[128,384], index: 2, kind: input, shape index: {}]   ;;  %s6322_s3 = inlined_call_operand.hbm [shape: f32[1,384], index: 3, kind: input, shape index: {}]   ;;  %s6323_s4 = inlined_call_operand.vmem [shape: f32[1,128], index: 4, kind: input, shape index: {}]   ;;  %s6324_s5 = inlined_call_operand.hbm [shape: bf16[128,384], index: 5, kind: input, shape index: {}]   ;;  %s6325_s6 = inlined_call_operand.hbm [shape: bf16[128,384], index: 6, kind: input, shape index: {}]   ;;  %s6326_s7 = inlined_call_operand.vmem [shape: f32[1,384], index: 7, kind: input, shape index: {}]   ;;  %s6327_s8 = inlined_call_operand.vmem [shape: f32[1,128], index: 8, kind: input, shape index: {}]   ;;  %s6328_s9 = inlined_call_operand.hbm [shape: bf16[128,128], index: 9, kind: input, shape index: {}]   ;;  %s6329_s10 = inlined_call_operand.vmem [shape: f32[1,128], index: 10, kind: input, shape index: {}]   ;;  %s6330_s11 = inlined_call_operand.hbm [shape: f32[8,128], index: 11, kind: output, shape index: {}]  }
   0x1   :  { %17 = vsyncpa [#allocation8], 0 }
   0x2   :  { %18 = vsyncpa [#allocation11], 0 }
   0x3   :  { %19 = vsyncpa [#allocation14], 0  ;;  %s38_s19 = sshll.u32 %s6320_s1, 4  ;;  %s39_s19 = int_to_ptr.hbm [resolvable:$true] %s38_s19 }
   0x4   :  { %20 = vsyncpa [#allocation6], 0  ;;  %s5596_s20 = smov [#allocation7]   ;;  %s65_s24 = sshll.u32 %s6322_s3, 4  ;;  %s66_s24 = int_to_ptr.hbm [resolvable:$true] %s65_s24 }
   0x5   :  { %s40_s21 = sshll.u32 %s5596_s20, 4  ;;  %s5597_s25 = smov 192   ;;  %s41_s21 = int_to_ptr.vmem [resolvable:$true] %s40_s21 }
   0x6   :  { %s5598_s26 = smov 12   ;;  %s5599_s27 = smov [#allocation10]  }
   0x7   :  { %46 = dma.hbm_to_vmem [thread:$0]  %s39_s19, 3072, %s41_s21, [#allocation8], %s5597_s25, %s5597_s25, %s5598_s26  }
   0x8   :  { %s67_s28 = sshll.u32 %s5599_s27, 4  ;;  %s90_s30 = sshll.u32 %s6325_s6, 4  ;;  %s68_s28 = int_to_ptr.vmem [resolvable:$true] %s67_s28  ;;  %s91_s30 = int_to_ptr.hbm [resolvable:$true] %s90_s30 }
   0x9   :  { %70 = dma.hbm_to_vmem [thread:$0]  %s66_s24, 48, %s68_s28, [#allocation11]  }
   0xa   :  { %s25_s3 = sshll.u32 %s6319_s0, 4  ;;  %s5600_s14 = smov [#allocation13]   ;;  %s26_s3 = int_to_ptr.hbm [resolvable:$true] %s25_s3 }
   0xb   :  { %s92_s15 = sshll.u32 %s5600_s14, 4  ;;  %s5601_s16 = smov [#allocation4]   ;;  %s93_s15 = int_to_ptr.vmem [resolvable:$true] %s92_s15 }
   0xc   :  { %98 = dma.hbm_to_vmem [thread:$0]  %s91_s30, 3072, %s93_s15, [#allocation14], %s5597_s25, %s5597_s25, %s5598_s26  }
   0xd   :  { %s27_s17 = sshll.u32 %s5601_s16, 4  ;;  %s5602_s18 = smov 64   ;;  %s28_s17 = int_to_ptr.vmem [resolvable:$true] %s27_s17 }
   0xe   :  { %s5603_s6 = smov 4   ;;  %s51_s21 = sshll.u32 %s6321_s2, 4  ;;  %s52_s21 = int_to_ptr.hbm [resolvable:$true] %s51_s21 }
   0xf   :  { %33 = dma.hbm_to_vmem [thread:$0]  %s26_s3, 512, %s28_s17, [#allocation5], %s5602_s18, %s5602_s18, %s5603_s6  }
  0x10   :  { %s5604_s0 = smov [#allocation9]   ;;  %s77_s27 = sshll.u32 %s6324_s5, 4  ;;  %s78_s27 = int_to_ptr.hbm [resolvable:$true] %s77_s27 }
  0x11   :  { %s53_s22 = sshll.u32 %s5604_s0, 4  ;;  %s5605_s28 = smov [#allocation12]   ;;  %s54_s22 = int_to_ptr.vmem [resolvable:$true] %s53_s22 }
  0x12   :  { %59 = dma.hbm_to_vmem [thread:$0]  %s52_s21, 3072, %s54_s22, [#allocation8], %s5597_s25, %s5597_s25, %s5598_s26  }
  0x13   :  { %s79_s29 = sshll.u32 %s5605_s28, 4  ;;  %s107_s12 = sshll.u32 %s6328_s9, 4  ;;  %s80_s29 = int_to_ptr.vmem [resolvable:$true] %s79_s29  ;;  %s108_s12 = int_to_ptr.hbm [resolvable:$true] %s107_s12 }
  0x14   :  { %85 = dma.hbm_to_vmem [thread:$0]  %s78_s27, 3072, %s80_s29, [#allocation11], %s5597_s25, %s5597_s25, %s5598_s26  }
  0x15   :  { %s5606_s2 = smov [#allocation15]  }
  0x16   :  { %s109_s13 = sshll.u32 %s5606_s2, 4  ;;  %s110_s13 = int_to_ptr.vmem [resolvable:$true] %s109_s13 }
  0x17   :  { %115 = dma.hbm_to_vmem [thread:$0]  %s108_s12, 1024, %s110_s13, [#allocation14], %s5602_s18, %s5602_s18, %s5603_s6  }
  0x18   :  { %5586 = dma.done.wait [#allocation5], 512  }
  0x19   :  { %5587 = vsyncadd [#allocation5], 4294966784 }
  0x1a   :  { %5588 = dma.done.wait [#allocation8], 6144  }
  0x1b   :  { %5589 = vsyncadd [#allocation8], 4294961152 }
  0x1c   :  { %5590 = dma.done.wait [#allocation11], 3120  }
  0x1d   :  { %5591 = vsyncadd [#allocation11], 4294964176 }
  0x1e   :  { %5592 = dma.done.wait [#allocation14], 4096  }
  0x1f   :  { %5593 = vsyncadd [#allocation14], 4294963200  ;;  %v3885_v0 = vld [vmem:[#allocation7 + $0xa8] sm:$0xf]  ;;  %v4961_v1 = vld [vmem:[#allocation7 + $0xb0] sm:$0xf0] }
  0x20   :  { %v3981_v2 = vld [vmem:[#allocation9 + $0xa8] sm:$0xf]  ;;  %v3886_v3 = vor.u32 %v4961_v1, %v3885_v0  ;;  %v4985_v4 = vld [vmem:[#allocation9 + $0xb0] sm:$0xf0]  ;;  %v3873_v5 = vld [vmem:[#allocation7 + $0x90] sm:$0xf] }
  0x21   :  { %v4958_v6 = vld [vmem:[#allocation7 + $0x98] sm:$0xf0]  ;;  %v3982_v7 = vor.u32 %v4985_v4, %v3981_v2  ;;  %v3969_v8 = vld [vmem:[#allocation9 + $0x90] sm:$0xf]  ;;  %v3861_v12 = vld [vmem:[#allocation7 + $0x78] sm:$0xf] }
  0x22   :  { %v4982_v9 = vld [vmem:[#allocation9 + $0x98] sm:$0xf0]  ;;  %347 = vmatpush.bf16.msra.mxu0 %v3886_v3  ;;  %v3874_v10 = vor.u32 %v4958_v6, %v3873_v5  ;;  %v4955_v13 = vld [vmem:[#allocation7 + $0x80] sm:$0xf0]  ;;  %v3957_v14 = vld [vmem:[#allocation9 + $0x78] sm:$0xf] }
  0x23   :  { %622 = vmatpush.bf16.msra.mxu3 %v3982_v7  ;;  %v3970_v11 = vor.u32 %v4982_v9, %v3969_v8  ;;  %v4979_v15 = vld [vmem:[#allocation9 + $0x80] sm:$0xf0]  ;;  %v3862_v16 = vor.u32 %v4955_v13, %v3861_v12  ;;  %v3849_v18 = vld [vmem:[#allocation7 + $0x60] sm:$0xf]  ;;  %v4952_v19 = vld [vmem:[#allocation7 + $0x68] sm:$0xf0] }
  0x24   :  { %v3958_v17 = vor.u32 %v4979_v15, %v3957_v14  ;;  %v3945_v20 = vld [vmem:[#allocation9 + $0x60] sm:$0xf]  ;;  %v4976_v21 = vld [vmem:[#allocation9 + $0x68] sm:$0xf0]  ;;  %v3850_v22 = vor.u32 %v4952_v19, %v3849_v18  ;;  %v3837_v23 = vld [vmem:[#allocation7 + $0x48] sm:$0xf] }
  0x25   :  { %v3946_v24 = vor.u32 %v4976_v21, %v3945_v20  ;;  %v4949_v25 = vld [vmem:[#allocation7 + $0x50] sm:$0xf0]  ;;  %v4960_v26 = vld [vmem:[#allocation7 + $0xac] sm:$0xf]  ;;  %v3887_v27 = vld [vmem:[#allocation7 + $0xb4] sm:$0xf0] }
  0x26   :  { %348 = vmatpush.bf16.msra.mxu0 %v3874_v10  ;;  %v3933_v28 = vld [vmem:[#allocation9 + $0x48] sm:$0xf]  ;;  %v4973_v29 = vld [vmem:[#allocation9 + $0x50] sm:$0xf0]  ;;  %v3890_v30 = vor.u32 %v4960_v26, %v3887_v27  ;;  %v3875_v32 = vld [vmem:[#allocation7 + $0x9c] sm:$0xf0]  ;;  %v3838_v33 = vor.u32 %v4949_v25, %v3837_v23 }
  0x27   :  { %623 = vmatpush.bf16.msra.mxu3 %v3970_v11  ;;  %v4957_v31 = vld [vmem:[#allocation7 + $0x94] sm:$0xf]  ;;  %v3825_v34 = vld [vmem:[#allocation7 + $0x30] sm:$0xf]  ;;  %v3934_v36 = vor.u32 %v4973_v29, %v3933_v28  ;;  %v4946_v37 = vld [vmem:[#allocation7 + $0x38] sm:$0xf0] }
  0x28   :  { %376 = vmatpush.bf16.msra.mxu1 %v3890_v30  ;;  %v3878_v35 = vor.u32 %v4957_v31, %v3875_v32  ;;  %v4954_v38 = vld [vmem:[#allocation7 + $0x7c] sm:$0xf]  ;;  %v3863_v39 = vld [vmem:[#allocation7 + $0x84] sm:$0xf0]  ;;  %v3921_v40 = vld [vmem:[#allocation9 + $0x30] sm:$0xf]  ;;  %v3826_v42 = vor.u32 %v4946_v37, %v3825_v34 }
  0x29   :  { %v4970_v41 = vld [vmem:[#allocation9 + $0x38] sm:$0xf0]  ;;  %v3813_v43 = vld [vmem:[#allocation7 + $0x18] sm:$0xf]  ;;  %v4943_v44 = vld [vmem:[#allocation7 + $0x20] sm:$0xf0]  ;;  %v3866_v46 = vor.u32 %v4954_v38, %v3863_v39 }
  0x2a   :  { %349 = vmatpush.bf16.msra.mxu0 %v3862_v16  ;;  %v3909_v45 = vld [vmem:[#allocation9 + $0x18] sm:$0xf]  ;;  %v3922_v47 = vor.u32 %v4970_v41, %v3921_v40  ;;  %v4951_v48 = vld [vmem:[#allocation7 + $0x64] sm:$0xf]  ;;  %v3851_v49 = vld [vmem:[#allocation7 + $0x6c] sm:$0xf0]  ;;  %v3814_v56 = vor.u32 %v4943_v44, %v3813_v43 }
  0x2b   :  { %624 = vmatpush.bf16.msra.mxu3 %v3958_v17  ;;  %v4967_v50 = vld [vmem:[#allocation9 + $0x20] sm:$0xf0]  ;;  %v3893_v51 = vld [vmem:[#allocation7 + $0xb0] sm:$0xf]  ;;  %v4962_v52 = vld [vmem:[#allocation7 + $0xb8] sm:$0xf0]  ;;  %v3854_v58 = vor.u32 %v4951_v48, %v3851_v49 }
  0x2c   :  { %377 = vmatpush.bf16.msra.mxu1 %v3878_v35  ;;  %v3801_v53 = vld [vmem:[#allocation7] sm:$0xf]  ;;  %v4940_v54 = vld [vmem:[#allocation7 + $0x8] sm:$0xf0]  ;;  %v3894_v55 = vor.u32 %v4962_v52, %v3893_v51  ;;  %v3910_v59 = vor.u32 %v4967_v50, %v3909_v45  ;;  %v3839_v62 = vld [vmem:[#allocation7 + $0x54] sm:$0xf0] }
  0x2d   :  { %v3897_v57 = vld [vmem:[#allocation9] sm:$0xf]  ;;  %v4964_v60 = vld [vmem:[#allocation9 + $0x8] sm:$0xf0]  ;;  %v3989_v63 = vld [vmem:[#allocation9 + $0xb0] sm:$0xf]  ;;  %v3802_v5 = vor.u32 %v4940_v54, %v3801_v53 }
  0x2e   :  { %350 = vmatpush.bf16.msra.mxu0 %v3850_v22  ;;  %v4948_v61 = vld [vmem:[#allocation7 + $0x4c] sm:$0xf]  ;;  %405 = vmatpush.bf16.msra.mxu2 %v3894_v55  ;;  %v4986_v0 = vld [vmem:[#allocation9 + $0xb8] sm:$0xf0]  ;;  %v3881_v1 = vld [vmem:[#allocation7 + $0x98] sm:$0xf]  ;;  %v3898_v8 = vor.u32 %v4964_v60, %v3897_v57 }
  0x2f   :  { %625 = vmatpush.bf16.msra.mxu3 %v3946_v24  ;;  %v4984_v2 = vld [vmem:[#allocation9 + $0xac] sm:$0xf]  ;;  %v3983_v3 = vld [vmem:[#allocation9 + $0xb4] sm:$0xf0]  ;;  %v4959_v4 = vld [vmem:[#allocation7 + $0xa0] sm:$0xf0]  ;;  %v3842_v6 = vor.u32 %v4948_v61, %v3839_v62  ;;  %v3990_v9 = vor.u32 %v4986_v0, %v3989_v63 }
  0x30   :  { %378 = vmatpush.bf16.msra.mxu1 %v3866_v46  ;;  %v3882_v7 = vor.u32 %v4959_v4, %v3881_v1  ;;  %v3977_v10 = vld [vmem:[#allocation9 + $0x98] sm:$0xf]  ;;  %v4945_v11 = vld [vmem:[#allocation7 + $0x34] sm:$0xf]  ;;  %v3827_v12 = vld [vmem:[#allocation7 + $0x3c] sm:$0xf0]  ;;  %v3986_v13 = vor.u32 %v4984_v2, %v3983_v3 }
  0x31   :  { %v4983_v14 = vld [vmem:[#allocation9 + $0xa0] sm:$0xf0]  ;;  %v3869_v15 = vld [vmem:[#allocation7 + $0x80] sm:$0xf]  ;;  %v4956_v16 = vld [vmem:[#allocation7 + $0x88] sm:$0xf0]  ;;  %v3830_v21 = vor.u32 %v4945_v11, %v3827_v12 }
  0x32   :  { %351 = vmatpush.bf16.msra.mxu0 %v3838_v33  ;;  %406 = vmatpush.bf16.msra.mxu2 %v3882_v7  ;;  %v5702_v17 = vld [vmem:[#allocation4] sm:$0xff]  ;;  %v4981_v18 = vld [vmem:[#allocation9 + $0x94] sm:$0xf]  ;;  %v3870_v20 = vor.u32 %v4956_v16, %v3869_v15  ;;  %v3978_v22 = vor.u32 %v4983_v14, %v3977_v10  ;;  %v4942_v24 = vld [vmem:[#allocation7 + $0x1c] sm:$0xf]  ;;  %v5607_v34 = vmov 0  }
  0x33   :  { %626 = vmatpush.bf16.msra.mxu3 %v3934_v36  ;;  %v3971_v19 = vld [vmem:[#allocation9 + $0x9c] sm:$0xf0]  ;;  %v3815_v25 = vld [vmem:[#allocation7 + $0x24] sm:$0xf0]  ;;  %v4980_v27 = vld [vmem:[#allocation9 + $0x88] sm:$0xf0] }
  0x34   :  { %379 = vmatpush.bf16.msra.mxu1 %v3854_v58  ;;  %v3965_v23 = vld [vmem:[#allocation9 + $0x80] sm:$0xf]  ;;  %v3974_v26 = vor.u32 %v4981_v18, %v3971_v19  ;;  %v3857_v28 = vld [vmem:[#allocation7 + $0x68] sm:$0xf]  ;;  %v4953_v29 = vld [vmem:[#allocation7 + $0x70] sm:$0xf0]  ;;  %v3818_v35 = vor.u32 %v4942_v24, %v3815_v25 }
  0x35   :  { %v4978_v30 = vld [vmem:[#allocation9 + $0x7c] sm:$0xf]  ;;  %v3959_v31 = vld [vmem:[#allocation9 + $0x84] sm:$0xf0]  ;;  %v3858_v32 = vor.u32 %v4953_v29, %v3857_v28  ;;  %v3845_v33 = vld [vmem:[#allocation7 + $0x50] sm:$0xf]  ;;  %v3966_v37 = vor.u32 %v4980_v27, %v3965_v23 }
  0x36   :  { %352 = vmatpush.bf16.msra.mxu0 %v3826_v42  ;;  %407 = vmatpush.bf16.msra.mxu2 %v3870_v20  ;;  %v4950_v36 = vld [vmem:[#allocation7 + $0x58] sm:$0xf0]  ;;  %v4939_v38 = vld [vmem:[#allocation7 + $0x4] sm:$0xf]  ;;  %v3803_v39 = vld [vmem:[#allocation7 + $0xc] sm:$0xf0]  ;;  %v3962_v40 = vor.u32 %v4978_v30, %v3959_v31 }
  0x37   :  { %627 = vmatpush.bf16.msra.mxu3 %v3922_v47  ;;  %v4975_v41 = vld [vmem:[#allocation9 + $0x64] sm:$0xf]  ;;  %v3953_v42 = vld [vmem:[#allocation9 + $0x68] sm:$0xf]  ;;  %v4977_v43 = vld [vmem:[#allocation9 + $0x70] sm:$0xf0]  ;;  %v3846_v44 = vor.u32 %v4950_v36, %v3845_v33  ;;  %v3806_v48 = vor.u32 %v4939_v38, %v3803_v39 }
  0x38   :  { %380 = vmatpush.bf16.msra.mxu1 %v3842_v6  ;;  %v3947_v45 = vld [vmem:[#allocation9 + $0x6c] sm:$0xf0]  ;;  %v3833_v46 = vld [vmem:[#allocation7 + $0x38] sm:$0xf]  ;;  %v4947_v47 = vld [vmem:[#allocation7 + $0x40] sm:$0xf0]  ;;  %v3954_v49 = vor.u32 %v4977_v43, %v3953_v42 }
  0x39   :  { %v3950_v50 = vor.u32 %v4975_v41, %v3947_v45  ;;  %v4972_v51 = vld [vmem:[#allocation9 + $0x4c] sm:$0xf]  ;;  %v3941_v52 = vld [vmem:[#allocation9 + $0x50] sm:$0xf]  ;;  %v4974_v53 = vld [vmem:[#allocation9 + $0x58] sm:$0xf0]  ;;  %v3834_v54 = vor.u32 %v4947_v47, %v3833_v46 }
  0x3a   :  { %353 = vmatpush.bf16.msra.mxu0 %v3814_v56  ;;  %408 = vmatpush.bf16.msra.mxu2 %v3858_v32  ;;  %v3935_v55 = vld [vmem:[#allocation9 + $0x54] sm:$0xf0]  ;;  %v3821_v56 = vld [vmem:[#allocation7 + $0x20] sm:$0xf]  ;;  %v4944_v57 = vld [vmem:[#allocation7 + $0x28] sm:$0xf0]  ;;  %v3942_v58 = vor.u32 %v4974_v53, %v3941_v52 }
  0x3b   :  { %628 = vmatpush.bf16.msra.mxu3 %v3910_v59  ;;  %v3938_v59 = vor.u32 %v4972_v51, %v3935_v55  ;;  %v3929_v60 = vld [vmem:[#allocation9 + $0x38] sm:$0xf]  ;;  %v4971_v61 = vld [vmem:[#allocation9 + $0x40] sm:$0xf0]  ;;  %v3822_v62 = vor.u32 %v4944_v57, %v3821_v56  ;;  %v4936_v63 = vld [vmem:[#allocation4 + $0x8] sm:$0xff]  ;;  %s5608_s19 = smov [#allocation16]  }
  0x3c   :  { %381 = vmatpush.bf16.msra.mxu1 %v3830_v21  ;;  %v4969_v0 = vld [vmem:[#allocation9 + $0x34] sm:$0xf]  ;;  %v3923_v1 = vld [vmem:[#allocation9 + $0x3c] sm:$0xf0]  ;;  %v3930_v2 = vor.u32 %v4971_v61, %v3929_v60  ;;  %v4966_v4 = vld [vmem:[#allocation9 + $0x1c] sm:$0xf] }
  0x3d   :  { %v3926_v3 = vor.u32 %v4969_v0, %v3923_v1  ;;  %v4941_v6 = vld [vmem:[#allocation7 + $0x10] sm:$0xf0]  ;;  %v3911_v7 = vld [vmem:[#allocation9 + $0x24] sm:$0xf0]  ;;  %v4963_v15 = vld [vmem:[#allocation9 + $0x4] sm:$0xf] }
  0x3e   :  { %354 = vmatpush.bf16.msra.mxu0 %v3802_v5  ;;  %409 = vmatpush.bf16.msra.mxu2 %v3846_v44  ;;  %v3809_v5 = vld [vmem:[#allocation7 + $0x8] sm:$0xf]  ;;  %v3914_v12 = vor.u32 %v4966_v4, %v3911_v7  ;;  %v4965_v14 = vld [vmem:[#allocation9 + $0x10] sm:$0xf0]  ;;  %v3899_v16 = vld [vmem:[#allocation9 + $0xc] sm:$0xf0] }
  0x3f   :  { %629 = vmatpush.bf16.msra.mxu3 %v3898_v8  ;;  %v3917_v8 = vld [vmem:[#allocation9 + $0x20] sm:$0xf]  ;;  %v3810_v10 = vor.u32 %v4941_v6, %v3809_v5  ;;  %v3902_v19 = vor.u32 %v4963_v15, %v3899_v16  ;;  %v4937_v20 = vld [vmem:[#allocation4 + $0x10] sm:$0xff]  ;;  %v4938_v21 = vld [vmem:[#allocation4 + $0x18] sm:$0xff]  ;;  %s3768_s20 = sshll.u32 %s5608_s19, 4  ;;  %s3770_s22 = sshll.u32 %s6330_s11, 4  ;;  %s3769_s20 = int_to_ptr.vmem [resolvable:$true] %s3768_s20  ;;  %s3771_s22 = int_to_ptr.hbm [resolvable:$true] %s3770_s22 }
  0x40   :  { %382 = vmatpush.bf16.msra.mxu1 %v3818_v35  ;;  %v5008_v23 = vld [vmem:[#allocation9 + $0xac] sm:$0xf]  ;;  %v4081_v25 = vld [vmem:[#allocation9 + $0xb4] sm:$0xf0]  ;;  %v4067_v27 = vld [vmem:[#allocation9 + $0x90] sm:$0xf] }
  0x41   :  { %355 = vmatmul.bf16.vlgmr.msra.gmra.mxu0 %v5702_v17  ;;  %v5006_v28 = vld [vmem:[#allocation9 + $0x98] sm:$0xf0]  ;;  %v5005_v29 = vld [vmem:[#allocation9 + $0x94] sm:$0xf]  ;;  %v4069_v31 = vld [vmem:[#allocation9 + $0x9c] sm:$0xf0] }
  0x42   :  { %648 = vmatpush.bf16.msrb.mxu0 %v3990_v9  ;;  %630 = vmatmul.bf16.vlgmr.msra.gmra.mxu3 %v5607_v34  ;;  %v4968_v9 = vld [vmem:[#allocation9 + $0x28] sm:$0xf0]  ;;  %v4068_v30 = vor.u32 %v5006_v28, %v4067_v27  ;;  %v4072_v32 = vor.u32 %v5005_v29, %v4069_v31  ;;  %v5710_v36 = vld [vmem:[#allocation10] sm:$0x7]  ;;  %v4087_v44 = vld [vmem:[#allocation9 + $0xb0] sm:$0xf] }
  0x43   :  { %635 = vmatpush.bf16.msrb.mxu3 %v3986_v13  ;;  %410 = vmatpush.bf16.msra.mxu2 %v3834_v54  ;;  %v3918_v11 = vor.u32 %v4968_v9, %v3917_v8  ;;  %v3905_v13 = vld [vmem:[#allocation9 + $0x8] sm:$0xf]  ;;  %v5715_v38 = vperm.slane %v5710_v36, 0  ;;  %v5010_v45 = vld [vmem:[#allocation9 + $0xb8] sm:$0xf0]  ;;  %v5724_v52 = vperm.slane %v5710_v36, 1 }
  0x44   :  { %383 = vmatpush.bf16.msra.mxu1 %v3806_v48  ;;  %v3906_v18 = vor.u32 %v4965_v14, %v3905_v13  ;;  %v4088_v46 = vor.u32 %v5010_v45, %v4087_v44  ;;  %v4075_v48 = vld [vmem:[#allocation9 + $0x98] sm:$0xf]  ;;  %v5003_v54 = vld [vmem:[#allocation9 + $0x80] sm:$0xf0]  ;;  %v5002_v55 = vld [vmem:[#allocation9 + $0x7c] sm:$0xf] }
  0x45   :  { %v4055_v53 = vld [vmem:[#allocation9 + $0x78] sm:$0xf]  ;;  %v4057_v57 = vld [vmem:[#allocation9 + $0x84] sm:$0xf0]  ;;  %v4043_v61 = vld [vmem:[#allocation9 + $0x60] sm:$0xf] }
  0x46   :  { %649 = vmatpush.bf16.msrb.mxu0 %v3978_v22  ;;  %v5009_v22 = vld [vmem:[#allocation9 + $0xb0] sm:$0xf0]  ;;  %v4056_v56 = vor.u32 %v5003_v54, %v4055_v53  ;;  %v4060_v60 = vor.u32 %v5002_v55, %v4057_v57  ;;  %v4031_v6 = vld [vmem:[#allocation9 + $0x48] sm:$0xf]  ;;  %v4996_v9 = vld [vmem:[#allocation9 + $0x4c] sm:$0xf] }
  0x47   :  { %636 = vmatpush.bf16.msrb.mxu3 %v3974_v26  ;;  %384 = vmatmul.bf16.vlgmr.msra.gmra.mxu1 %v5702_v17  ;;  %v4084_v26 = vor.u32 %v5008_v23, %v4081_v25  ;;  %v4997_v7 = vld [vmem:[#allocation9 + $0x50] sm:$0xf0]  ;;  %v4051_v13 = vld [vmem:[#allocation9 + $0x68] sm:$0xf]  ;;  %v4998_v27 = vld [vmem:[#allocation9 + $0x58] sm:$0xf0] }
  0x48   :  { %411 = vmatpush.bf16.msra.mxu2 %v3822_v62  ;;  %v5000_v62 = vld [vmem:[#allocation9 + $0x68] sm:$0xf0]  ;;  %v4032_v15 = vor.u32 %v4997_v7, %v4031_v6  ;;  %v5001_v16 = vld [vmem:[#allocation9 + $0x70] sm:$0xf0]  ;;  %v4987_v55 = vld [vmem:[#allocation9 + $0x4] sm:$0xf] }
  0x49   :  { %v4993_v23 = vld [vmem:[#allocation9 + $0x34] sm:$0xf]  ;;  %v5744_v6 = vperm.slane %v5710_v36, 2 }
  0x4a   :  { %650 = vmatpush.bf16.msrb.mxu0 %v3966_v37 }
  0x4b   :  { %637 = vmatpush.bf16.msrb.mxu3 %v3962_v40 }
  0x4c   :  { %412 = vmatpush.bf16.msra.mxu2 %v3810_v10  ;;  %v4033_v10 = vld [vmem:[#allocation9 + $0x54] sm:$0xf0] }
  0x4e   :  { %651 = vmatpush.bf16.msrb.mxu0 %v3954_v49  ;;  %v5007_v49 = vld [vmem:[#allocation9 + $0xa0] sm:$0xf0] }
  0x4f   :  { %638 = vmatpush.bf16.msrb.mxu3 %v3950_v50  ;;  %413 = vmatmul.bf16.vlgmr.msra.gmra.mxu2 %v5702_v17  ;;  %v4079_v17 = vld [vmem:[#allocation9 + $0xa8] sm:$0xf]  ;;  %v4076_v51 = vor.u32 %v5007_v49, %v4075_v48  ;;  %v3995_v49 = vld [vmem:[#allocation9] sm:$0xf] }
  0x50   :  { %v4080_v24 = vor.u32 %v5009_v22, %v4079_v17  ;;  %890 = vmatpush.bf16.msrb.mxu2 %v4084_v26  ;;  %v4052_v17 = vor.u32 %v5001_v16, %v4051_v13  ;;  %v4039_v26 = vld [vmem:[#allocation9 + $0x50] sm:$0xf] }
  0x51   :  { %360 = vmatmul.bf16.gmra.mxu0 %v4936_v63  ;;  %v4040_v29 = vor.u32 %v4998_v27, %v4039_v26 }
  0x52   :  { %652 = vmatpush.bf16.msrb.mxu0 %v3942_v58  ;;  %877 = vmatpush.bf16.msrb.mxu1 %v4080_v24  ;;  %v4063_v58 = vld [vmem:[#allocation9 + $0x80] sm:$0xf] }
  0x53   :  { %639 = vmatpush.bf16.msrb.mxu3 %v3938_v59  ;;  %v5004_v59 = vld [vmem:[#allocation9 + $0x88] sm:$0xf0]  ;;  %v4021_v24 = vld [vmem:[#allocation9 + $0x3c] sm:$0xf0] }
  0x54   :  { %891 = vmatpush.bf16.msrb.mxu2 %v4072_v32  ;;  %v4064_v0 = vor.u32 %v5004_v59, %v4063_v58  ;;  %v4024_v31 = vor.u32 %v4993_v23, %v4021_v24  ;;  %v4007_v32 = vld [vmem:[#allocation9 + $0x18] sm:$0xf] }
  0x56   :  { %653 = vmatpush.bf16.msrb.mxu0 %v3930_v2  ;;  %878 = vmatpush.bf16.msrb.mxu1 %v4068_v30  ;;  %v4044_v2 = vor.u32 %v5000_v62, %v4043_v61  ;;  %v4989_v61 = vld [vmem:[#allocation9 + $0x10] sm:$0xf0] }
  0x57   :  { %640 = vmatpush.bf16.msrb.mxu3 %v3926_v3  ;;  %389 = vmatmul.bf16.gmra.mxu1 %v4936_v63  ;;  %v4045_v3 = vld [vmem:[#allocation9 + $0x6c] sm:$0xf0] }
  0x58   :  { %892 = vmatpush.bf16.msrb.mxu2 %v4060_v60  ;;  %v4003_v60 = vld [vmem:[#allocation9 + $0x8] sm:$0xf] }
  0x5a   :  { %654 = vmatpush.bf16.msrb.mxu0 %v3918_v11  ;;  %879 = vmatpush.bf16.msrb.mxu1 %v4056_v56  ;;  %v3997_v56 = vld [vmem:[#allocation9 + $0xc] sm:$0xf0] }
  0x5b   :  { %641 = vmatpush.bf16.msrb.mxu3 %v3914_v12 }
  0x5e   :  { %655 = vmatpush.bf16.msrb.mxu0 %v3906_v18  ;;  %880 = vmatpush.bf16.msrb.mxu1 %v4044_v2  ;;  %v4036_v18 = vor.u32 %v4996_v9, %v4033_v10 }
  0x5f   :  { %642 = vmatpush.bf16.msrb.mxu3 %v3902_v19  ;;  %418 = vmatmul.bf16.gmra.mxu2 %v4936_v63  ;;  %v4999_v63 = vld [vmem:[#allocation9 + $0x64] sm:$0xf] }
  0x60   :  { %v4048_v5 = vor.u32 %v4999_v63, %v4045_v3 }
  0x61   :  { %365 = vmatmul.bf16.gmra.mxu0 %v4937_v20 }
  0x62   :  { %643 = vmatmul.bf16.vlgmr.msrb.gmra.mxu3 %v5607_v34  ;;  %893 = vmatpush.bf16.msrb.mxu2 %v4048_v5 }
  0x63   :  { %903 = vmatpush.bf16.msra.mxu3 %v4088_v46  ;;  %881 = vmatpush.bf16.msrb.mxu1 %v4032_v15  ;;  %v4015_v46 = vld [vmem:[#allocation9 + $0x20] sm:$0xf] }
  0x66   :  { %894 = vmatpush.bf16.msrb.mxu2 %v4036_v18 }
  0x67   :  { %394 = vmatmul.bf16.gmra.mxu1 %v4937_v20  ;;  %904 = vmatpush.bf16.msra.mxu3 %v4076_v51  ;;  %v4988_v51 = vld [vmem:[#allocation9 + $0x8] sm:$0xf0] }
  0x68   :  { %v3996_v59 = vor.u32 %v4988_v51, %v3995_v49 }
  0x6a   :  { %895 = vmatpush.bf16.msrb.mxu2 %v4024_v31 }
  0x6b   :  { %905 = vmatpush.bf16.msra.mxu3 %v4064_v0  ;;  %v4000_v0 = vor.u32 %v4987_v55, %v3997_v56 }
  0x6f   :  { %423 = vmatmul.bf16.gmra.mxu2 %v4937_v20  ;;  %v4019_v20 = vld [vmem:[#allocation9 + $0x30] sm:$0xf]  ;;  %906 = vmatpush.bf16.msra.mxu3 %v4052_v17 }
  0x71   :  { %370 = vmatmul.bf16.gmra.mxu0 %v4938_v21 }
  0x73   :  { %907 = vmatpush.bf16.msra.mxu3 %v4040_v29 }
  0x77   :  { %399 = vmatmul.bf16.gmra.mxu1 %v4938_v21 }
  0x7f   :  { %428 = vmatmul.bf16.gmra.mxu2 %v4938_v21  ;;  %v4994_v21 = vld [vmem:[#allocation9 + $0x38] sm:$0xf0] }
  0x80   :  { %v4020_v28 = vor.u32 %v4994_v21, %v4019_v20  ;;  %v5757_v20 = vld [vmem:[%s6323_s4] ss:$0 sm:$0xff] }
  0x81   :  { %656 = vmatmul.bf16.vlgmr.msrb.gmra.mxu0 %v5607_v34 }
  0x82   :  { %882 = vmatpush.bf16.msrb.mxu1 %v4020_v28 }
  0xbe   :  { %v356_v33 = vpop.f32.mrf.mxu0 }
  0xbf   :  { %v357_v39 = vadd.f32 %v356_v33, %v5715_v38  ;;  %v4991_v33 = vld [vmem:[#allocation9 + $0x20] sm:$0xf0] }
  0xc0   :  { %v4008_v44 = vor.u32 %v4991_v33, %v4007_v32 }
  0xc2   :  { %883 = vmatpush.bf16.msrb.mxu1 %v4008_v44 }
  0xc4   :  { %v385_v1 = vpop.f32.mrf.mxu1 }
  0xc5   :  { %v631_v35 = vpop.f32.mrf.mxu3  ;;  %v386_v12 = vadd.f32 %v385_v1, %v5724_v52 }
  0xc6   :  { %v5712_v37 = vpop.f32.mrf.mxu0  ;;  %v661_v42 = vadd.f32 %v631_v35, %v357_v39  ;;  %v4990_v39 = vld [vmem:[#allocation9 + $0x1c] sm:$0xf]  ;;  %884 = vmatpush.bf16.msrb.mxu1 %v3996_v59 }
  0xc8   :  { %v3991_v47 = vmul.f32 -1.442695, %v661_v42  ;;  %v4995_v42 = vld [vmem:[#allocation9 + $0x40] sm:$0xf0] }
  0xca   :  { %5231 = vpow2.f32 %v3991_v47  ;;  %v4992_v47 = vld [vmem:[#allocation9 + $0x28] sm:$0xf0] }
  0xcb   :  { %v4016_v58 = vor.u32 %v4992_v47, %v4015_v46 }
  0xcd   :  { %v633_v40 = vpop.f32.mrf.mxu3 }
  0xce   :  { %v361_v41 = vpop.f32.mrf.mxu0  ;;  %v4009_v40 = vld [vmem:[#allocation9 + $0x24] sm:$0xf0] }
  0xcf   :  { %v5719_v43 = vadd.f32 %v361_v41, %v5715_v38  ;;  %v4027_v41 = vld [vmem:[#allocation9 + $0x38] sm:$0xf]  ;;  %v4012_v48 = vor.u32 %v4990_v39, %v4009_v40 }
  0xd0   :  { %v5232_v4 = vpop.eup %5231  ;;  %v4028_v45 = vor.u32 %v4995_v42, %v4027_v41 }
  0xd1   :  { %v5730_v14 = vadd.f32 1.0, %v5232_v4  ;;  %896 = vmatpush.bf16.msrb.mxu2 %v4012_v48  ;;  %v4004_v4 = vor.u32 %v4989_v61, %v4003_v60  ;;  %v4177_v61 = vld [vmem:[#allocation9 + $0xa8] sm:$0xf] }
  0xd2   :  { %v5732_v19 = vpop.f32.mrf.mxu2  ;;  %908 = vmatpush.bf16.msra.mxu3 %v4028_v45 }
  0xd3   :  { %5233 = vrcp.f32 %v5730_v14  ;;  %v682_v18 = vand.u32 2147483648, %v5730_v14  ;;  %vm676_vm1 = vweird.f32 %v5730_v14  ;;  %v680_v36 = vand.u32 2147483647, %v5730_v14 }
  0xd5   :  { %897 = vmatpush.bf16.msrb.mxu2 %v4000_v0  ;;  %v683_v24 = vor.u32 1.1754944e-38, %v682_v18  ;;  %vm681_vm3 = vcmp.eq.f32.partialorder %v680_v36, 8.507059e+37  ;;  %v4173_v18 = vld [vmem:[#allocation9 + $0x98] sm:$0xf]  ;;  %v5031_v36 = vld [vmem:[#allocation9 + $0xa0] sm:$0xf0] }
  0xd6   :  { %v5721_v50 = vpop.f32.mrf.mxu0  ;;  %909 = vmatpush.bf16.msra.mxu3 %v4016_v58 }
  0xd9   :  { %v5234_v53 = vpop.eup %5233 }
  0xda   :  { %v5737_v57 = vpop.f32.mrf.mxu2  ;;  %v672_v63 = vmul.f32 %v5234_v53, %v5730_v14  ;;  %910 = vmatpush.bf16.msra.mxu3 %v4004_v4  ;;  %vm677_vm0 = vweird.f32 %v5234_v53  ;;  %v5034_v4 = vld [vmem:[#allocation9 + $0xb8] sm:$0xf0] }
  0xdb   :  { %vm678_vm2 = vmor %vm676_vm1, %vm677_vm0 }
  0xdc   :  { %v673_v5 = vsub.f32 1.0, %v672_v63  ;;  %v5032_v63 = vld [vmem:[#allocation9 + $0xac] sm:$0xf] }
  0xde   :  { %v366_v8 = vpop.f32.mrf.mxu0  ;;  %v674_v9 = vmul.f32 %v5234_v53, %v673_v5 }
  0xdf   :  { %v5727_v11 = vadd.f32 %v366_v8, %v5715_v38 }
  0xe0   :  { %v675_v16 = vadd.f32 %v5234_v53, %v674_v9  ;;  %v4165_v9 = vld [vmem:[#allocation9 + $0x90] sm:$0xf] }
  0xe2   :  { %v419_v7 = vpop.f32.mrf.mxu2 }
  0xe3   :  { %v5747_v8 = vadd.f32 %v419_v7, %v5744_v6 }
  0xe5   :  { %v644_v22 = vpop.f32.mrf.mxu3 }
  0xe6   :  { %v662_v25 = vadd.f32 %v644_v22, %v386_v12  ;;  %v5735_v35 = vpop.f32.mrf.mxu0  ;;  %v679_v22 = vsel %vm678_vm2, %v5234_v53, %v675_v16  ;;  %v4167_v16 = vld [vmem:[#allocation9 + $0x9c] sm:$0xf0] }
  0xe7   :  { %v684_v14 = vsel %vm681_vm3, %v683_v24, %v679_v22  ;;  %v4174_v22 = vor.u32 %v5031_v36, %v4173_v18  ;;  %v4153_v24 = vld [vmem:[#allocation9 + $0x78] sm:$0xf]  ;;  %v5017_v18 = vld [vmem:[#allocation9 + $0x34] sm:$0xf]  ;;  %v4119_v36 = vld [vmem:[#allocation9 + $0x3c] sm:$0xf0] }
  0xe8   :  { %v3992_v30 = vmul.f32 -1.442695, %v662_v25  ;;  %v415_v25 = vadd.f32 %v5732_v19, %v5744_v6 }
  0xea   :  { %5235 = vpow2.f32 %v3992_v30  ;;  %v5759_v21 = vpop.f32.mrf.mxu2 }
  0xed   :  { %v646_v54 = vpop.f32.mrf.mxu3 }
  0xee   :  { %v371_v2 = vpop.f32.mrf.mxu0  ;;  %v5776_v54 = vpop.f32.mrf.mxu1 }
  0xef   :  { %v5741_v3 = vadd.f32 %v371_v2, %v5715_v38  ;;  %v4185_v2 = vld [vmem:[#allocation9 + $0xb0] sm:$0xf] }
  0xf0   :  { %v5236_v62 = vpop.eup %5235  ;;  %v4186_v7 = vor.u32 %v5034_v4, %v4185_v2  ;;  %v4131_v4 = vld [vmem:[#allocation9 + $0x54] sm:$0xf0] }
  0xf1   :  { %v670_v1 = vadd.f32 1.0, %v5236_v62  ;;  %v5033_v62 = vld [vmem:[#allocation9 + $0xb0] sm:$0xf0] }
  0xf2   :  { %v424_v32 = vpop.f32.mrf.mxu2  ;;  %v4178_v0 = vor.u32 %v5033_v62, %v4177_v61  ;;  %1155 = vmatpush.bf16.msra.mxu2 %v4186_v7  ;;  %v5022_v7 = vld [vmem:[#allocation9 + $0x58] sm:$0xf0] }
  0xf3   :  { %5237 = vrcp.f32 %v670_v1  ;;  %vm691_vm4 = vweird.f32 %v670_v1  ;;  %v697_v28 = vand.u32 2147483648, %v670_v1  ;;  %v695_v30 = vand.u32 2147483647, %v670_v1 }
  0xf4   :  { %v5765_v39 = vadd.f32 %v424_v32, %v5744_v6  ;;  %1129 = vmatpush.bf16.msra.mxu0 %v4178_v0  ;;  %v4141_v32 = vld [vmem:[#allocation9 + $0x60] sm:$0xf]  ;;  %v5021_v0 = vld [vmem:[#allocation9 + $0x50] sm:$0xf0] }
  0xf5   :  { %v698_v40 = vor.u32 1.1754944e-38, %v697_v28  ;;  %vm696_vm7 = vcmp.eq.f32.partialorder %v695_v30, 8.507059e+37  ;;  %v4161_v28 = vld [vmem:[#allocation9 + $0x80] sm:$0xf] }
  0xf6   :  { %v5749_v12 = vpop.f32.mrf.mxu0  ;;  %v5778_v55 = vpop.f32.mrf.mxu1  ;;  %1156 = vmatpush.bf16.msra.mxu2 %v4174_v22  ;;  %v388_v22 = vadd.f32 %v5776_v54, %v5724_v52 }
  0xf9   :  { %v5238_v10 = vpop.eup %5237 }
  0xfa   :  { %v687_v13 = vmul.f32 %v5238_v10, %v670_v1  ;;  %vm692_vm5 = vweird.f32 %v5238_v10  ;;  %v5767_v45 = vpop.f32.mrf.mxu2  ;;  %v4179_v1 = vld [vmem:[#allocation9 + $0xb4] sm:$0xf0] }
  0xfb   :  { %vm693_vm6 = vmor %vm691_vm4, %vm692_vm5  ;;  %v4182_v5 = vor.u32 %v5032_v63, %v4179_v1  ;;  %v4129_v63 = vld [vmem:[#allocation9 + $0x48] sm:$0xf]  ;;  %v5020_v1 = vld [vmem:[#allocation9 + $0x4c] sm:$0xf] }
  0xfc   :  { %v688_v15 = vsub.f32 1.0, %v687_v13  ;;  %v5029_v13 = vld [vmem:[#allocation9 + $0x94] sm:$0xf]  ;;  %v4130_v2 = vor.u32 %v5021_v0, %v4129_v63 }
  0xfd   :  { %1142 = vmatpush.bf16.msra.mxu1 %v4182_v5  ;;  %v4137_v5 = vld [vmem:[#allocation9 + $0x50] sm:$0xf]  ;;  %v5013_v63 = vld [vmem:[#allocation9 + $0x10] sm:$0xf0] }
  0xfe   :  { %v689_v17 = vmul.f32 %v5238_v10, %v688_v15  ;;  %v657_v23 = vpop.f32.mrf.mxu0  ;;  %v5780_v56 = vpop.f32.mrf.mxu1 }
  0xff   :  { %v704_v26 = vadd.f32 %v5757_v20, %v657_v23 }
 0x100   :  { %v690_v27 = vadd.f32 %v5238_v10, %v689_v17  ;;  %v4170_v17 = vor.u32 %v5029_v13, %v4167_v16  ;;  %v4138_v13 = vor.u32 %v5022_v7, %v4137_v5  ;;  %v5018_v16 = vld [vmem:[#allocation9 + $0x38] sm:$0xf0] }
 0x101   :  { %v705_v29 = vmul.f32 %v704_v26, %v684_v14  ;;  %v5026_v26 = vld [vmem:[#allocation9 + $0x7c] sm:$0xf] }
 0x102   :  { %v694_v33 = vsel %vm693_vm6, %v5238_v10, %v690_v27  ;;  %v429_v51 = vpop.f32.mrf.mxu2  ;;  %v5030_v10 = vld [vmem:[#allocation9 + $0x98] sm:$0xf0]  ;;  %1143 = vmatpush.bf16.msra.mxu1 %v4170_v17  ;;  %v4155_v27 = vld [vmem:[#allocation9 + $0x84] sm:$0xf0]  ;;  %v4125_v17 = vld [vmem:[#allocation9 + $0x38] sm:$0xf] }
 0x103   :  { %v706_v31 = vadd.f32 %v705_v29, %v415_v25  ;;  %v699_v41 = vsel %vm696_vm7, %v698_v40, %v694_v33  ;;  %v5774_v53 = vadd.f32 %v429_v51, %v5744_v6  ;;  %v4166_v15 = vor.u32 %v5030_v10, %v4165_v9  ;;  %v5027_v25 = vld [vmem:[#allocation9 + $0x80] sm:$0xf0]  ;;  %v5028_v29 = vld [vmem:[#allocation9 + $0x88] sm:$0xf0] }
 0x104   :  { %v708_v42 = vsub.f32 1.0, %v699_v41  ;;  %v710_v47 = vmul.f32 0.0, %v699_v41  ;;  %v4154_v14 = vor.u32 %v5027_v25, %v4153_v24  ;;  %v4158_v30 = vor.u32 %v5026_v26, %v4155_v27  ;;  %v5024_v33 = vld [vmem:[#allocation9 + $0x68] sm:$0xf0]  ;;  %v5023_v40 = vld [vmem:[#allocation9 + $0x64] sm:$0xf] }
 0x105   :  { %5239 = vtanh.f32 %v706_v31  ;;  %1130 = vmatpush.bf16.msra.mxu0 %v4166_v15  ;;  %v4162_v31 = vor.u32 %v5028_v29, %v4161_v28  ;;  %v4142_v41 = vor.u32 %v5024_v33, %v4141_v32  ;;  %v4134_v10 = vor.u32 %v5020_v1, %v4131_v4  ;;  %v4117_v15 = vld [vmem:[#allocation9 + $0x30] sm:$0xf]  ;;  %v5019_v25 = vld [vmem:[#allocation9 + $0x40] sm:$0xf0]  ;;  %v4105_v26 = vld [vmem:[#allocation9 + $0x18] sm:$0xf] }
 0x106   :  { %v659_v19 = vpop.f32.mrf.mxu0  ;;  %v5782_v58 = vpop.f32.mrf.mxu1  ;;  %1144 = vmatpush.bf16.msra.mxu1 %v4158_v30  ;;  %v4122_v24 = vor.u32 %v5017_v18, %v4119_v36  ;;  %v4126_v28 = vor.u32 %v5019_v25, %v4125_v17  ;;  %v5014_v29 = vld [vmem:[#allocation9 + $0x1c] sm:$0xf]  ;;  %v4107_v30 = vld [vmem:[#allocation9 + $0x24] sm:$0xf0] }
 0x107   :  { %1157 = vmatpush.bf16.msra.mxu2 %v4162_v31  ;;  %v4113_v31 = vld [vmem:[#allocation9 + $0x20] sm:$0xf] }
 0x109   :  { %1131 = vmatpush.bf16.msra.mxu0 %v4154_v14  ;;  %v5015_v14 = vld [vmem:[#allocation9 + $0x20] sm:$0xf0] }
 0x10a   :  { %v5790_v19 = vpop.f32.mrf.mxu2 }
 0x10b   :  { %v5240_v44 = vpop.eup %5239 }
 0x10c   :  { %v709_v46 = vmul.f32 %v5240_v44, %v708_v42  ;;  %v4143_v42 = vld [vmem:[#allocation9 + $0x6c] sm:$0xf0]  ;;  %v4149_v44 = vld [vmem:[#allocation9 + $0x68] sm:$0xf] }
 0x10d   :  { %1132 = vmatpush.bf16.msra.mxu0 %v4142_v41 }
 0x10e   :  { %v5769_v48 = vadd.f32 %v710_v47, %v709_v46  ;;  %v5784_v59 = vpop.f32.mrf.mxu1  ;;  %v5025_v46 = vld [vmem:[#allocation9 + $0x70] sm:$0xf0]  ;;  %v359_v47 = vadd.f32 %v5712_v37, %v5715_v38  ;;  %v4118_v37 = vor.u32 %v5018_v16, %v4117_v15 }
 0x10f   :  { %v4150_v51 = vor.u32 %v5025_v46, %v4149_v44  ;;  %v4093_v44 = vld [vmem:[#allocation9] sm:$0xf]  ;;  %v4110_v46 = vor.u32 %v5014_v29, %v4107_v30  ;;  %v417_v29 = vadd.f32 %v5737_v57, %v5744_v6 }
 0x110   :  { %v712_v49 = vpack.c.bf16 %v5769_v48, %v5769_v48 }
 0x111   :  { %1158 = vmatpush.bf16.msra.mxu2 %v4150_v51  ;;  %1133 = vmatpush.bf16.msra.mxu0 %v4130_v2  ;;  %v5011_v51 = vld [vmem:[#allocation9 + $0x4] sm:$0xf] }
 0x112   :  { %713 = vst [vmem:[#allocation2] sm:$0xf] %v712_v49  ;;  %885 = vmatmul.bf16.vlgmr.msrb.gmra.mxu1 %v712_v49  ;;  %898 = vmatmul.bf16.vlgmr.msrb.gmra.mxu2 %v712_v49 }
 0x113   :  { %911 = vmatmul.bf16.vlgmr.msra.gmra.mxu3 %v712_v49  ;;  %v4146_v49 = vor.u32 %v5023_v40, %v4143_v42  ;;  %v5016_v40 = vld [vmem:[#allocation9 + $0x28] sm:$0xf0]  ;;  %v4106_v42 = vor.u32 %v5015_v14, %v4105_v26 }
 0x115   :  { %1145 = vmatpush.bf16.msra.mxu1 %v4146_v49  ;;  %1159 = vmatpush.bf16.msra.mxu2 %v4138_v13  ;;  %v5012_v49 = vld [vmem:[#allocation9 + $0x8] sm:$0xf0] }
 0x116   :  { %v5786_v60 = vpop.f32.mrf.mxu1  ;;  %1134 = vmatpush.bf16.msra.mxu0 %v4118_v37  ;;  %v4094_v2 = vor.u32 %v5012_v49, %v4093_v44 }
 0x119   :  { %1146 = vmatpush.bf16.msra.mxu1 %v4134_v10  ;;  %1160 = vmatpush.bf16.msra.mxu2 %v4126_v28 }
 0x11a   :  { %1135 = vmatpush.bf16.msra.mxu0 %v4106_v42 }
 0x11d   :  { %1147 = vmatpush.bf16.msra.mxu1 %v4122_v24 }
 0x11e   :  { %v5788_v23 = vpop.f32.mrf.mxu1  ;;  %1136 = vmatpush.bf16.msra.mxu0 %v4094_v2 }
 0x121   :  { %1148 = vmatpush.bf16.msra.mxu1 %v4110_v46 }
 0x18f   :  { %v886_v61 = vpop.f32.mrf.mxu1 }
 0x190   :  { %v916_v62 = vadd.f32 %v886_v61, %v359_v47  ;;  %v4114_v47 = vor.u32 %v5016_v40, %v4113_v31  ;;  %v4095_v61 = vld [vmem:[#allocation9 + $0xc] sm:$0xf0] }
 0x191   :  { %v4098_v4 = vor.u32 %v5011_v51, %v4095_v61 }
 0x192   :  { %v4089_v9 = vmul.f32 -1.442695, %v916_v62  ;;  %v4101_v62 = vld [vmem:[#allocation9 + $0x8] sm:$0xf]  ;;  %1161 = vmatpush.bf16.msra.mxu2 %v4114_v47 }
 0x193   :  { %v4102_v5 = vor.u32 %v5013_v63, %v4101_v62  ;;  %1149 = vmatpush.bf16.msra.mxu1 %v4098_v4  ;;  %v4275_v63 = vld [vmem:[#allocation9 + $0xa8] sm:$0xf]  ;;  %v4277_v4 = vld [vmem:[#allocation9 + $0xb4] sm:$0xf0] }
 0x194   :  { %5241 = vpow2.f32 %v4089_v9 }
 0x195   :  { %v899_v27 = vpop.f32.mrf.mxu2 }
 0x196   :  { %v917_v32 = vadd.f32 %v899_v27, %v388_v22  ;;  %v912_v33 = vpop.f32.mrf.mxu3  ;;  %1162 = vmatpush.bf16.msra.mxu2 %v4102_v5  ;;  %v4283_v5 = vld [vmem:[#allocation9 + $0xb0] sm:$0xf] }
 0x197   :  { %v888_v41 = vpop.f32.mrf.mxu1  ;;  %v956_v28 = vadd.f32 %v5757_v20, %v912_v33 }
 0x198   :  { %v4090_v54 = vmul.f32 -1.442695, %v917_v32 }
 0x19a   :  { %v5242_v0 = vpop.eup %5241  ;;  %5243 = vpow2.f32 %v4090_v54 }
 0x19b   :  { %v924_v1 = vadd.f32 1.0, %v5242_v0  ;;  %v5057_v0 = vld [vmem:[#allocation9 + $0xb0] sm:$0xf0] }
 0x19c   :  { %v4276_v2 = vor.u32 %v5057_v0, %v4275_v63  ;;  %v4227_v0 = vld [vmem:[#allocation9 + $0x48] sm:$0xf] }
 0x19d   :  { %5245 = vrcp.f32 %v924_v1  ;;  %v901_v7 = vpop.f32.mrf.mxu2  ;;  %v937_v18 = vand.u32 2147483648, %v924_v1  ;;  %v935_v17 = vand.u32 2147483647, %v924_v1  ;;  %vm931_vm9 = vweird.f32 %v924_v1 }
 0x19e   :  { %v914_v9 = vpop.f32.mrf.mxu3  ;;  %v5058_v7 = vld [vmem:[#allocation9 + $0xb8] sm:$0xf0]  ;;  %1381 = vmatpush.bf16.msrb.mxu3 %v4276_v2  ;;  %v5044_v2 = vld [vmem:[#allocation9 + $0x4c] sm:$0xf] }
 0x19f   :  { %v938_v26 = vor.u32 1.1754944e-38, %v937_v18  ;;  %vm936_vm11 = vcmp.eq.f32.partialorder %v935_v17, 8.507059e+37  ;;  %v4271_v18 = vld [vmem:[#allocation9 + $0x98] sm:$0xf] }
 0x1a0   :  { %v5244_v10 = vpop.eup %5243 }
 0x1a1   :  { %v925_v13 = vadd.f32 1.0, %v5244_v10  ;;  %v4284_v10 = vor.u32 %v5058_v7, %v4283_v5  ;;  %v4229_v5 = vld [vmem:[#allocation9 + $0x54] sm:$0xf0]  ;;  %v4235_v7 = vld [vmem:[#allocation9 + $0x50] sm:$0xf] }
 0x1a3   :  { %v5246_v15 = vpop.eup %5245  ;;  %5247 = vrcp.f32 %v925_v13  ;;  %v952_v32 = vand.u32 2147483648, %v925_v13  ;;  %v950_v41 = vand.u32 2147483647, %v925_v13  ;;  %vm946_vm13 = vweird.f32 %v925_v13  ;;  %1407 = vmatpush.bf16.msrb.mxu1 %v4284_v10 }
 0x1a4   :  { %v927_v16 = vmul.f32 %v5246_v15, %v924_v1  ;;  %vm932_vm8 = vweird.f32 %v5246_v15  ;;  %v5056_v1 = vld [vmem:[#allocation9 + $0xac] sm:$0xf] }
 0x1a5   :  { %vm933_vm10 = vmor %vm931_vm9, %vm932_vm8  ;;  %v953_v54 = vor.u32 1.1754944e-38, %v952_v32  ;;  %vm951_vm15 = vcmp.eq.f32.partialorder %v950_v41, 8.507059e+37  ;;  %v4280_v9 = vor.u32 %v5056_v1, %v4277_v4  ;;  %v4239_v32 = vld [vmem:[#allocation9 + $0x60] sm:$0xf]  ;;  %v5047_v41 = vld [vmem:[#allocation9 + $0x64] sm:$0xf] }
 0x1a6   :  { %v928_v37 = vsub.f32 1.0, %v927_v16  ;;  %v5045_v1 = vld [vmem:[#allocation9 + $0x50] sm:$0xf0] }
 0x1a7   :  { %1394 = vmatpush.bf16.msrb.mxu0 %v4280_v9  ;;  %v4228_v4 = vor.u32 %v5045_v1, %v4227_v0  ;;  %v5046_v9 = vld [vmem:[#allocation9 + $0x58] sm:$0xf0] }
 0x1a8   :  { %v929_v36 = vmul.f32 %v5246_v15, %v928_v37  ;;  %v4265_v37 = vld [vmem:[#allocation9 + $0x9c] sm:$0xf0] }
 0x1a9   :  { %v5248_v22 = vpop.eup %5247 }
 0x1aa   :  { %v942_v24 = vmul.f32 %v5248_v22, %v925_v13  ;;  %v930_v25 = vadd.f32 %v5246_v15, %v929_v36  ;;  %vm947_vm12 = vweird.f32 %v5248_v22  ;;  %v5054_v13 = vld [vmem:[#allocation9 + $0x98] sm:$0xf0]  ;;  %v5055_v36 = vld [vmem:[#allocation9 + $0xa0] sm:$0xf0] }
 0x1ab   :  { %vm948_vm14 = vmor %vm946_vm13, %vm947_vm12 }
 0x1ac   :  { %v943_v14 = vsub.f32 1.0, %v942_v24  ;;  %v934_v27 = vsel %vm933_vm10, %v5246_v15, %v930_v25  ;;  %v5053_v15 = vld [vmem:[#allocation9 + $0x94] sm:$0xf]  ;;  %v4251_v24 = vld [vmem:[#allocation9 + $0x78] sm:$0xf] }
 0x1ad   :  { %v939_v30 = vsel %vm936_vm11, %v938_v26, %v934_v27  ;;  %v4268_v17 = vor.u32 %v5053_v15, %v4265_v37  ;;  %v5051_v25 = vld [vmem:[#allocation9 + $0x80] sm:$0xf0]  ;;  %v5050_v26 = vld [vmem:[#allocation9 + $0x7c] sm:$0xf]  ;;  %v4253_v27 = vld [vmem:[#allocation9 + $0x84] sm:$0xf0] }
 0x1ae   :  { %v944_v31 = vmul.f32 %v5248_v22, %v943_v14  ;;  %v957_v40 = vmul.f32 %v956_v28, %v939_v30  ;;  %v4252_v14 = vor.u32 %v5051_v25, %v4251_v24  ;;  %v4259_v28 = vld [vmem:[#allocation9 + $0x80] sm:$0xf]  ;;  %v4256_v30 = vor.u32 %v5050_v26, %v4253_v27  ;;  %v4215_v15 = vld [vmem:[#allocation9 + $0x30] sm:$0xf]  ;;  %v5041_v37 = vld [vmem:[#allocation9 + $0x34] sm:$0xf] }
 0x1af   :  { %1395 = vmatpush.bf16.msrb.mxu0 %v4268_v17  ;;  %v4223_v17 = vld [vmem:[#allocation9 + $0x38] sm:$0xf]  ;;  %v5039_v26 = vld [vmem:[#allocation9 + $0x20] sm:$0xf0]  ;;  %v4205_v27 = vld [vmem:[#allocation9 + $0x24] sm:$0xf0] }
 0x1b0   :  { %v958_v42 = vadd.f32 %v957_v40, %v417_v29  ;;  %v945_v44 = vadd.f32 %v5248_v22, %v944_v31  ;;  %v5052_v29 = vld [vmem:[#allocation9 + $0x88] sm:$0xf0]  ;;  %v4203_v24 = vld [vmem:[#allocation9 + $0x18] sm:$0xf] }
 0x1b1   :  { %v4260_v31 = vor.u32 %v5052_v29, %v4259_v28  ;;  %v5048_v40 = vld [vmem:[#allocation9 + $0x68] sm:$0xf0]  ;;  %v4211_v29 = vld [vmem:[#allocation9 + $0x20] sm:$0xf] }
 0x1b2   :  { %5249 = vtanh.f32 %v958_v42  ;;  %v949_v46 = vsel %vm948_vm14, %v5248_v22, %v945_v44  ;;  %v4272_v22 = vor.u32 %v5055_v36, %v4271_v18  ;;  %v4240_v42 = vor.u32 %v5048_v40, %v4239_v32  ;;  %v4241_v44 = vld [vmem:[#allocation9 + $0x6c] sm:$0xf0]  ;;  %v4217_v18 = vld [vmem:[#allocation9 + $0x3c] sm:$0xf0] }
 0x1b3   :  { %v954_v47 = vsel %vm951_vm15, %v953_v54, %v949_v46  ;;  %1396 = vmatpush.bf16.msrb.mxu0 %v4256_v30  ;;  %v4247_v54 = vld [vmem:[#allocation9 + $0x68] sm:$0xf]  ;;  %v5049_v46 = vld [vmem:[#allocation9 + $0x70] sm:$0xf0]  ;;  %v4220_v36 = vor.u32 %v5041_v37, %v4217_v18  ;;  %v5040_v30 = vld [vmem:[#allocation9 + $0x28] sm:$0xf0]  ;;  %v4204_v40 = vor.u32 %v5039_v26, %v4203_v24 }
 0x1b4   :  { %v960_v49 = vsub.f32 1.0, %v954_v47  ;;  %v962_v57 = vmul.f32 %v954_v47, %v5769_v48  ;;  %v4263_v48 = vld [vmem:[#allocation9 + $0x90] sm:$0xf]  ;;  %1408 = vmatpush.bf16.msrb.mxu1 %v4272_v22  ;;  %v391_v47 = vadd.f32 %v5778_v55, %v5724_v52  ;;  %v4232_v55 = vor.u32 %v5044_v2, %v4229_v5  ;;  %v5043_v22 = vld [vmem:[#allocation9 + $0x40] sm:$0xf0] }
 0x1b5   :  { %v4264_v16 = vor.u32 %v5054_v13, %v4263_v48  ;;  %v4236_v13 = vor.u32 %v5046_v9, %v4235_v7  ;;  %v4224_v25 = vor.u32 %v5043_v22, %v4223_v17 }
 0x1b7   :  { %1382 = vmatpush.bf16.msrb.mxu3 %v4264_v16  ;;  %v5042_v16 = vld [vmem:[#allocation9 + $0x38] sm:$0xf0] }
 0x1b8   :  { %v5250_v33 = vpop.eup %5249  ;;  %1409 = vmatpush.bf16.msrb.mxu1 %v4260_v31 }
 0x1b9   :  { %v961_v51 = vmul.f32 %v5250_v33, %v960_v49  ;;  %v4244_v49 = vor.u32 %v5047_v41, %v4241_v44  ;;  %v4248_v33 = vor.u32 %v5049_v46, %v4247_v54  ;;  %v4191_v44 = vld [vmem:[#allocation9] sm:$0xf]  ;;  %v5036_v54 = vld [vmem:[#allocation9 + $0x8] sm:$0xf0]  ;;  %v5035_v46 = vld [vmem:[#allocation9 + $0x4] sm:$0xf] }
 0x1bb   :  { %v5800_v61 = vadd.f32 %v962_v57, %v961_v51  ;;  %1383 = vmatpush.bf16.msrb.mxu3 %v4252_v14  ;;  %1397 = vmatpush.bf16.msrb.mxu0 %v4244_v49  ;;  %v5038_v14 = vld [vmem:[#allocation9 + $0x1c] sm:$0xf]  ;;  %v4199_v49 = vld [vmem:[#allocation9 + $0x8] sm:$0xf] }
 0x1bc   :  { %1410 = vmatpush.bf16.msrb.mxu1 %v4248_v33  ;;  %v4208_v41 = vor.u32 %v5038_v14, %v4205_v27  ;;  %v5037_v33 = vld [vmem:[#allocation9 + $0x10] sm:$0xf0] }
 0x1bd   :  { %v964_v62 = vpack.c.bf16 %v5800_v61, %v5800_v61  ;;  %v4200_v2 = vor.u32 %v5037_v33, %v4199_v49  ;;  %v4375_v49 = vld [vmem:[#allocation9 + $0xb4] sm:$0xf0]  ;;  %v4381_v33 = vld [vmem:[#allocation9 + $0xb0] sm:$0xf] }
 0x1bf   :  { %965 = vst [vmem:[#allocation2 + $0x4] sm:$0xf] %v964_v62  ;;  %1137 = vmatmul.bf16.vlgmr.msra.gmra.mxu0 %v964_v62  ;;  %1150 = vmatmul.bf16.vlgmr.msra.gmra.mxu1 %v964_v62 }
 0x1c0   :  { %1163 = vmatmul.bf16.vlgmr.msra.gmra.mxu2 %v964_v62  ;;  %1384 = vmatpush.bf16.msrb.mxu3 %v4240_v42  ;;  %v4212_v42 = vor.u32 %v5040_v30, %v4211_v29 }
 0x1c1   :  { %1398 = vmatpush.bf16.msrb.mxu0 %v4232_v55  ;;  %1411 = vmatpush.bf16.msrb.mxu1 %v4236_v13 }
 0x1c4   :  { %1385 = vmatpush.bf16.msrb.mxu3 %v4228_v4 }
 0x1c5   :  { %1399 = vmatpush.bf16.msrb.mxu0 %v4220_v36  ;;  %1412 = vmatpush.bf16.msrb.mxu1 %v4224_v25 }
 0x1c9   :  { %1400 = vmatpush.bf16.msrb.mxu0 %v4208_v41  ;;  %1413 = vmatpush.bf16.msrb.mxu1 %v4212_v42 }
 0x1cd   :  { %1414 = vmatpush.bf16.msrb.mxu1 %v4200_v2  ;;  %v4363_v2 = vld [vmem:[#allocation9 + $0x9c] sm:$0xf0] }
 0x23c   :  { %v1138_v51 = vpop.f32.mrf.mxu0  ;;  %v1151_v57 = vpop.f32.mrf.mxu1 }
 0x23d   :  { %v1168_v62 = vadd.f32 %v1138_v51, %v5719_v43  ;;  %v1169_v63 = vadd.f32 %v1151_v57, %v391_v47  ;;  %v4216_v43 = vor.u32 %v5042_v16, %v4215_v15  ;;  %v4193_v47 = vld [vmem:[#allocation9 + $0xc] sm:$0xf0] }
 0x23e   :  { %v4196_v1 = vor.u32 %v5035_v46, %v4193_v47  ;;  %v5080_v46 = vld [vmem:[#allocation9 + $0xac] sm:$0xf] }
 0x23f   :  { %v4187_v10 = vmul.f32 -1.442695, %v1168_v62  ;;  %v4188_v48 = vmul.f32 -1.442695, %v1169_v63  ;;  %1386 = vmatpush.bf16.msrb.mxu3 %v4216_v43  ;;  %v4192_v63 = vor.u32 %v5036_v54, %v4191_v44  ;;  %v5081_v54 = vld [vmem:[#allocation9 + $0xb0] sm:$0xf0] }
 0x240   :  { %1401 = vmatpush.bf16.msrb.mxu0 %v4196_v1 }
 0x241   :  { %5251 = vpow2.f32 %v4187_v10 }
 0x242   :  { %5253 = vpow2.f32 %v4188_v48 }
 0x243   :  { %v1164_v28 = vpop.f32.mrf.mxu2  ;;  %1387 = vmatpush.bf16.msrb.mxu3 %v4204_v40 }
 0x244   :  { %v1140_v31 = vpop.f32.mrf.mxu0  ;;  %v1153_v32 = vpop.f32.mrf.mxu1  ;;  %v1208_v17 = vadd.f32 %v5757_v20, %v1164_v28 }
 0x247   :  { %v5252_v51 = vpop.eup %5251  ;;  %1388 = vmatpush.bf16.msrb.mxu3 %v4192_v63  ;;  %v5078_v63 = vld [vmem:[#allocation9 + $0x98] sm:$0xf0] }
 0x248   :  { %v5254_v57 = vpop.eup %5253  ;;  %v1176_v62 = vadd.f32 1.0, %v5252_v51  ;;  %v5082_v51 = vld [vmem:[#allocation9 + $0xb8] sm:$0xf0] }
 0x249   :  { %v1177_v0 = vadd.f32 1.0, %v5254_v57  ;;  %v4378_v57 = vor.u32 %v5080_v46, %v4375_v49  ;;  %v5068_v46 = vld [vmem:[#allocation9 + $0x4c] sm:$0xf]  ;;  %v4333_v49 = vld [vmem:[#allocation9 + $0x50] sm:$0xf] }
 0x24a   :  { %5255 = vrcp.f32 %v1176_v62  ;;  %v1189_v13 = vand.u32 2147483648, %v1176_v62  ;;  %v1187_v16 = vand.u32 2147483647, %v1176_v62  ;;  %vm1183_vm1 = vweird.f32 %v1176_v62 }
 0x24b   :  { %5257 = vrcp.f32 %v1177_v0  ;;  %v1166_v4 = vpop.f32.mrf.mxu2  ;;  %v1204_v25 = vand.u32 2147483648, %v1177_v0  ;;  %vm1198_vm5 = vweird.f32 %v1177_v0  ;;  %v1202_v14 = vand.u32 2147483647, %v1177_v0  ;;  %1646 = vmatpush.bf16.msra.mxu3 %v4378_v57  ;;  %v5070_v57 = vld [vmem:[#allocation9 + $0x58] sm:$0xf0] }
 0x24c   :  { %v1190_v43 = vor.u32 1.1754944e-38, %v1189_v13  ;;  %vm1188_vm3 = vcmp.eq.f32.partialorder %v1187_v16, 8.507059e+37  ;;  %v4369_v4 = vld [vmem:[#allocation9 + $0x98] sm:$0xf]  ;;  %v5074_v13 = vld [vmem:[#allocation9 + $0x7c] sm:$0xf] }
 0x24d   :  { %v1205_v30 = vor.u32 1.1754944e-38, %v1204_v25  ;;  %vm1203_vm7 = vcmp.eq.f32.partialorder %v1202_v14, 8.507059e+37 }
 0x250   :  { %v5256_v5 = vpop.eup %5255 }
 0x251   :  { %v5258_v7 = vpop.eup %5257  ;;  %v1179_v9 = vmul.f32 %v5256_v5, %v1176_v62  ;;  %vm1184_vm0 = vweird.f32 %v5256_v5  ;;  %v4382_v62 = vor.u32 %v5082_v51, %v4381_v33 }
 0x252   :  { %v1194_v10 = vmul.f32 %v5258_v7, %v1177_v0  ;;  %vm1185_vm2 = vmor %vm1183_vm1, %vm1184_vm0  ;;  %vm1199_vm4 = vweird.f32 %v5258_v7  ;;  %v5077_v0 = vld [vmem:[#allocation9 + $0x94] sm:$0xf] }
 0x253   :  { %v1180_v48 = vsub.f32 1.0, %v1179_v9  ;;  %vm1200_vm6 = vmor %vm1198_vm5, %vm1199_vm4  ;;  %1659 = vmatpush.bf16.msra.mxu0 %v4382_v62  ;;  %v4313_v62 = vld [vmem:[#allocation9 + $0x30] sm:$0xf] }
 0x254   :  { %v1195_v55 = vsub.f32 1.0, %v1194_v10  ;;  %v393_v10 = vadd.f32 %v5780_v56, %v5724_v52  ;;  %v4337_v56 = vld [vmem:[#allocation9 + $0x60] sm:$0xf] }
 0x255   :  { %v1181_v15 = vmul.f32 %v5256_v5, %v1180_v48  ;;  %v4349_v48 = vld [vmem:[#allocation9 + $0x78] sm:$0xf] }
 0x256   :  { %v1196_v37 = vmul.f32 %v5258_v7, %v1195_v55  ;;  %v5075_v55 = vld [vmem:[#allocation9 + $0x80] sm:$0xf0] }
 0x257   :  { %v1182_v18 = vadd.f32 %v5256_v5, %v1181_v15  ;;  %v4350_v16 = vor.u32 %v5075_v55, %v4349_v48  ;;  %v4301_v55 = vld [vmem:[#allocation9 + $0x18] sm:$0xf] }
 0x258   :  { %v1197_v24 = vadd.f32 %v5258_v7, %v1196_v37  ;;  %v4351_v37 = vld [vmem:[#allocation9 + $0x84] sm:$0xf0] }
 0x259   :  { %v1186_v36 = vsel %vm1185_vm2, %v5256_v5, %v1182_v18  ;;  %v5079_v5 = vld [vmem:[#allocation9 + $0xa0] sm:$0xf0]  ;;  %v4357_v18 = vld [vmem:[#allocation9 + $0x80] sm:$0xf] }
 0x25a   :  { %v1191_v22 = vsel %vm1188_vm3, %v1190_v43, %v1186_v36  ;;  %v1201_v29 = vsel %vm1200_vm6, %v5258_v7, %v1197_v24  ;;  %v4366_v7 = vor.u32 %v5077_v0, %v4363_v2  ;;  %v4370_v9 = vor.u32 %v5079_v5, %v4369_v4  ;;  %v5076_v43 = vld [vmem:[#allocation9 + $0x88] sm:$0xf0]  ;;  %v5065_v0 = vld [vmem:[#allocation9 + $0x34] sm:$0xf]  ;;  %v4321_v5 = vld [vmem:[#allocation9 + $0x38] sm:$0xf] }
 0x25b   :  { %v1209_v26 = vmul.f32 %v1208_v17, %v1191_v22  ;;  %v1206_v31 = vsel %vm1203_vm7, %v1205_v30, %v1201_v29  ;;  %v4354_v22 = vor.u32 %v5074_v13, %v4351_v37  ;;  %v4358_v24 = vor.u32 %v5076_v43, %v4357_v18  ;;  %v4339_v29 = vld [vmem:[#allocation9 + $0x6c] sm:$0xf0]  ;;  %v4345_v30 = vld [vmem:[#allocation9 + $0x68] sm:$0xf]  ;;  %v5063_v13 = vld [vmem:[#allocation9 + $0x20] sm:$0xf0] }
 0x25c   :  { %v1212_v32 = vsub.f32 1.0, %v1206_v31  ;;  %v1214_v28 = vmul.f32 %v1206_v31, %v5800_v61  ;;  %v4361_v61 = vld [vmem:[#allocation9 + $0x90] sm:$0xf]  ;;  %1647 = vmatpush.bf16.msra.mxu3 %v4366_v7  ;;  %1660 = vmatpush.bf16.msra.mxu0 %v4370_v9  ;;  %v364_v31 = vadd.f32 %v5721_v50, %v5715_v38  ;;  %v4334_v50 = vor.u32 %v5070_v57, %v4333_v49  ;;  %v5067_v7 = vld [vmem:[#allocation9 + $0x40] sm:$0xf0] }
 0x25d   :  { %v1210_v27 = vadd.f32 %v1209_v26, %v5747_v8  ;;  %v4373_v8 = vld [vmem:[#allocation9 + $0xa8] sm:$0xf]  ;;  %v4362_v1 = vor.u32 %v5078_v63, %v4361_v61  ;;  %v5072_v26 = vld [vmem:[#allocation9 + $0x68] sm:$0xf0]  ;;  %v5066_v61 = vld [vmem:[#allocation9 + $0x38] sm:$0xf0] }
 0x25e   :  { %v4374_v47 = vor.u32 %v5081_v54, %v4373_v8  ;;  %v4338_v14 = vor.u32 %v5072_v26, %v4337_v56  ;;  %v4314_v9 = vor.u32 %v5066_v61, %v4313_v62  ;;  %v5062_v37 = vld [vmem:[#allocation9 + $0x1c] sm:$0xf]  ;;  %v4303_v18 = vld [vmem:[#allocation9 + $0x24] sm:$0xf0]  ;;  %v4309_v43 = vld [vmem:[#allocation9 + $0x20] sm:$0xf] }
 0x25f   :  { %5259 = vtanh.f32 %v1210_v27  ;;  %v5071_v27 = vld [vmem:[#allocation9 + $0x64] sm:$0xf]  ;;  %v4289_v56 = vld [vmem:[#allocation9] sm:$0xf]  ;;  %v5060_v26 = vld [vmem:[#allocation9 + $0x8] sm:$0xf0] }
 0x260   :  { %1633 = vmatpush.bf16.msrb.mxu2 %v4374_v47  ;;  %1648 = vmatpush.bf16.msra.mxu3 %v4354_v22  ;;  %v4327_v47 = vld [vmem:[#allocation9 + $0x54] sm:$0xf0] }
 0x261   :  { %1661 = vmatpush.bf16.msra.mxu0 %v4358_v24  ;;  %v4330_v51 = vor.u32 %v5068_v46, %v4327_v47  ;;  %v4302_v24 = vor.u32 %v5063_v13, %v4301_v55 }
 0x264   :  { %1634 = vmatpush.bf16.msrb.mxu2 %v4362_v1  ;;  %v4315_v1 = vld [vmem:[#allocation9 + $0x3c] sm:$0xf0] }
 0x265   :  { %v5260_v40 = vpop.eup %5259  ;;  %v4318_v48 = vor.u32 %v5065_v0, %v4315_v1 }
 0x266   :  { %v1213_v41 = vmul.f32 %v5260_v40, %v1212_v32  ;;  %v4342_v32 = vor.u32 %v5071_v27, %v4339_v29  ;;  %v5073_v40 = vld [vmem:[#allocation9 + $0x70] sm:$0xf0]  ;;  %v5059_v27 = vld [vmem:[#allocation9 + $0x4] sm:$0xf]  ;;  %v4291_v29 = vld [vmem:[#allocation9 + $0xc] sm:$0xf0] }
 0x267   :  { %v4346_v8 = vor.u32 %v5073_v40, %v4345_v30 }
 0x268   :  { %v5810_v42 = vadd.f32 %v1214_v28, %v1213_v41  ;;  %1635 = vmatpush.bf16.msrb.mxu2 %v4350_v16  ;;  %v4325_v41 = vld [vmem:[#allocation9 + $0x48] sm:$0xf]  ;;  %v5069_v28 = vld [vmem:[#allocation9 + $0x50] sm:$0xf0]  ;;  %1649 = vmatpush.bf16.msra.mxu3 %v4342_v32  ;;  %v4322_v16 = vor.u32 %v5067_v7, %v4321_v5  ;;  %v422_v5 = vadd.f32 %v5759_v21, %v5744_v6 }
 0x269   :  { %v4326_v54 = vor.u32 %v5069_v28, %v4325_v41  ;;  %1662 = vmatpush.bf16.msra.mxu0 %v4346_v8  ;;  %v5061_v32 = vld [vmem:[#allocation9 + $0x10] sm:$0xf0]  ;;  %v4290_v41 = vor.u32 %v5060_v26, %v4289_v56  ;;  %v4294_v28 = vor.u32 %v5059_v27, %v4291_v29  ;;  %v4479_v56 = vld [vmem:[#allocation9 + $0xb0] sm:$0xf]  ;;  %v5106_v26 = vld [vmem:[#allocation9 + $0xb8] sm:$0xf0] }
 0x26a   :  { %v1216_v44 = vpack.c.bf16 %v5810_v42, %v5810_v42  ;;  %v4480_v27 = vor.u32 %v5106_v26, %v4479_v56  ;;  %v5102_v29 = vld [vmem:[#allocation9 + $0x98] sm:$0xf0]  ;;  %v4413_v26 = vld [vmem:[#allocation9 + $0x3c] sm:$0xf0] }
 0x26c   :  { %1217 = vst [vmem:[#allocation2 + $0x8] sm:$0xf] %v1216_v44  ;;  %1389 = vmatmul.bf16.vlgmr.msrb.gmra.mxu3 %v1216_v44  ;;  %1402 = vmatmul.bf16.vlgmr.msrb.gmra.mxu0 %v1216_v44 }
 0x26d   :  { %1415 = vmatmul.bf16.vlgmr.msrb.gmra.mxu1 %v1216_v44  ;;  %1636 = vmatpush.bf16.msrb.mxu2 %v4338_v14 }
 0x26e   :  { %1650 = vmatpush.bf16.msra.mxu3 %v4330_v51  ;;  %1663 = vmatpush.bf16.msra.mxu0 %v4334_v50 }
 0x271   :  { %1637 = vmatpush.bf16.msrb.mxu2 %v4326_v54 }
 0x272   :  { %1651 = vmatpush.bf16.msra.mxu3 %v4318_v48  ;;  %1664 = vmatpush.bf16.msra.mxu0 %v4322_v16 }
 0x275   :  { %1638 = vmatpush.bf16.msrb.mxu2 %v4314_v9 }
 0x279   :  { %1639 = vmatpush.bf16.msrb.mxu2 %v4302_v24 }
 0x27d   :  { %1640 = vmatpush.bf16.msrb.mxu2 %v4290_v41  ;;  %v5103_v41 = vld [vmem:[#allocation9 + $0xa0] sm:$0xf0] }
 0x2e9   :  { %v1403_v15 = vpop.f32.mrf.mxu0 }
 0x2ea   :  { %v1421_v36 = vadd.f32 %v1403_v15, %v393_v10  ;;  %v5816_v17 = vpop.f32.mrf.mxu1 }
 0x2eb   :  { %v1460_v0 = vadd.f32 %v5757_v20, %v5816_v17 }
 0x2ec   :  { %v4286_v25 = vmul.f32 -1.442695, %v1421_v36  ;;  %v5064_v36 = vld [vmem:[#allocation9 + $0x28] sm:$0xf0] }
 0x2ed   :  { %v4310_v14 = vor.u32 %v5064_v36, %v4309_v43  ;;  %v5105_v36 = vld [vmem:[#allocation9 + $0xb0] sm:$0xf0] }
 0x2ee   :  { %5261 = vpow2.f32 %v4286_v25  ;;  %v4306_v25 = vor.u32 %v5062_v37, %v4303_v18 }
 0x2ef   :  { %v1390_v44 = vpop.f32.mrf.mxu3  ;;  %1665 = vmatpush.bf16.msra.mxu0 %v4310_v14 }
 0x2f0   :  { %v1420_v33 = vadd.f32 %v1390_v44, %v364_v31  ;;  %v4297_v31 = vld [vmem:[#allocation9 + $0x8] sm:$0xf]  ;;  %1652 = vmatpush.bf16.msra.mxu3 %v4306_v25  ;;  %v4473_v25 = vld [vmem:[#allocation9 + $0xb4] sm:$0xf0] }
 0x2f1   :  { %v1405_v63 = vpop.f32.mrf.mxu0  ;;  %v4298_v44 = vor.u32 %v5061_v32, %v4297_v31  ;;  %v4461_v32 = vld [vmem:[#allocation9 + $0x9c] sm:$0xf0] }
 0x2f2   :  { %v4285_v2 = vmul.f32 -1.442695, %v1420_v33  ;;  %v1418_v4 = vpop.f32.mrf.mxu1 }
 0x2f3   :  { %1666 = vmatpush.bf16.msra.mxu0 %v4298_v44 }
 0x2f4   :  { %v5262_v10 = vpop.eup %5261  ;;  %5263 = vpow2.f32 %v4285_v2  ;;  %1653 = vmatpush.bf16.msra.mxu3 %v4294_v28 }
 0x2f5   :  { %v5820_v15 = vadd.f32 1.0, %v5262_v10 }
 0x2f7   :  { %v1392_v22 = vpop.f32.mrf.mxu3  ;;  %5265 = vrcp.f32 %v5820_v15  ;;  %v1456_v7 = vand.u32 2147483648, %v5820_v15  ;;  %vm1450_vm13 = vweird.f32 %v5820_v15  ;;  %v1454_v10 = vand.u32 2147483647, %v5820_v15 }
 0x2f8   :  { %v5104_v22 = vld [vmem:[#allocation9 + $0xac] sm:$0xf]  ;;  %1911 = vmatpush.bf16.msrb.mxu3 %v4480_v27  ;;  %v5091_v27 = vld [vmem:[#allocation9 + $0x40] sm:$0xf0] }
 0x2f9   :  { %v1457_v13 = vor.u32 1.1754944e-38, %v1456_v7  ;;  %vm1455_vm15 = vcmp.eq.f32.partialorder %v1454_v10, 8.507059e+37  ;;  %v4476_v14 = vor.u32 %v5104_v22, %v4473_v25  ;;  %v396_v7 = vadd.f32 %v5782_v58, %v5724_v52  ;;  %v5090_v58 = vld [vmem:[#allocation9 + $0x38] sm:$0xf0]  ;;  %v5089_v25 = vld [vmem:[#allocation9 + $0x34] sm:$0xf] }
 0x2fa   :  { %v5264_v30 = vpop.eup %5263 }
 0x2fb   :  { %v1428_v40 = vadd.f32 1.0, %v5264_v30  ;;  %1898 = vmatpush.bf16.msra.mxu2 %v4476_v14  ;;  %v5101_v30 = vld [vmem:[#allocation9 + $0x94] sm:$0xf]  ;;  %v4419_v14 = vld [vmem:[#allocation9 + $0x38] sm:$0xf] }
 0x2fc   :  { %v4464_v28 = vor.u32 %v5101_v30, %v4461_v32  ;;  %v4420_v32 = vor.u32 %v5091_v27, %v4419_v14 }
 0x2fd   :  { %5267 = vrcp.f32 %v1428_v40  ;;  %v5266_v8 = vpop.eup %5265  ;;  %v1441_v51 = vand.u32 2147483648, %v1428_v40  ;;  %v1439_v62 = vand.u32 2147483647, %v1428_v40  ;;  %vm1435_vm9 = vweird.f32 %v1428_v40 }
 0x2fe   :  { %v1446_v54 = vmul.f32 %v5266_v8, %v5820_v15  ;;  %vm1451_vm12 = vweird.f32 %v5266_v8  ;;  %v4471_v15 = vld [vmem:[#allocation9 + $0xa8] sm:$0xf] }
 0x2ff   :  { %v1442_v50 = vor.u32 1.1754944e-38, %v1441_v51  ;;  %vm1440_vm11 = vcmp.eq.f32.partialorder %v1439_v62, 8.507059e+37  ;;  %vm1452_vm14 = vmor %vm1450_vm13, %vm1451_vm12  ;;  %v4472_v24 = vor.u32 %v5105_v36, %v4471_v15  ;;  %1899 = vmatpush.bf16.msra.mxu2 %v4464_v28  ;;  %v5100_v51 = vld [vmem:[#allocation9 + $0x88] sm:$0xf0]  ;;  %v5086_v28 = vld [vmem:[#allocation9 + $0x1c] sm:$0xf] }
 0x300   :  { %v1447_v49 = vsub.f32 1.0, %v1446_v54  ;;  %v5099_v54 = vld [vmem:[#allocation9 + $0x80] sm:$0xf0] }
 0x301   :  { %1885 = vmatpush.bf16.msra.mxu1 %v4472_v24  ;;  %v4411_v24 = vld [vmem:[#allocation9 + $0x30] sm:$0xf] }
 0x302   :  { %v1448_v61 = vmul.f32 %v5266_v8, %v1447_v49  ;;  %v4449_v49 = vld [vmem:[#allocation9 + $0x84] sm:$0xf0] }
 0x303   :  { %v5268_v46 = vpop.eup %5267 }
 0x304   :  { %v1431_v47 = vmul.f32 %v5268_v46, %v1428_v40  ;;  %vm1436_vm8 = vweird.f32 %v5268_v46  ;;  %v1449_v4 = vadd.f32 %v5266_v8, %v1448_v61  ;;  %v4467_v40 = vld [vmem:[#allocation9 + $0x98] sm:$0xf] }
 0x305   :  { %vm1437_vm10 = vmor %vm1435_vm9, %vm1436_vm8  ;;  %v4468_v44 = vor.u32 %v5103_v41, %v4467_v40  ;;  %v4399_v40 = vld [vmem:[#allocation9 + $0x18] sm:$0xf]  ;;  %v5087_v41 = vld [vmem:[#allocation9 + $0x20] sm:$0xf0] }
 0x306   :  { %v1432_v33 = vsub.f32 1.0, %v1431_v47  ;;  %v1453_v55 = vsel %vm1452_vm14, %v5266_v8, %v1449_v4  ;;  %v4447_v8 = vld [vmem:[#allocation9 + $0x78] sm:$0xf]  ;;  %v4443_v4 = vld [vmem:[#allocation9 + $0x68] sm:$0xf] }
 0x307   :  { %v1458_v20 = vsel %vm1455_vm15, %v1457_v13, %v1453_v55  ;;  %1912 = vmatpush.bf16.msrb.mxu3 %v4468_v44  ;;  %v4448_v47 = vor.u32 %v5099_v54, %v4447_v8  ;;  %v5093_v55 = vld [vmem:[#allocation9 + $0x50] sm:$0xf0]  ;;  %v5092_v13 = vld [vmem:[#allocation9 + $0x4c] sm:$0xf]  ;;  %v4401_v44 = vld [vmem:[#allocation9 + $0x24] sm:$0xf0] }
 0x308   :  { %v1433_v57 = vmul.f32 %v5268_v46, %v1432_v33  ;;  %v1464_v17 = vsub.f32 1.0, %v1458_v20  ;;  %v1466_v18 = vmul.f32 %v1458_v20, %v5810_v42  ;;  %v4459_v42 = vld [vmem:[#allocation9 + $0x90] sm:$0xf]  ;;  %v4455_v33 = vld [vmem:[#allocation9 + $0x80] sm:$0xf] }
 0x309   :  { %v4460_v31 = vor.u32 %v5102_v29, %v4459_v42  ;;  %v4456_v61 = vor.u32 %v5100_v51, %v4455_v33  ;;  %v4407_v8 = vld [vmem:[#allocation9 + $0x20] sm:$0xf]  ;;  %v5088_v54 = vld [vmem:[#allocation9 + $0x28] sm:$0xf0]  ;;  %v4404_v33 = vor.u32 %v5086_v28, %v4401_v44 }
 0x30a   :  { %v1434_v63 = vadd.f32 %v5268_v46, %v1433_v57  ;;  %v4408_v51 = vor.u32 %v5088_v54, %v4407_v8  ;;  %v5130_v54 = vld [vmem:[#allocation9 + $0xb8] sm:$0xf0] }
 0x30b   :  { %1886 = vmatpush.bf16.msra.mxu1 %v4460_v31  ;;  %1913 = vmatpush.bf16.msrb.mxu3 %v4456_v61  ;;  %v4412_v31 = vor.u32 %v5090_v58, %v4411_v24  ;;  %v5084_v61 = vld [vmem:[#allocation9 + $0x8] sm:$0xf0]  ;;  %v5844_v58 = vld [vmem:[%s6323_s4] ss:$0 sm:$0xff] }
 0x30c   :  { %v1438_v1 = vsel %vm1437_vm10, %v5268_v46, %v1434_v63  ;;  %v5098_v46 = vld [vmem:[#allocation9 + $0x7c] sm:$0xf]  ;;  %v4435_v63 = vld [vmem:[#allocation9 + $0x60] sm:$0xf] }
 0x30d   :  { %v1443_v2 = vsel %vm1440_vm11, %v1442_v50, %v1438_v1  ;;  %v4452_v62 = vor.u32 %v5098_v46, %v4449_v49  ;;  %v5096_v50 = vld [vmem:[#allocation9 + $0x68] sm:$0xf0]  ;;  %v4400_v49 = vor.u32 %v5087_v41, %v4399_v40 }
 0x30e   :  { %v1461_v9 = vmul.f32 %v1460_v0, %v1443_v2  ;;  %v5095_v0 = vld [vmem:[#allocation9 + $0x64] sm:$0xf]  ;;  %v4436_v1 = vor.u32 %v5096_v50, %v4435_v63  ;;  %v4437_v2 = vld [vmem:[#allocation9 + $0x6c] sm:$0xf0] }
 0x30f   :  { %1887 = vmatpush.bf16.msra.mxu1 %v4448_v47  ;;  %1900 = vmatpush.bf16.msra.mxu2 %v4452_v62  ;;  %v4387_v62 = vld [vmem:[#allocation9] sm:$0xf]  ;;  %v5083_v63 = vld [vmem:[#allocation9 + $0x4] sm:$0xf]  ;;  %v4389_v50 = vld [vmem:[#allocation9 + $0xc] sm:$0xf0] }
 0x310   :  { %v1462_v48 = vadd.f32 %v1461_v9, %v422_v5  ;;  %v5097_v5 = vld [vmem:[#allocation9 + $0x70] sm:$0xf0]  ;;  %v4440_v9 = vor.u32 %v5095_v0, %v4437_v2  ;;  %v4395_v0 = vld [vmem:[#allocation9 + $0x8] sm:$0xf] }
 0x311   :  { %v4444_v10 = vor.u32 %v5097_v5, %v4443_v4 }
 0x312   :  { %5269 = vtanh.f32 %v1462_v48  ;;  %v4423_v48 = vld [vmem:[#allocation9 + $0x48] sm:$0xf] }
 0x313   :  { %1888 = vmatpush.bf16.msra.mxu1 %v4436_v1  ;;  %1901 = vmatpush.bf16.msra.mxu2 %v4440_v9  ;;  %v5085_v1 = vld [vmem:[#allocation9 + $0x10] sm:$0xf0] }
 0x314   :  { %1914 = vmatpush.bf16.msrb.mxu3 %v4444_v10  ;;  %v4392_v10 = vor.u32 %v5083_v63, %v4389_v50  ;;  %v5121_v63 = vld [vmem:[#allocation9 + $0x70] sm:$0xf0] }
 0x318   :  { %v5270_v16 = vpop.eup %5269 }
 0x319   :  { %v1465_v37 = vmul.f32 %v5270_v16, %v1464_v17  ;;  %v4424_v16 = vor.u32 %v5093_v55, %v4423_v48  ;;  %v4396_v48 = vor.u32 %v5085_v1, %v4395_v0  ;;  %v4569_v0 = vld [vmem:[#allocation9 + $0xa8] sm:$0xf]  ;;  %v5129_v1 = vld [vmem:[#allocation9 + $0xb0] sm:$0xf0] }
 0x31b   :  { %v5832_v21 = vadd.f32 %v1466_v18, %v1465_v37  ;;  %v4425_v37 = vld [vmem:[#allocation9 + $0x54] sm:$0xf0]  ;;  %v4431_v18 = vld [vmem:[#allocation9 + $0x50] sm:$0xf]  ;;  %1889 = vmatpush.bf16.msra.mxu1 %v4424_v16 }
 0x31c   :  { %v4428_v22 = vor.u32 %v5092_v13, %v4425_v37 }
 0x31d   :  { %v1468_v43 = vpack.c.bf16 %v5832_v21, %v5832_v21 }
 0x31e   :  { %1902 = vmatpush.bf16.msra.mxu2 %v4428_v22 }
 0x31f   :  { %1469 = vst [vmem:[#allocation2 + $0xc] sm:$0xf] %v1468_v43  ;;  %1641 = vmatmul.bf16.vlgmr.msrb.gmra.mxu2 %v1468_v43  ;;  %1654 = vmatmul.bf16.vlgmr.msra.gmra.mxu3 %v1468_v43 }
 0x320   :  { %1667 = vmatmul.bf16.vlgmr.msra.gmra.mxu0 %v1468_v43  ;;  %v5094_v43 = vld [vmem:[#allocation9 + $0x58] sm:$0xf0]  ;;  %1890 = vmatpush.bf16.msra.mxu1 %v4412_v31 }
 0x321   :  { %v4432_v56 = vor.u32 %v5094_v43, %v4431_v18 }
 0x323   :  { %1915 = vmatpush.bf16.msrb.mxu3 %v4432_v56 }
 0x324   :  { %1891 = vmatpush.bf16.msra.mxu1 %v4400_v49  ;;  %v5127_v49 = vld [vmem:[#allocation9 + $0xa0] sm:$0xf0] }
 0x327   :  { %1916 = vmatpush.bf16.msrb.mxu3 %v4420_v32 }
 0x32b   :  { %1917 = vmatpush.bf16.msrb.mxu3 %v4408_v51  ;;  %v4553_v51 = vld [vmem:[#allocation9 + $0x80] sm:$0xf] }
 0x32f   :  { %1918 = vmatpush.bf16.msrb.mxu3 %v4396_v48 }
 0x39d   :  { %v5836_v57 = vpop.f32.mrf.mxu0 }
 0x3a2   :  { %v1642_v20 = vpop.f32.mrf.mxu2  ;;  %v1655_v17 = vpop.f32.mrf.mxu3 }
 0x3a3   :  { %v1672_v15 = vadd.f32 %v1642_v20, %v5727_v11  ;;  %v1673_v36 = vadd.f32 %v1655_v17, %v396_v7  ;;  %v4416_v11 = vor.u32 %v5089_v25, %v4413_v26  ;;  %v4388_v7 = vor.u32 %v5084_v61, %v4387_v62  ;;  %v5124_v62 = vld [vmem:[#allocation9 + $0x88] sm:$0xf0]  ;;  %v4541_v61 = vld [vmem:[#allocation9 + $0x68] sm:$0xf] }
 0x3a4   :  { %v1712_v25 = vadd.f32 %v5844_v58, %v5836_v57  ;;  %v4542_v50 = vor.u32 %v5121_v63, %v4541_v61 }
 0x3a5   :  { %v4383_v42 = vmul.f32 -1.442695, %v1672_v15  ;;  %v4384_v29 = vmul.f32 -1.442695, %v1673_v36  ;;  %v1670_v30 = vpop.f32.mrf.mxu0  ;;  %1903 = vmatpush.bf16.msra.mxu2 %v4416_v11  ;;  %1892 = vmatpush.bf16.msra.mxu1 %v4388_v7 }
 0x3a7   :  { %5271 = vpow2.f32 %v4383_v42 }
 0x3a8   :  { %5273 = vpow2.f32 %v4384_v29 }
 0x3a9   :  { %1904 = vmatpush.bf16.msra.mxu2 %v4404_v33 }
 0x3aa   :  { %v1644_v46 = vpop.f32.mrf.mxu2  ;;  %v1657_v47 = vpop.f32.mrf.mxu3 }
 0x3ab   :  { %v4565_v47 = vld [vmem:[#allocation9 + $0x98] sm:$0xf] }
 0x3ac   :  { %v4566_v33 = vor.u32 %v5127_v49, %v4565_v47  ;;  %v5117_v47 = vld [vmem:[#allocation9 + $0x50] sm:$0xf0]  ;;  %v5116_v49 = vld [vmem:[#allocation9 + $0x4c] sm:$0xf] }
 0x3ad   :  { %v5272_v2 = vpop.eup %5271  ;;  %1905 = vmatpush.bf16.msra.mxu2 %v4392_v10  ;;  %v5118_v10 = vld [vmem:[#allocation9 + $0x58] sm:$0xf0] }
 0x3ae   :  { %v5274_v4 = vpop.eup %5273  ;;  %v1680_v5 = vadd.f32 1.0, %v5272_v2  ;;  %v5128_v2 = vld [vmem:[#allocation9 + $0xac] sm:$0xf] }
 0x3af   :  { %v1681_v9 = vadd.f32 1.0, %v5274_v4  ;;  %v4570_v4 = vor.u32 %v5129_v1, %v4569_v0  ;;  %v5114_v0 = vld [vmem:[#allocation9 + $0x38] sm:$0xf0] }
 0x3b0   :  { %5275 = vrcp.f32 %v1680_v5  ;;  %v1693_v37 = vand.u32 2147483648, %v1680_v5  ;;  %v1691_v15 = vand.u32 2147483647, %v1680_v5  ;;  %vm1687_vm1 = vweird.f32 %v1680_v5 }
 0x3b1   :  { %5277 = vrcp.f32 %v1681_v9  ;;  %v1708_v42 = vand.u32 2147483648, %v1681_v9  ;;  %vm1702_vm5 = vweird.f32 %v1681_v9  ;;  %v1706_v29 = vand.u32 2147483647, %v1681_v9  ;;  %2137 = vmatpush.bf16.msrb.mxu0 %v4570_v4  ;;  %v4511_v4 = vld [vmem:[#allocation9 + $0x3c] sm:$0xf0] }
 0x3b2   :  { %v1694_v24 = vor.u32 1.1754944e-38, %v1693_v37  ;;  %vm1692_vm3 = vcmp.eq.f32.partialorder %v1691_v15, 8.507059e+37 }
 0x3b3   :  { %v1709_v11 = vor.u32 1.1754944e-38, %v1708_v42  ;;  %vm1707_vm7 = vcmp.eq.f32.partialorder %v1706_v29, 8.507059e+37  ;;  %v4533_v29 = vld [vmem:[#allocation9 + $0x60] sm:$0xf] }
 0x3b6   :  { %v5276_v55 = vpop.eup %5275 }
 0x3b7   :  { %v5278_v13 = vpop.eup %5277  ;;  %v1683_v20 = vmul.f32 %v5276_v55, %v1680_v5  ;;  %vm1688_vm0 = vweird.f32 %v5276_v55  ;;  %v4571_v5 = vld [vmem:[#allocation9 + $0xb4] sm:$0xf0] }
 0x3b8   :  { %v1698_v17 = vmul.f32 %v5278_v13, %v1681_v9  ;;  %vm1689_vm2 = vmor %vm1687_vm1, %vm1688_vm0  ;;  %vm1703_vm4 = vweird.f32 %v5278_v13  ;;  %v4574_v7 = vor.u32 %v5128_v2, %v4571_v5  ;;  %v4529_v9 = vld [vmem:[#allocation9 + $0x50] sm:$0xf]  ;;  %v5113_v2 = vld [vmem:[#allocation9 + $0x34] sm:$0xf] }
 0x3b9   :  { %v1684_v16 = vsub.f32 1.0, %v1683_v20  ;;  %vm1704_vm6 = vmor %vm1702_vm5, %vm1703_vm4  ;;  %v4530_v48 = vor.u32 %v5118_v10, %v4529_v9  ;;  %v5125_v20 = vld [vmem:[#allocation9 + $0x94] sm:$0xf]  ;;  %v4514_v9 = vor.u32 %v5113_v2, %v4511_v4  ;;  %v5178_v10 = vld [vmem:[#allocation12 + $0x98] sm:$0xf0] }
 0x3ba   :  { %v1699_v18 = vsub.f32 1.0, %v1698_v17  ;;  %2150 = vmatpush.bf16.msrb.mxu1 %v4574_v7  ;;  %v4769_v5 = vld [vmem:[#allocation12 + $0x90] sm:$0xf]  ;;  %v398_v7 = vadd.f32 %v5784_v59, %v5724_v52  ;;  %v4697_v4 = vld [vmem:[#allocation12] sm:$0xf] }
 0x3bb   :  { %v1685_v43 = vmul.f32 %v5276_v55, %v1684_v16  ;;  %v4559_v16 = vld [vmem:[#allocation9 + $0x9c] sm:$0xf0] }
 0x3bc   :  { %v1700_v36 = vmul.f32 %v5278_v13, %v1699_v18  ;;  %v4562_v37 = vor.u32 %v5125_v20, %v4559_v16  ;;  %v4517_v18 = vld [vmem:[#allocation9 + $0x38] sm:$0xf]  ;;  %v4770_v20 = vor.u32 %v5178_v10, %v4769_v5  ;;  %v4499_v16 = vld [vmem:[#allocation9 + $0x24] sm:$0xf0]  ;;  %v5160_v5 = vld [vmem:[#allocation12 + $0x8] sm:$0xf0] }
 0x3bd   :  { %v1686_v22 = vadd.f32 %v5276_v55, %v1685_v43  ;;  %v5115_v43 = vld [vmem:[#allocation9 + $0x40] sm:$0xf0] }
 0x3be   :  { %v1701_v14 = vadd.f32 %v5278_v13, %v1700_v36  ;;  %2151 = vmatpush.bf16.msrb.mxu1 %v4562_v37  ;;  %v4518_v15 = vor.u32 %v5115_v43, %v4517_v18  ;;  %v4545_v36 = vld [vmem:[#allocation9 + $0x78] sm:$0xf]  ;;  %v4757_v37 = vld [vmem:[#allocation12 + $0x78] sm:$0xf] }
 0x3bf   :  { %v1690_v56 = vsel %vm1689_vm2, %v5276_v55, %v1686_v22  ;;  %v4557_v55 = vld [vmem:[#allocation9 + $0x90] sm:$0xf]  ;;  %v5123_v22 = vld [vmem:[#allocation9 + $0x80] sm:$0xf0] }
 0x3c0   :  { %v1695_v26 = vsel %vm1692_vm3, %v1694_v24, %v1690_v56  ;;  %v1705_v31 = vsel %vm1704_vm6, %v5278_v13, %v1701_v14  ;;  %v5126_v13 = vld [vmem:[#allocation9 + $0x98] sm:$0xf0]  ;;  %v4547_v56 = vld [vmem:[#allocation9 + $0x84] sm:$0xf0]  ;;  %v4505_v14 = vld [vmem:[#allocation9 + $0x20] sm:$0xf] }
 0x3c1   :  { %v1713_v27 = vmul.f32 %v1712_v25, %v1695_v26  ;;  %v1710_v32 = vsel %vm1707_vm7, %v1709_v11, %v1705_v31  ;;  %v4558_v17 = vor.u32 %v5126_v13, %v4557_v55  ;;  %v5122_v24 = vld [vmem:[#allocation9 + $0x7c] sm:$0xf]  ;;  %v4546_v25 = vor.u32 %v5123_v22, %v4545_v36  ;;  %v5119_v31 = vld [vmem:[#allocation9 + $0x64] sm:$0xf] }
 0x3c2   :  { %v1716_v40 = vsub.f32 1.0, %v1710_v32  ;;  %v1718_v28 = vmul.f32 %v1710_v32, %v5832_v21  ;;  %v4554_v21 = vor.u32 %v5124_v62, %v4553_v51  ;;  %v4550_v26 = vor.u32 %v5122_v24, %v4547_v56  ;;  %v4535_v32 = vld [vmem:[#allocation9 + $0x6c] sm:$0xf0]  ;;  %v4523_v51 = vld [vmem:[#allocation9 + $0x54] sm:$0xf0] }
 0x3c3   :  { %v1714_v30 = vadd.f32 %v1713_v27, %v5765_v39  ;;  %v4577_v39 = vld [vmem:[#allocation9 + $0xb0] sm:$0xf]  ;;  %2138 = vmatpush.bf16.msrb.mxu0 %v4558_v17  ;;  %v5112_v27 = vld [vmem:[#allocation9 + $0x28] sm:$0xf0]  ;;  %v4526_v63 = vor.u32 %v5116_v49, %v4523_v51  ;;  %v5111_v55 = vld [vmem:[#allocation9 + $0x20] sm:$0xf0] }
 0x3c4   :  { %v4578_v46 = vor.u32 %v5130_v54, %v4577_v39  ;;  %2152 = vmatpush.bf16.msrb.mxu1 %v4550_v26  ;;  %v4506_v42 = vor.u32 %v5112_v27, %v4505_v14  ;;  %v4781_v62 = vld [vmem:[#allocation12 + $0xa8] sm:$0xf]  ;;  %v5110_v17 = vld [vmem:[#allocation9 + $0x1c] sm:$0xf]  ;;  %v4485_v24 = vld [vmem:[#allocation9] sm:$0xf] }
 0x3c5   :  { %5279 = vtanh.f32 %v1714_v30  ;;  %v5120_v30 = vld [vmem:[#allocation9 + $0x68] sm:$0xf0]  ;;  %v5107_v14 = vld [vmem:[#allocation9 + $0x4] sm:$0xf]  ;;  %v4487_v27 = vld [vmem:[#allocation9 + $0xc] sm:$0xf0] }
 0x3c6   :  { %2163 = vmatpush.bf16.msrb.mxu2 %v4578_v46  ;;  %v4534_v11 = vor.u32 %v5120_v30, %v4533_v29  ;;  %v4521_v46 = vld [vmem:[#allocation9 + $0x48] sm:$0xf]  ;;  %v5108_v26 = vld [vmem:[#allocation9 + $0x8] sm:$0xf0]  ;;  %v5172_v29 = vld [vmem:[#allocation12 + $0x68] sm:$0xf0] }
 0x3c7   :  { %2139 = vmatpush.bf16.msrb.mxu0 %v4546_v25  ;;  %v4502_v25 = vor.u32 %v5110_v17, %v4499_v16  ;;  %v5166_v49 = vld [vmem:[#allocation12 + $0x38] sm:$0xf0]  ;;  %v427_v17 = vadd.f32 %v5767_v45, %v5744_v6 }
 0x3ca   :  { %2164 = vmatpush.bf16.msrb.mxu2 %v4566_v33  ;;  %v4522_v33 = vor.u32 %v5117_v47, %v4521_v46  ;;  %v4721_v47 = vld [vmem:[#allocation12 + $0x30] sm:$0xf] }
 0x3cb   :  { %v5280_v41 = vpop.eup %5279  ;;  %2140 = vmatpush.bf16.msrb.mxu0 %v4534_v11  ;;  %v4486_v11 = vor.u32 %v5108_v26, %v4485_v24 }
 0x3cc   :  { %v1717_v57 = vmul.f32 %v5280_v41, %v1716_v40  ;;  %v369_v40 = vadd.f32 %v5735_v35, %v5715_v38  ;;  %v4538_v41 = vor.u32 %v5119_v31, %v4535_v32  ;;  %v4490_v32 = vor.u32 %v5107_v14, %v4487_v27 }
 0x3ce   :  { %v5850_v44 = vadd.f32 %v1718_v28, %v1717_v57  ;;  %2165 = vmatpush.bf16.msrb.mxu2 %v4554_v21  ;;  %v4493_v28 = vld [vmem:[#allocation9 + $0x8] sm:$0xf]  ;;  %2153 = vmatpush.bf16.msrb.mxu1 %v4538_v41  ;;  %v5181_v21 = vld [vmem:[#allocation12 + $0xb0] sm:$0xf0] }
 0x3cf   :  { %v4782_v35 = vor.u32 %v5181_v21, %v4781_v62  ;;  %2141 = vmatpush.bf16.msrb.mxu0 %v4522_v33  ;;  %v4722_v62 = vor.u32 %v5166_v49, %v4721_v47  ;;  %v4709_v21 = vld [vmem:[#allocation12 + $0x18] sm:$0xf]  ;;  %v4667_v49 = vld [vmem:[#allocation9 + $0xa8] sm:$0xf] }
 0x3d0   :  { %v1720_v8 = vpack.c.bf16 %v5850_v44, %v5850_v44 }
 0x3d2   :  { %1721 = vst [vmem:[#allocation2 + $0x10] sm:$0xf] %v1720_v8  ;;  %1893 = vmatmul.bf16.vlgmr.msra.gmra.mxu1 %v1720_v8  ;;  %1906 = vmatmul.bf16.vlgmr.msra.gmra.mxu2 %v1720_v8 }
 0x3d3   :  { %1919 = vmatmul.bf16.vlgmr.msrb.gmra.mxu3 %v1720_v8  ;;  %2166 = vmatpush.bf16.msrb.mxu2 %v4542_v50  ;;  %v5109_v8 = vld [vmem:[#allocation9 + $0x10] sm:$0xf0]  ;;  %v4509_v50 = vld [vmem:[#allocation9 + $0x30] sm:$0xf] }
 0x3d4   :  { %v4494_v54 = vor.u32 %v5109_v8, %v4493_v28  ;;  %v4510_v1 = vor.u32 %v5114_v0, %v4509_v50  ;;  %2154 = vmatpush.bf16.msrb.mxu1 %v4526_v63  ;;  %v4733_v8 = vld [vmem:[#allocation12 + $0x48] sm:$0xf] }
 0x3d6   :  { %2142 = vmatpush.bf16.msrb.mxu0 %v4510_v1 }
 0x3d7   :  { %2167 = vmatpush.bf16.msrb.mxu2 %v4530_v48  ;;  %v4497_v48 = vld [vmem:[#allocation9 + $0x18] sm:$0xf] }
 0x3d8   :  { %v4498_v22 = vor.u32 %v5111_v55, %v4497_v48  ;;  %2155 = vmatpush.bf16.msrb.mxu1 %v4514_v9 }
 0x3da   :  { %2143 = vmatpush.bf16.msrb.mxu0 %v4498_v22 }
 0x3db   :  { %2168 = vmatpush.bf16.msrb.mxu2 %v4518_v15  ;;  %v5175_v15 = vld [vmem:[#allocation12 + $0x80] sm:$0xf0] }
 0x3dc   :  { %v4758_v56 = vor.u32 %v5175_v15, %v4757_v37  ;;  %2156 = vmatpush.bf16.msrb.mxu1 %v4502_v25 }
 0x3de   :  { %2144 = vmatpush.bf16.msrb.mxu0 %v4486_v11  ;;  %v4663_v11 = vld [vmem:[#allocation9 + $0x98] sm:$0xf] }
 0x3df   :  { %2169 = vmatpush.bf16.msrb.mxu2 %v4506_v42  ;;  %v4745_v42 = vld [vmem:[#allocation12 + $0x60] sm:$0xf] }
 0x3e0   :  { %2157 = vmatpush.bf16.msrb.mxu1 %v4490_v32 }
 0x3e3   :  { %2170 = vmatpush.bf16.msrb.mxu2 %v4494_v54 }
 0x3e7   :  { %2678 = vmatpush.bf16.msra.mxu2 %v4782_v35 }
 0x3eb   :  { %2679 = vmatpush.bf16.msra.mxu2 %v4770_v20  ;;  %v4698_v20 = vor.u32 %v5160_v5, %v4697_v4  ;;  %v4657_v5 = vld [vmem:[#allocation9 + $0x9c] sm:$0xf0] }
 0x3ef   :  { %2680 = vmatpush.bf16.msra.mxu2 %v4758_v56 }
 0x44f   :  { %v1894_v57 = vpop.f32.mrf.mxu1 }
 0x450   :  { %v1924_v39 = vadd.f32 %v1894_v57, %v369_v40  ;;  %v4746_v40 = vor.u32 %v5172_v29, %v4745_v42  ;;  %v5866_v29 = vld [vmem:[#allocation2] sm:$0xff] }
 0x452   :  { %v4481_v61 = vmul.f32 -1.442695, %v1924_v39  ;;  %2681 = vmatpush.bf16.msra.mxu2 %v4746_v40  ;;  %v5169_v39 = vld [vmem:[#allocation12 + $0x50] sm:$0xf0]  ;;  %v5151_v40 = vld [vmem:[#allocation9 + $0xa0] sm:$0xf0] }
 0x453   :  { %v4734_v46 = vor.u32 %v5169_v39, %v4733_v8  ;;  %v5869_v8 = vld [vmem:[#allocation2 + $0x8] sm:$0xff] }
 0x454   :  { %5281 = vpow2.f32 %v4481_v61  ;;  %v5163_v61 = vld [vmem:[#allocation12 + $0x20] sm:$0xf0] }
 0x455   :  { %v1907_v13 = vpop.f32.mrf.mxu2  ;;  %v4710_v1 = vor.u32 %v5163_v61, %v4709_v21  ;;  %v4669_v21 = vld [vmem:[#allocation9 + $0xb4] sm:$0xf0] }
 0x456   :  { %v1925_v18 = vadd.f32 %v1907_v13, %v398_v7  ;;  %v1920_v43 = vpop.f32.mrf.mxu3  ;;  %2682 = vmatpush.bf16.msra.mxu2 %v4734_v46  ;;  %v5145_v46 = vld [vmem:[#allocation9 + $0x70] sm:$0xf0] }
 0x457   :  { %v1896_v36 = vpop.f32.mrf.mxu1  ;;  %v1964_v48 = vadd.f32 %v5844_v58, %v1920_v43 }
 0x458   :  { %v4482_v59 = vmul.f32 -1.442695, %v1925_v18 }
 0x45a   :  { %v5282_v30 = vpop.eup %5281  ;;  %5283 = vpow2.f32 %v4482_v59  ;;  %2683 = vmatpush.bf16.msra.mxu2 %v4722_v62 }
 0x45b   :  { %v1932_v31 = vadd.f32 1.0, %v5282_v30  ;;  %v4675_v30 = vld [vmem:[#allocation9 + $0xb0] sm:$0xf] }
 0x45d   :  { %5285 = vrcp.f32 %v1932_v31  ;;  %v1909_v41 = vpop.f32.mrf.mxu2  ;;  %v1945_v35 = vand.u32 2147483648, %v1932_v31  ;;  %v1943_v0 = vand.u32 2147483647, %v1932_v31  ;;  %vm1939_vm9 = vweird.f32 %v1932_v31 }
 0x45e   :  { %v1922_v57 = vpop.f32.mrf.mxu3  ;;  %2684 = vmatpush.bf16.msra.mxu2 %v4710_v1  ;;  %v4651_v41 = vld [vmem:[#allocation9 + $0x80] sm:$0xf]  ;;  %v5150_v1 = vld [vmem:[#allocation9 + $0x98] sm:$0xf0] }
 0x45f   :  { %v1946_v10 = vor.u32 1.1754944e-38, %v1945_v35  ;;  %vm1944_vm11 = vcmp.eq.f32.partialorder %v1943_v0, 8.507059e+37  ;;  %v5148_v57 = vld [vmem:[#allocation9 + $0x88] sm:$0xf0]  ;;  %v5142_v35 = vld [vmem:[#allocation9 + $0x58] sm:$0xf0] }
 0x460   :  { %v5284_v28 = vpop.eup %5283  ;;  %v4655_v0 = vld [vmem:[#allocation9 + $0x90] sm:$0xf] }
 0x461   :  { %v1933_v54 = vadd.f32 1.0, %v5284_v28  ;;  %v4652_v28 = vor.u32 %v5148_v57, %v4651_v41  ;;  %v4656_v4 = vor.u32 %v5150_v1, %v4655_v0  ;;  %v4597_v0 = vld [vmem:[#allocation9 + $0x24] sm:$0xf0]  ;;  %v4853_v1 = vld [vmem:[#allocation13 + $0x78] sm:$0xf] }
 0x462   :  { %2685 = vmatpush.bf16.msra.mxu2 %v4698_v20  ;;  %v5146_v20 = vld [vmem:[#allocation9 + $0x7c] sm:$0xf] }
 0x463   :  { %v5286_v33 = vpop.eup %5285  ;;  %5287 = vrcp.f32 %v1933_v54  ;;  %v1960_v18 = vand.u32 2147483648, %v1933_v54  ;;  %v1958_v36 = vand.u32 2147483647, %v1933_v54  ;;  %vm1954_vm13 = vweird.f32 %v1933_v54 }
 0x464   :  { %v1935_v51 = vmul.f32 %v5286_v33, %v1932_v31  ;;  %vm1940_vm8 = vweird.f32 %v5286_v33  ;;  %v5154_v31 = vld [vmem:[#allocation9 + $0xb8] sm:$0xf0] }
 0x465   :  { %vm1941_vm10 = vmor %vm1939_vm9, %vm1940_vm8  ;;  %v1961_v43 = vor.u32 1.1754944e-38, %v1960_v18  ;;  %vm1959_vm15 = vcmp.eq.f32.partialorder %v1958_v36, 8.507059e+37  ;;  %v4676_v32 = vor.u32 %v5154_v31, %v4675_v30  ;;  %v4603_v18 = vld [vmem:[#allocation9 + $0x20] sm:$0xf]  ;;  %v5141_v30 = vld [vmem:[#allocation9 + $0x50] sm:$0xf0] }
 0x466   :  { %v1936_v63 = vsub.f32 1.0, %v1935_v51  ;;  %v5152_v51 = vld [vmem:[#allocation9 + $0xac] sm:$0xf] }
 0x467   :  { %2415 = vmatpush.bf16.msra.mxu1 %v4676_v32  ;;  %v4672_v61 = vor.u32 %v5152_v51, %v4669_v21  ;;  %v5140_v31 = vld [vmem:[#allocation9 + $0x4c] sm:$0xf]  ;;  %v4621_v32 = vld [vmem:[#allocation9 + $0x54] sm:$0xf0] }
 0x468   :  { %v1937_v50 = vmul.f32 %v5286_v33, %v1936_v63  ;;  %v4627_v63 = vld [vmem:[#allocation9 + $0x50] sm:$0xf]  ;;  %v4624_v41 = vor.u32 %v5140_v31, %v4621_v32  ;;  %v4771_v31 = vld [vmem:[#allocation12 + $0x9c] sm:$0xf0]  ;;  %v5179_v32 = vld [vmem:[#allocation12 + $0xa0] sm:$0xf0] }
 0x469   :  { %v5288_v2 = vpop.eup %5287  ;;  %2402 = vmatpush.bf16.msra.mxu0 %v4672_v61  ;;  %v4595_v61 = vld [vmem:[#allocation9 + $0x18] sm:$0xf] }
 0x46a   :  { %v1950_v7 = vmul.f32 %v5288_v2, %v1933_v54  ;;  %v1938_v9 = vadd.f32 %v5286_v33, %v1937_v50  ;;  %vm1955_vm12 = vweird.f32 %v5288_v2  ;;  %v4639_v54 = vld [vmem:[#allocation9 + $0x68] sm:$0xf]  ;;  %v4628_v50 = vor.u32 %v5142_v35, %v4627_v63  ;;  %v5135_v63 = vld [vmem:[#allocation9 + $0x20] sm:$0xf0]  ;;  %v5134_v35 = vld [vmem:[#allocation9 + $0x1c] sm:$0xf] }
 0x46b   :  { %vm1956_vm14 = vmor %vm1954_vm13, %vm1955_vm12  ;;  %v4640_v47 = vor.u32 %v5145_v46, %v4639_v54  ;;  %v5138_v54 = vld [vmem:[#allocation9 + $0x38] sm:$0xf0] }
 0x46c   :  { %v1951_v55 = vsub.f32 1.0, %v1950_v7  ;;  %v1942_v13 = vsel %vm1941_vm10, %v5286_v33, %v1938_v9  ;;  %v5153_v33 = vld [vmem:[#allocation9 + $0xb0] sm:$0xf0]  ;;  %v4615_v9 = vld [vmem:[#allocation9 + $0x38] sm:$0xf] }
 0x46d   :  { %v1947_v16 = vsel %vm1944_vm11, %v1946_v10, %v1942_v13  ;;  %v4668_v62 = vor.u32 %v5153_v33, %v4667_v49  ;;  %v5139_v10 = vld [vmem:[#allocation9 + $0x40] sm:$0xf0]  ;;  %v4609_v49 = vld [vmem:[#allocation9 + $0x3c] sm:$0xf0]  ;;  %v4865_v33 = vld [vmem:[#allocation13 + $0x90] sm:$0xf] }
 0x46e   :  { %v1952_v37 = vmul.f32 %v5288_v2, %v1951_v55  ;;  %v1965_v15 = vmul.f32 %v1964_v48, %v1947_v16  ;;  %v4616_v48 = vor.u32 %v5139_v10, %v4615_v9  ;;  %v4643_v55 = vld [vmem:[#allocation9 + $0x78] sm:$0xf]  ;;  %v5147_v13 = vld [vmem:[#allocation9 + $0x80] sm:$0xf0]  ;;  %v4645_v16 = vld [vmem:[#allocation9 + $0x84] sm:$0xf0] }
 0x46f   :  { %2389 = vmatpush.bf16.msra.mxu3 %v4668_v62  ;;  %v5202_v62 = vld [vmem:[#allocation13 + $0x98] sm:$0xf0] }
 0x470   :  { %v1966_v22 = vadd.f32 %v1965_v15, %v427_v17  ;;  %v1953_v24 = vadd.f32 %v5288_v2, %v1952_v37  ;;  %v4644_v17 = vor.u32 %v5147_v13, %v4643_v55  ;;  %v4648_v37 = vor.u32 %v5146_v20, %v4645_v16  ;;  %v5136_v15 = vld [vmem:[#allocation9 + $0x28] sm:$0xf0]  ;;  %v5131_v13 = vld [vmem:[#allocation9 + $0x4] sm:$0xf] }
 0x471   :  { %v4604_v36 = vor.u32 %v5136_v15, %v4603_v18  ;;  %v5878_v21 = vor.u32 %v5202_v62, %v4865_v33  ;;  %v5132_v55 = vld [vmem:[#allocation9 + $0x8] sm:$0xf0]  ;;  %v4841_v18 = vld [vmem:[#allocation13 + $0x60] sm:$0xf]  ;;  %v5196_v15 = vld [vmem:[#allocation13 + $0x68] sm:$0xf0] }
 0x472   :  { %5289 = vtanh.f32 %v1966_v22  ;;  %v1957_v59 = vsel %vm1956_vm14, %v5288_v2, %v1953_v24  ;;  %v5149_v2 = vld [vmem:[#allocation9 + $0x94] sm:$0xf]  ;;  %v4631_v22 = vld [vmem:[#allocation9 + $0x60] sm:$0xf]  ;;  %v5144_v24 = vld [vmem:[#allocation9 + $0x68] sm:$0xf0] }
 0x473   :  { %v1962_v25 = vsel %vm1959_vm15, %v1961_v43, %v1957_v59  ;;  %v4660_v7 = vor.u32 %v5149_v2, %v4657_v5  ;;  %2390 = vmatpush.bf16.msra.mxu3 %v4656_v4  ;;  %v5143_v43 = vld [vmem:[#allocation9 + $0x64] sm:$0xf]  ;;  %v4632_v59 = vor.u32 %v5144_v24, %v4631_v22  ;;  %v5199_v2 = vld [vmem:[#allocation13 + $0x80] sm:$0xf0]  ;;  %v4600_v4 = vor.u32 %v5134_v35, %v4597_v0  ;;  %v4783_v24 = vld [vmem:[#allocation12 + $0xb4] sm:$0xf0] }
 0x474   :  { %v1968_v56 = vsub.f32 1.0, %v1962_v25  ;;  %v1970_v45 = vmul.f32 %v1962_v25, %v5850_v44  ;;  %v4664_v44 = vor.u32 %v5151_v40, %v4663_v11  ;;  %v4633_v25 = vld [vmem:[#allocation9 + $0x6c] sm:$0xf0]  ;;  %v4877_v40 = vld [vmem:[#allocation13 + $0xa8] sm:$0xf]  ;;  %v5881_v5 = vor.u32 %v5199_v2, %v4853_v1 }
 0x475   :  { %2403 = vmatpush.bf16.msra.mxu0 %v4660_v7  ;;  %v401_v7 = vadd.f32 %v5786_v60, %v5724_v52  ;;  %v5887_v22 = vor.u32 %v5196_v15, %v4841_v18  ;;  %v5180_v60 = vld [vmem:[#allocation12 + $0xac] sm:$0xf]  ;;  %v4765_v62 = vld [vmem:[#allocation12 + $0x80] sm:$0xf]  ;;  %v5187_v0 = vld [vmem:[#allocation13 + $0x20] sm:$0xf0] }
 0x476   :  { %2416 = vmatpush.bf16.msra.mxu1 %v4664_v44  ;;  %v5205_v44 = vld [vmem:[#allocation13 + $0xb0] sm:$0xf0]  ;;  %v5171_v1 = vld [vmem:[#allocation12 + $0x64] sm:$0xf]  ;;  %v5184_v18 = vld [vmem:[#allocation13 + $0x8] sm:$0xf0] }
 0x477   :  { %2391 = vmatpush.bf16.msra.mxu3 %v4644_v17  ;;  %v5875_v57 = vor.u32 %v5205_v44, %v4877_v40 }
 0x478   :  { %v5290_v26 = vpop.eup %5289 }
 0x479   :  { %v1969_v14 = vmul.f32 %v5290_v26, %v1968_v56  ;;  %2404 = vmatpush.bf16.msra.mxu0 %v4648_v37  ;;  %v4636_v56 = vor.u32 %v5143_v43, %v4633_v25  ;;  %v4591_v26 = vld [vmem:[#allocation9 + $0x8] sm:$0xf]  ;;  %v4585_v37 = vld [vmem:[#allocation9 + $0xc] sm:$0xf0]  ;;  %v4789_v43 = vld [vmem:[#allocation12 + $0xb0] sm:$0xf] }
 0x47a   :  { %2417 = vmatpush.bf16.msra.mxu1 %v4652_v28  ;;  %v4607_v28 = vld [vmem:[#allocation9 + $0x30] sm:$0xf] }
 0x47b   :  { %v5862_v27 = vadd.f32 %v1970_v45, %v1969_v14  ;;  %2392 = vmatpush.bf16.msra.mxu3 %v4632_v59  ;;  %v5133_v14 = vld [vmem:[#allocation9 + $0x10] sm:$0xf0]  ;;  %v4608_v46 = vor.u32 %v5138_v54, %v4607_v28 }
 0x47c   :  { %v4592_v45 = vor.u32 %v5133_v14, %v4591_v26  ;;  %v5182_v26 = vld [vmem:[#allocation12 + $0xb8] sm:$0xf0]  ;;  %v4829_v14 = vld [vmem:[#allocation13 + $0x48] sm:$0xf] }
 0x47d   :  { %v1972_v42 = vpack.c.bf16 %v5862_v27, %v5862_v27  ;;  %2405 = vmatpush.bf16.msra.mxu0 %v4636_v56  ;;  %v4786_v56 = vor.u32 %v5180_v60, %v4783_v24  ;;  %v4735_v60 = vld [vmem:[#allocation12 + $0x54] sm:$0xf0] }
 0x47e   :  { %2418 = vmatpush.bf16.msra.mxu1 %v4640_v47  ;;  %v5137_v47 = vld [vmem:[#allocation9 + $0x34] sm:$0xf] }
 0x47f   :  { %1973 = vst [vmem:[#allocation2 + $0x14] sm:$0xf] %v1972_v42  ;;  %2145 = vmatmul.bf16.vlgmr.msrb.gmra.mxu0 %v1972_v42  ;;  %2158 = vmatmul.bf16.vlgmr.msrb.gmra.mxu1 %v1972_v42  ;;  %v4612_v51 = vor.u32 %v5137_v47, %v4609_v49  ;;  %v5190_v47 = vld [vmem:[#allocation13 + $0x38] sm:$0xf0] }
 0x480   :  { %2171 = vmatmul.bf16.vlgmr.msrb.gmra.mxu2 %v1972_v42  ;;  %v4619_v42 = vld [vmem:[#allocation9 + $0x48] sm:$0xf]  ;;  %v5174_v49 = vld [vmem:[#allocation12 + $0x7c] sm:$0xf] }
 0x481   :  { %v4620_v11 = vor.u32 %v5141_v30, %v4619_v42  ;;  %2406 = vmatpush.bf16.msra.mxu0 %v4624_v41  ;;  %v5177_v42 = vld [vmem:[#allocation12 + $0x94] sm:$0xf] }
 0x482   :  { %2419 = vmatpush.bf16.msra.mxu1 %v4628_v50  ;;  %v4596_v50 = vor.u32 %v5135_v63, %v4595_v61  ;;  %v4774_v40 = vor.u32 %v5177_v42, %v4771_v31  ;;  %v5176_v61 = vld [vmem:[#allocation12 + $0x88] sm:$0xf0] }
 0x483   :  { %2393 = vmatpush.bf16.msra.mxu3 %v4620_v11  ;;  %v4777_v11 = vld [vmem:[#allocation12 + $0x98] sm:$0xf]  ;;  %v4766_v35 = vor.u32 %v5176_v61, %v4765_v62  ;;  %v4717_v61 = vld [vmem:[#allocation12 + $0x20] sm:$0xf] }
 0x484   :  { %v4778_v44 = vor.u32 %v5179_v32, %v4777_v11 }
 0x485   :  { %2407 = vmatpush.bf16.msra.mxu0 %v4612_v51  ;;  %v4759_v51 = vld [vmem:[#allocation12 + $0x84] sm:$0xf0] }
 0x486   :  { %v5872_v39 = vld [vmem:[#allocation2 + $0x10] sm:$0xff]  ;;  %2420 = vmatpush.bf16.msra.mxu1 %v4616_v48  ;;  %v4583_v48 = vld [vmem:[#allocation9] sm:$0xf]  ;;  %v4762_v63 = vor.u32 %v5174_v49, %v4759_v51 }
 0x487   :  { %2394 = vmatpush.bf16.msra.mxu3 %v4608_v46  ;;  %v4584_v16 = vor.u32 %v5132_v55, %v4583_v48  ;;  %v4817_v46 = vld [vmem:[#allocation13 + $0x30] sm:$0xf] }
 0x488   :  { %v5895_v33 = vor.u32 %v5190_v47, %v4817_v46  ;;  %v5162_v46 = vld [vmem:[#allocation12 + $0x1c] sm:$0xf]  ;;  %v4711_v47 = vld [vmem:[#allocation12 + $0x24] sm:$0xf0] }
 0x489   :  { %2408 = vmatpush.bf16.msra.mxu0 %v4600_v4  ;;  %v4747_v4 = vld [vmem:[#allocation12 + $0x6c] sm:$0xf0]  ;;  %v4714_v62 = vor.u32 %v5162_v46, %v4711_v47  ;;  %v5192_v46 = vld [vmem:[#allocation13 + $0x4c] sm:$0xf]  ;;  %v4831_v47 = vld [vmem:[#allocation13 + $0x54] sm:$0xf0] }
 0x48a   :  { %2421 = vmatpush.bf16.msra.mxu1 %v4604_v36  ;;  %v4588_v36 = vor.u32 %v5131_v13, %v4585_v37  ;;  %v4793_v37 = vld [vmem:[#allocation13] sm:$0xf] }
 0x48b   :  { %2395 = vmatpush.bf16.msra.mxu3 %v4596_v50  ;;  %v4805_v50 = vld [vmem:[#allocation13 + $0x18] sm:$0xf]  ;;  %v5904_v15 = vor.u32 %v5184_v18, %v4793_v37 }
 0x48c   :  { %v5900_v13 = vor.u32 %v5187_v0, %v4805_v50  ;;  %v5159_v0 = vld [vmem:[#allocation12 + $0x4] sm:$0xf] }
 0x48d   :  { %2409 = vmatpush.bf16.msra.mxu0 %v4588_v36  ;;  %v5168_v36 = vld [vmem:[#allocation12 + $0x4c] sm:$0xf] }
 0x48e   :  { %2422 = vmatpush.bf16.msra.mxu1 %v4592_v45  ;;  %v5193_v45 = vld [vmem:[#allocation13 + $0x50] sm:$0xf0]  ;;  %v4738_v24 = vor.u32 %v5168_v36, %v4735_v60 }
 0x48f   :  { %2396 = vmatpush.bf16.msra.mxu3 %v4584_v16  ;;  %v5890_v30 = vor.u32 %v5193_v45, %v4829_v14  ;;  %v4729_v14 = vld [vmem:[#allocation12 + $0x38] sm:$0xf]  ;;  %v5167_v45 = vld [vmem:[#allocation12 + $0x40] sm:$0xf0] }
 0x490   :  { %2686 = vmatmul.bf16.vlgmr.msra.gmra.mxu2 %v5866_v29 }
 0x492   :  { %2953 = vmatpush.bf16.msrb.mxu1 %v5875_v57 }
 0x493   :  { %2707 = vmatpush.bf16.msrb.mxu3 %v4786_v56  ;;  %v5165_v56 = vld [vmem:[#allocation12 + $0x34] sm:$0xf] }
 0x496   :  { %2954 = vmatpush.bf16.msrb.mxu1 %v5878_v21 }
 0x497   :  { %2708 = vmatpush.bf16.msrb.mxu3 %v4774_v40  ;;  %v4730_v40 = vor.u32 %v5167_v45, %v4729_v14  ;;  %v4879_v14 = vld [vmem:[#allocation13 + $0xb4] sm:$0xf0] }
 0x49a   :  { %2955 = vmatpush.bf16.msrb.mxu1 %v5881_v5 }
 0x49b   :  { %2709 = vmatpush.bf16.msrb.mxu3 %v4762_v63  ;;  %v5164_v63 = vld [vmem:[#allocation12 + $0x28] sm:$0xf0] }
 0x49c   :  { %v4718_v50 = vor.u32 %v5164_v63, %v4717_v61  ;;  %v5186_v63 = vld [vmem:[#allocation13 + $0x1c] sm:$0xf] }
 0x49e   :  { %2956 = vmatpush.bf16.msrb.mxu1 %v5887_v22 }
 0x4a0   :  { %2691 = vmatmul.bf16.gmra.mxu2 %v5869_v8 }
 0x4a2   :  { %2957 = vmatpush.bf16.msrb.mxu1 %v5890_v30 }
 0x4a6   :  { %2958 = vmatpush.bf16.msrb.mxu1 %v5895_v33 }
 0x4aa   :  { %2959 = vmatpush.bf16.msrb.mxu1 %v5900_v13 }
 0x4ae   :  { %2960 = vmatpush.bf16.msrb.mxu1 %v5904_v15 }
 0x4b0   :  { %2696 = vmatmul.bf16.gmra.mxu2 %v5872_v39 }
 0x4fc   :  { %v2146_v9 = vpop.f32.mrf.mxu0  ;;  %v2159_v10 = vpop.f32.mrf.mxu1 }
 0x4fd   :  { %v2176_v20 = vadd.f32 %v2146_v9, %v5741_v3  ;;  %v2177_v17 = vadd.f32 %v2159_v10, %v401_v7  ;;  %v4790_v3 = vor.u32 %v5182_v26, %v4789_v43  ;;  %v4753_v7 = vld [vmem:[#allocation12 + $0x68] sm:$0xf]  ;;  %v5173_v9 = vld [vmem:[#allocation12 + $0x70] sm:$0xf0]  ;;  %v4741_v43 = vld [vmem:[#allocation12 + $0x50] sm:$0xf] }
 0x4fe   :  { %v4723_v26 = vld [vmem:[#allocation12 + $0x3c] sm:$0xf0] }
 0x4ff   :  { %v4579_v59 = vmul.f32 -1.442695, %v2176_v20  ;;  %v4580_v25 = vmul.f32 -1.442695, %v2177_v17  ;;  %2736 = vmatpush.bf16.msrb.mxu0 %v4790_v3  ;;  %v4750_v20 = vor.u32 %v5171_v1, %v4747_v4  ;;  %v4754_v17 = vor.u32 %v5173_v9, %v4753_v7  ;;  %v4699_v1 = vld [vmem:[#allocation12 + $0xc] sm:$0xf0] }
 0x500   :  { %v4726_v11 = vor.u32 %v5165_v56, %v4723_v26  ;;  %v4705_v4 = vld [vmem:[#allocation12 + $0x8] sm:$0xf]  ;;  %v5161_v7 = vld [vmem:[#allocation12 + $0x10] sm:$0xf0] }
 0x501   :  { %5291 = vpow2.f32 %v4579_v59  ;;  %2710 = vmatpush.bf16.msrb.mxu3 %v4750_v20  ;;  %v5170_v59 = vld [vmem:[#allocation12 + $0x58] sm:$0xf0]  ;;  %v4706_v18 = vor.u32 %v5161_v7, %v4705_v4 }
 0x502   :  { %5293 = vpow2.f32 %v4580_v25  ;;  %v4742_v25 = vor.u32 %v5170_v59, %v4741_v43 }
 0x503   :  { %v5892_v41 = vpop.f32.mrf.mxu2  ;;  %2737 = vmatpush.bf16.msrb.mxu0 %v4778_v44 }
 0x504   :  { %v2148_v28 = vpop.f32.mrf.mxu0  ;;  %v2161_v54 = vpop.f32.mrf.mxu1  ;;  %v2216_v20 = vadd.f32 %v5844_v58, %v5892_v41 }
 0x505   :  { %2711 = vmatpush.bf16.msrb.mxu3 %v4738_v24 }
 0x507   :  { %v5292_v2 = vpop.eup %5291  ;;  %2738 = vmatpush.bf16.msrb.mxu0 %v4766_v35 }
 0x508   :  { %v5294_v10 = vpop.eup %5293  ;;  %v2184_v48 = vadd.f32 1.0, %v5292_v2 }
 0x509   :  { %v5897_v55 = vadd.f32 1.0, %v5294_v10  ;;  %2712 = vmatpush.bf16.msrb.mxu3 %v4726_v11  ;;  %v5198_v11 = vld [vmem:[#allocation13 + $0x7c] sm:$0xf] }
 0x50a   :  { %5295 = vrcp.f32 %v2184_v48  ;;  %v2197_v54 = vand.u32 2147483648, %v2184_v48  ;;  %v2195_v51 = vand.u32 2147483647, %v2184_v48  ;;  %vm2191_vm1 = vweird.f32 %v2184_v48 }
 0x50b   :  { %5297 = vrcp.f32 %v5897_v55  ;;  %v2174_v16 = vpop.f32.mrf.mxu2  ;;  %2739 = vmatpush.bf16.msrb.mxu0 %v4754_v17  ;;  %v4702_v17 = vor.u32 %v5159_v0, %v4699_v1  ;;  %v2212_v36 = vand.u32 2147483648, %v5897_v55  ;;  %vm2206_vm5 = vweird.f32 %v5897_v55  ;;  %v4795_v0 = vld [vmem:[#allocation13 + $0xc] sm:$0xf0] }
 0x50c   :  { %v2198_v9 = vor.u32 1.1754944e-38, %v2197_v54  ;;  %vm2196_vm3 = vcmp.eq.f32.partialorder %v2195_v51, 8.507059e+37  ;;  %v2210_v60 = vand.u32 2147483647, %v5897_v55  ;;  %v5189_v51 = vld [vmem:[#allocation13 + $0x34] sm:$0xf] }
 0x50d   :  { %2713 = vmatpush.bf16.msrb.mxu3 %v4714_v62  ;;  %v2213_v58 = vor.u32 1.1754944e-38, %v2212_v36  ;;  %v4819_v62 = vld [vmem:[#allocation13 + $0x3c] sm:$0xf0] }
 0x50e   :  { %vm2211_vm7 = vcmp.eq.f32.partialorder %v2210_v60, 8.507059e+37  ;;  %v5947_v61 = vor.u32 %v5189_v51, %v4819_v62 }
 0x50f   :  { %2740 = vmatpush.bf16.msrb.mxu0 %v4742_v25 }
 0x510   :  { %v5296_v3 = vpop.eup %5295 }
 0x511   :  { %v5298_v42 = vpop.eup %5297  ;;  %v2187_v31 = vmul.f32 %v5296_v3, %v2184_v48  ;;  %vm2192_vm0 = vweird.f32 %v5296_v3  ;;  %2714 = vmatpush.bf16.msrb.mxu3 %v4702_v17 }
 0x512   :  { %v2202_v32 = vmul.f32 %v5298_v42, %v5897_v55  ;;  %vm2193_vm2 = vmor %vm2191_vm1, %vm2192_vm0  ;;  %vm2207_vm4 = vweird.f32 %v5298_v42 }
 0x513   :  { %v2188_v44 = vsub.f32 1.0, %v2187_v31  ;;  %2741 = vmatpush.bf16.msrb.mxu0 %v4730_v40  ;;  %vm2208_vm6 = vmor %vm2206_vm5, %vm2207_vm4  ;;  %v4867_v31 = vld [vmem:[#allocation13 + $0x9c] sm:$0xf0] }
 0x514   :  { %v2203_v28 = vsub.f32 1.0, %v2202_v32  ;;  %v4855_v32 = vld [vmem:[#allocation13 + $0x84] sm:$0xf0] }
 0x515   :  { %v2189_v49 = vmul.f32 %v5296_v3, %v2188_v44  ;;  %v5929_v40 = vor.u32 %v5198_v11, %v4855_v32  ;;  %v5195_v44 = vld [vmem:[#allocation13 + $0x64] sm:$0xf] }
 0x516   :  { %v2204_v35 = vmul.f32 %v5298_v42, %v2203_v28  ;;  %v4843_v28 = vld [vmem:[#allocation13 + $0x6c] sm:$0xf0] }
 0x517   :  { %v2190_v2 = vadd.f32 %v5296_v3, %v2189_v49  ;;  %2742 = vmatpush.bf16.msrb.mxu0 %v4718_v50  ;;  %v5934_v54 = vor.u32 %v5195_v44, %v4843_v28  ;;  %v5939_v49 = vor.u32 %v5192_v46, %v4831_v47  ;;  %v4837_v46 = vld [vmem:[#allocation13 + $0x50] sm:$0xf]  ;;  %v5194_v47 = vld [vmem:[#allocation13 + $0x58] sm:$0xf0] }
 0x518   :  { %v2205_v37 = vadd.f32 %v5298_v42, %v2204_v35  ;;  %v4807_v35 = vld [vmem:[#allocation13 + $0x24] sm:$0xf0] }
 0x519   :  { %v2194_v10 = vsel %vm2193_vm2, %v5296_v3, %v2190_v2  ;;  %v5204_v3 = vld [vmem:[#allocation13 + $0xac] sm:$0xf]  ;;  %v5952_v50 = vor.u32 %v5186_v63, %v4807_v35 }
 0x51a   :  { %v2199_v16 = vsel %vm2196_vm3, %v2198_v9, %v2194_v10  ;;  %v2209_v43 = vsel %vm2208_vm6, %v5298_v42, %v2205_v37  ;;  %v5201_v42 = vld [vmem:[#allocation13 + $0x94] sm:$0xf]  ;;  %v374_v10 = vadd.f32 %v5749_v12, %v5715_v38  ;;  %v4873_v12 = vld [vmem:[#allocation13 + $0x98] sm:$0xf] }
 0x51b   :  { %v2217_v48 = vmul.f32 %v2216_v20, %v2199_v16  ;;  %2743 = vmatpush.bf16.msrb.mxu0 %v4706_v18  ;;  %v2214_v41 = vsel %vm2211_vm7, %v2213_v58, %v2209_v43 }
 0x51c   :  { %v2220_v59 = vsub.f32 1.0, %v2214_v41  ;;  %v2222_v26 = vmul.f32 %v2214_v41, %v5862_v27  ;;  %v5924_v27 = vor.u32 %v5201_v42, %v4867_v31  ;;  %v5203_v41 = vld [vmem:[#allocation13 + $0xa0] sm:$0xf0]  ;;  %v4849_v42 = vld [vmem:[#allocation13 + $0x68] sm:$0xf] }
 0x51d   :  { %v2218_v24 = vadd.f32 %v2217_v48, %v5774_v53  ;;  %v5920_v53 = vor.u32 %v5204_v3, %v4879_v14  ;;  %v5197_v31 = vld [vmem:[#allocation13 + $0x70] sm:$0xf0] }
 0x51e   :  { %v6004_v44 = vor.u32 %v5197_v31, %v4849_v42 }
 0x51f   :  { %5299 = vtanh.f32 %v2218_v24 }
 0x525   :  { %v5300_v25 = vpop.eup %5299 }
 0x526   :  { %v2221_v56 = vmul.f32 %v5300_v25, %v2220_v59  ;;  %v5994_v59 = vor.u32 %v5203_v41, %v4873_v12 }
 0x528   :  { %v5916_v45 = vadd.f32 %v2222_v26, %v2221_v56  ;;  %v4861_v56 = vld [vmem:[#allocation13 + $0x80] sm:$0xf]  ;;  %v5200_v26 = vld [vmem:[#allocation13 + $0x88] sm:$0xf0] }
 0x529   :  { %v6000_v14 = vor.u32 %v5200_v26, %v4861_v56 }
 0x52a   :  { %v2224_v55 = vpack.c.bf16 %v5916_v45, %v5916_v45 }
 0x52c   :  { %2225 = vst [vmem:[#allocation2 + $0x18] sm:$0xf] %v2224_v55  ;;  %2397 = vmatmul.bf16.vlgmr.msra.gmra.mxu3 %v2224_v55  ;;  %2410 = vmatmul.bf16.vlgmr.msra.gmra.mxu0 %v2224_v55 }
 0x52d   :  { %2423 = vmatmul.bf16.vlgmr.msra.gmra.mxu1 %v2224_v55  ;;  %3047 = vmatpush.bf16.msra.mxu3 %v5875_v57 }
 0x52e   :  { %2966 = vmatpush.bf16.msra.mxu1 %v5920_v53  ;;  %3060 = vmatpush.bf16.msra.mxu0 %v5920_v53 }
 0x531   :  { %3048 = vmatpush.bf16.msra.mxu3 %v5878_v21 }
 0x532   :  { %2967 = vmatpush.bf16.msra.mxu1 %v5924_v27  ;;  %3061 = vmatpush.bf16.msra.mxu0 %v5924_v27 }
 0x535   :  { %3049 = vmatpush.bf16.msra.mxu3 %v5881_v5 }
 0x536   :  { %2968 = vmatpush.bf16.msra.mxu1 %v5929_v40  ;;  %3062 = vmatpush.bf16.msra.mxu0 %v5929_v40 }
 0x539   :  { %3050 = vmatpush.bf16.msra.mxu3 %v5887_v22 }
 0x53a   :  { %2969 = vmatpush.bf16.msra.mxu1 %v5934_v54  ;;  %3063 = vmatpush.bf16.msra.mxu0 %v5934_v54 }
 0x53c   :  { %2715 = vmatmul.bf16.vlgmr.msrb.gmra.mxu3 %v5866_v29  ;;  %2744 = vmatmul.bf16.vlgmr.msrb.gmra.mxu0 %v5866_v29  ;;  %v5183_v29 = vld [vmem:[#allocation13 + $0x4] sm:$0xf] }
 0x53d   :  { %2961 = vmatmul.bf16.vlgmr.msrb.gmra.mxu1 %v5607_v34  ;;  %3051 = vmatpush.bf16.msra.mxu3 %v5890_v30  ;;  %v5957_v1 = vor.u32 %v5183_v29, %v4795_v0  ;;  %v6010_v29 = vor.u32 %v5194_v47, %v4837_v46 }
 0x53e   :  { %2970 = vmatpush.bf16.msra.mxu1 %v5939_v49  ;;  %3064 = vmatpush.bf16.msra.mxu0 %v5939_v49 }
 0x541   :  { %3052 = vmatpush.bf16.msra.mxu3 %v5895_v33 }
 0x542   :  { %2971 = vmatpush.bf16.msra.mxu1 %v5947_v61  ;;  %3065 = vmatpush.bf16.msra.mxu0 %v5947_v61 }
 0x545   :  { %3053 = vmatpush.bf16.msra.mxu3 %v5900_v13 }
 0x546   :  { %2972 = vmatpush.bf16.msra.mxu1 %v5952_v50  ;;  %3066 = vmatpush.bf16.msra.mxu0 %v5952_v50 }
 0x549   :  { %3054 = vmatpush.bf16.msra.mxu3 %v5904_v15 }
 0x54a   :  { %2973 = vmatpush.bf16.msra.mxu1 %v5957_v1  ;;  %3067 = vmatpush.bf16.msra.mxu0 %v5957_v1 }
 0x54c   :  { %2720 = vmatmul.bf16.gmra.mxu3 %v5869_v8  ;;  %2749 = vmatmul.bf16.gmra.mxu0 %v5869_v8  ;;  %v403_v8 = vadd.f32 %v5788_v23, %v5724_v52  ;;  %v4885_v52 = vld [vmem:[#allocation13 + $0xb0] sm:$0xf]  ;;  %v5206_v23 = vld [vmem:[#allocation13 + $0xb8] sm:$0xf0] }
 0x54d   :  { %3151 = vmatpush.bf16.msrb.mxu3 %v5920_v53  ;;  %2974 = vmatmul.bf16.vlgmr.msra.gmra.mxu1 %v5607_v34  ;;  %v5987_v43 = vor.u32 %v5206_v23, %v4885_v52  ;;  %v5188_v23 = vld [vmem:[#allocation13 + $0x28] sm:$0xf0] }
 0x54f   :  { %2979 = vmatpush.bf16.msrb.mxu2 %v5987_v43  ;;  %3073 = vmatpush.bf16.msrb.mxu1 %v5987_v43 }
 0x550   :  { %3164 = vmatpush.bf16.msrb.mxu0 %v5987_v43 }
 0x551   :  { %3152 = vmatpush.bf16.msrb.mxu3 %v5924_v27 }
 0x553   :  { %2980 = vmatpush.bf16.msrb.mxu2 %v5994_v59  ;;  %3074 = vmatpush.bf16.msrb.mxu1 %v5994_v59 }
 0x554   :  { %3165 = vmatpush.bf16.msrb.mxu0 %v5994_v59 }
 0x555   :  { %3153 = vmatpush.bf16.msrb.mxu3 %v5929_v40 }
 0x557   :  { %2981 = vmatpush.bf16.msrb.mxu2 %v6000_v14  ;;  %3075 = vmatpush.bf16.msrb.mxu1 %v6000_v14 }
 0x558   :  { %3166 = vmatpush.bf16.msrb.mxu0 %v6000_v14 }
 0x559   :  { %3154 = vmatpush.bf16.msrb.mxu3 %v5934_v54 }
 0x55b   :  { %2982 = vmatpush.bf16.msrb.mxu2 %v6004_v44  ;;  %3076 = vmatpush.bf16.msrb.mxu1 %v6004_v44 }
 0x55c   :  { %2725 = vmatmul.bf16.gmra.mxu3 %v5872_v39  ;;  %2754 = vmatmul.bf16.gmra.mxu0 %v5872_v39 }
 0x55d   :  { %3155 = vmatpush.bf16.msrb.mxu3 %v5939_v49  ;;  %3167 = vmatpush.bf16.msrb.mxu0 %v6004_v44 }
 0x55f   :  { %2983 = vmatpush.bf16.msrb.mxu2 %v6010_v29  ;;  %3077 = vmatpush.bf16.msrb.mxu1 %v6010_v29 }
 0x561   :  { %3156 = vmatpush.bf16.msrb.mxu3 %v5947_v61  ;;  %3168 = vmatpush.bf16.msrb.mxu0 %v6010_v29 }
 0x565   :  { %3157 = vmatpush.bf16.msrb.mxu3 %v5952_v50 }
 0x569   :  { %3158 = vmatpush.bf16.msrb.mxu3 %v5957_v1 }
 0x5a9   :  { %v2411_v2 = vpop.f32.mrf.mxu0 }
 0x5aa   :  { %v2429_v4 = vadd.f32 %v2411_v2, %v403_v8  ;;  %v5978_v7 = vpop.f32.mrf.mxu1  ;;  %v4825_v2 = vld [vmem:[#allocation13 + $0x38] sm:$0xf] }
 0x5ac   :  { %v4678_v9 = vmul.f32 -1.442695, %v2429_v4  ;;  %v5191_v4 = vld [vmem:[#allocation13 + $0x40] sm:$0xf0] }
 0x5ae   :  { %5301 = vpow2.f32 %v4678_v9 }
 0x5af   :  { %v2398_v20 = vpop.f32.mrf.mxu3 }
 0x5b0   :  { %v2428_v39 = vadd.f32 %v2398_v20, %v374_v10  ;;  %v5392_v10 = vld [vmem:[%s6323_s4] ss:$0 sm:$0xff] }
 0x5b1   :  { %v2413_v17 = vpop.f32.mrf.mxu0  ;;  %v2468_v20 = vadd.f32 %v5392_v10, %v5978_v7  ;;  %v4813_v7 = vld [vmem:[#allocation13 + $0x20] sm:$0xf] }
 0x5b2   :  { %v4677_v16 = vmul.f32 -1.442695, %v2428_v39  ;;  %v2426_v37 = vpop.f32.mrf.mxu1  ;;  %v6034_v41 = vor.u32 %v5188_v23, %v4813_v7 }
 0x5b3   :  { %v6023_v37 = vor.u32 %v5191_v4, %v4825_v2 }
 0x5b4   :  { %v5302_v18 = vpop.eup %5301  ;;  %5303 = vpow2.f32 %v4677_v16 }
 0x5b5   :  { %v5982_v36 = vadd.f32 1.0, %v5302_v18  ;;  %v432_v18 = vadd.f32 %v5790_v19, %v5744_v6  ;;  %2984 = vmatpush.bf16.msrb.mxu2 %v6023_v37  ;;  %3078 = vmatpush.bf16.msrb.mxu1 %v6023_v37  ;;  %v4801_v19 = vld [vmem:[#allocation13 + $0x8] sm:$0xf] }
 0x5b6   :  { %3169 = vmatpush.bf16.msrb.mxu0 %v6023_v37 }
 0x5b7   :  { %v2400_v48 = vpop.f32.mrf.mxu3  ;;  %5305 = vrcp.f32 %v5982_v36  ;;  %vm2458_vm13 = vweird.f32 %v5982_v36 }
 0x5b8   :  { %v2464_v48 = vand.u32 2147483648, %v5982_v36 }
 0x5b9   :  { %2985 = vmatpush.bf16.msrb.mxu2 %v6034_v41  ;;  %3079 = vmatpush.bf16.msrb.mxu1 %v6034_v41 }
 0x5ba   :  { %v5304_v60 = vpop.eup %5303  ;;  %v5985_v24 = vpop.f32.mrf.mxu1  ;;  %v2465_v6 = vor.u32 1.1754944e-38, %v2464_v48  ;;  %3170 = vmatpush.bf16.msrb.mxu0 %v6034_v41 }
 0x5bb   :  { %v2436_v38 = vadd.f32 1.0, %v5304_v60  ;;  %v2462_v60 = vand.u32 2147483647, %v5982_v36 }
 0x5bd   :  { %5307 = vrcp.f32 %v2436_v38  ;;  %v5992_v58 = vpop.eup %5305  ;;  %v2449_v51 = vand.u32 2147483648, %v2436_v38  ;;  %v2447_v63 = vand.u32 2147483647, %v2436_v38  ;;  %vm2443_vm9 = vweird.f32 %v2436_v38 }
 0x5be   :  { %v2454_v25 = vmul.f32 %v5992_v58, %v5982_v36  ;;  %vm2459_vm12 = vweird.f32 %v5992_v58  ;;  %vm2463_vm15 = vcmp.eq.f32.partialorder %v2462_v60, 8.507059e+37 }
 0x5bf   :  { %v2450_v9 = vor.u32 1.1754944e-38, %v2449_v51  ;;  %vm2448_vm11 = vcmp.eq.f32.partialorder %v2447_v63, 8.507059e+37  ;;  %vm2460_vm14 = vmor %vm2458_vm13, %vm2459_vm12 }
 0x5c0   :  { %v2455_v32 = vsub.f32 1.0, %v2454_v25  ;;  %v5185_v25 = vld [vmem:[#allocation13 + $0x10] sm:$0xf0] }
 0x5c1   :  { %v6039_v36 = vor.u32 %v5185_v25, %v4801_v19 }
 0x5c2   :  { %v2964_v3 = vpop.f32.mrf.mxu1  ;;  %v2456_v35 = vmul.f32 %v5992_v58, %v2455_v32  ;;  %v2687_v32 = vpop.f32.mrf.mxu2 }
 0x5c3   :  { %v5308_v55 = vpop.eup %5307  ;;  %2986 = vmatpush.bf16.msrb.mxu2 %v6039_v36  ;;  %3080 = vmatpush.bf16.msrb.mxu1 %v6039_v36 }
 0x5c4   :  { %v2439_v11 = vmul.f32 %v5308_v55, %v2436_v38  ;;  %vm2444_vm8 = vweird.f32 %v5308_v55  ;;  %v2457_v17 = vadd.f32 %v5992_v58, %v2456_v35  ;;  %3171 = vmatpush.bf16.msrb.mxu0 %v6039_v36  ;;  %v2716_v35 = vpop.f32.mrf.mxu3 }
 0x5c5   :  { %vm2445_vm10 = vmor %vm2443_vm9, %vm2444_vm8 }
 0x5c6   :  { %v2440_v28 = vsub.f32 1.0, %v2439_v11  ;;  %v2461_v12 = vsel %vm2460_vm14, %v5992_v58, %v2457_v17 }
 0x5c7   :  { %v2466_v26 = vsel %vm2463_vm15, %v2465_v6, %v2461_v12  ;;  %3138 = vmatpush.bf16.msra.mxu2 %v5875_v57  ;;  %3229 = vmatpush.bf16.msra.mxu1 %v5875_v57 }
 0x5c8   :  { %v2441_v62 = vmul.f32 %v5308_v55, %v2440_v28  ;;  %v2472_v58 = vsub.f32 1.0, %v2466_v26 }
 0x5ca   :  { %v2442_v0 = vadd.f32 %v5308_v55, %v2441_v62  ;;  %v6013_v8 = vpop.f32.mrf.mxu1  ;;  %v6072_v28 = vpop.f32.mrf.mxu2 }
 0x5cb   :  { %3139 = vmatpush.bf16.msra.mxu2 %v5878_v21  ;;  %3230 = vmatpush.bf16.msra.mxu1 %v5878_v21 }
 0x5cc   :  { %v2446_v39 = vsel %vm2445_vm10, %v5308_v55, %v2442_v0  ;;  %v2474_v55 = vmul.f32 %v2466_v26, %v5916_v45  ;;  %v6100_v26 = vld [vmem:[%s6327_s8] ss:$0 sm:$0xff] }
 0x5cd   :  { %v2451_v16 = vsel %vm2448_vm11, %v2450_v9, %v2446_v39 }
 0x5ce   :  { %v2469_v52 = vmul.f32 %v2468_v20, %v2451_v16 }
 0x5cf   :  { %3140 = vmatpush.bf16.msra.mxu2 %v5881_v5  ;;  %3231 = vmatpush.bf16.msra.mxu1 %v5881_v5 }
 0x5d0   :  { %v2470_v38 = vadd.f32 %v2469_v52, %v432_v18 }
 0x5d2   :  { %5309 = vtanh.f32 %v2470_v38  ;;  %v2977_v56 = vpop.f32.mrf.mxu1  ;;  %v6077_v46 = vpop.f32.mrf.mxu2 }
 0x5d3   :  { %3141 = vmatpush.bf16.msra.mxu2 %v5887_v22  ;;  %3232 = vmatpush.bf16.msra.mxu1 %v5887_v22 }
 0x5d7   :  { %3142 = vmatpush.bf16.msra.mxu2 %v5890_v30  ;;  %3233 = vmatpush.bf16.msra.mxu1 %v5890_v30 }
 0x5d8   :  { %v5310_v3 = vpop.eup %5309 }
 0x5d9   :  { %v2473_v42 = vmul.f32 %v5310_v3, %v2472_v58 }
 0x5da   :  { %v6085_v0 = vpop.f32.mrf.mxu2 }
 0x5db   :  { %v2475_v31 = vadd.f32 %v2474_v55, %v2473_v42  ;;  %3143 = vmatpush.bf16.msra.mxu2 %v5895_v33  ;;  %3234 = vmatpush.bf16.msra.mxu1 %v5895_v33  ;;  %v2745_v42 = vpop.f32.mrf.mxu0 }
 0x5dd   :  { %v2476_v11 = vpack.c.bf16 %v2475_v31, %v2475_v31 }
 0x5df   :  { %2477 = vst [vmem:[#allocation2 + $0x1c] sm:$0xf] %v2476_v11  ;;  %3144 = vmatpush.bf16.msra.mxu2 %v5900_v13  ;;  %3235 = vmatpush.bf16.msra.mxu1 %v5900_v13 }
 0x5e2   :  { %v6089_v20 = vpop.f32.mrf.mxu2 }
 0x5e3   :  { %3145 = vmatpush.bf16.msra.mxu2 %v5904_v15  ;;  %3236 = vmatpush.bf16.msra.mxu1 %v5904_v15 }
 0x5e6   :  { %v5158_v45 = vld [vmem:[#allocation2 + $0x18] sm:$0xff] }
 0x5e7   :  { %2701 = vmatmul.bf16.gmra.mxu2 %v5158_v45  ;;  %2730 = vmatmul.bf16.gmra.mxu3 %v5158_v45 }
 0x5e8   :  { %2759 = vmatmul.bf16.gmra.mxu0 %v5158_v45 }
 0x5f7   :  { %2987 = vmatmul.bf16.vlgmr.msrb.gmra.mxu2 %v5607_v34  ;;  %v2518_v34 = vld [vmem:[%s6326_s7] sm:$0x7] }
 0x5f8   :  { %3242 = vmatpush.bf16.msrb.mxu2 %v5920_v53  ;;  %v6079_v47 = vperm.slane %v2518_v34, 0  ;;  %v6083_v63 = vperm.slane %v2518_v34, 1  ;;  %v6102_v3 = vperm.slane %v2518_v34, 2 }
 0x5fa   :  { %v2688_v51 = vadd.f32 %v2687_v32, %v6079_v47  ;;  %v2717_v4 = vadd.f32 %v2716_v35, %v6083_v63 }
 0x5fc   :  { %3243 = vmatpush.bf16.msrb.mxu2 %v5924_v27  ;;  %v2992_v62 = vadd.f32 %v5985_v24, %v2688_v51  ;;  %v2993_v9 = vadd.f32 %v6013_v8, %v2717_v4  ;;  %v6091_v24 = vpop.f32.mrf.mxu2 }
 0x5fe   :  { %v4887_v2 = vmul.f32 -1.442695, %v2992_v62  ;;  %v4888_v10 = vmul.f32 -1.442695, %v2993_v9  ;;  %v2746_v62 = vadd.f32 %v2745_v42, %v6102_v3 }
 0x600   :  { %3244 = vmatpush.bf16.msrb.mxu2 %v5929_v40  ;;  %5311 = vpow2.f32 %v4887_v2 }
 0x601   :  { %5313 = vpow2.f32 %v4888_v10 }
 0x604   :  { %3245 = vmatpush.bf16.msrb.mxu2 %v5934_v54 }
 0x606   :  { %v5312_v39 = vpop.eup %5311 }
 0x607   :  { %v3000_v17 = vadd.f32 1.0, %v5312_v39  ;;  %v5314_v16 = vpop.eup %5313 }
 0x608   :  { %3246 = vmatpush.bf16.msrb.mxu2 %v5939_v49  ;;  %v3001_v18 = vadd.f32 1.0, %v5314_v16 }
 0x609   :  { %5315 = vrcp.f32 %v3000_v17  ;;  %v3013_v25 = vand.u32 2147483648, %v3000_v17  ;;  %vm3007_vm1 = vweird.f32 %v3000_v17  ;;  %v3011_v56 = vand.u32 2147483647, %v3000_v17 }
 0x60a   :  { %5317 = vrcp.f32 %v3001_v18  ;;  %v3028_v35 = vand.u32 2147483648, %v3001_v18  ;;  %vm3022_vm5 = vweird.f32 %v3001_v18  ;;  %v3026_v4 = vand.u32 2147483647, %v3001_v18 }
 0x60b   :  { %v3014_v11 = vor.u32 1.1754944e-38, %v3013_v25  ;;  %vm3012_vm3 = vcmp.eq.f32.partialorder %v3011_v56, 8.507059e+37 }
 0x60c   :  { %3247 = vmatpush.bf16.msrb.mxu2 %v5947_v61  ;;  %v3029_v10 = vor.u32 1.1754944e-38, %v3028_v35  ;;  %vm3027_vm7 = vcmp.eq.f32.partialorder %v3026_v4, 8.507059e+37 }
 0x60f   :  { %v5316_v48 = vpop.eup %5315 }
 0x610   :  { %3248 = vmatpush.bf16.msrb.mxu2 %v5952_v50  ;;  %v3003_v52 = vmul.f32 %v5316_v48, %v3000_v17  ;;  %v5318_v23 = vpop.eup %5317  ;;  %vm3008_vm0 = vweird.f32 %v5316_v48 }
 0x611   :  { %v3018_v8 = vmul.f32 %v5318_v23, %v3001_v18  ;;  %vm3009_vm2 = vmor %vm3007_vm1, %vm3008_vm0  ;;  %vm3023_vm4 = vweird.f32 %v5318_v23  ;;  %v2747_v18 = vpop.f32.mrf.mxu0 }
 0x612   :  { %v3004_v60 = vsub.f32 1.0, %v3003_v52  ;;  %vm3024_vm6 = vmor %vm3022_vm5, %vm3023_vm4 }
 0x613   :  { %v3019_v6 = vsub.f32 1.0, %v3018_v8 }
 0x614   :  { %3249 = vmatpush.bf16.msrb.mxu2 %v5957_v1  ;;  %v3005_v38 = vmul.f32 %v5316_v48, %v3004_v60 }
 0x615   :  { %v3020_v58 = vmul.f32 %v5318_v23, %v3019_v6 }
 0x616   :  { %v3006_v19 = vadd.f32 %v5316_v48, %v3005_v38 }
 0x617   :  { %v3021_v51 = vadd.f32 %v5318_v23, %v3020_v58 }
 0x618   :  { %v3010_v55 = vsel %vm3009_vm2, %v5316_v48, %v3006_v19 }
 0x619   :  { %v3015_v32 = vsel %vm3012_vm3, %v3014_v11, %v3010_v55  ;;  %v3025_v34 = vsel %vm3024_vm6, %v5318_v23, %v3021_v51  ;;  %v2718_v23 = vpop.f32.mrf.mxu3  ;;  %v6134_v6 = vpop.f32.mrf.mxu0 }
 0x61a   :  { %v3030_v17 = vsel %vm3027_vm7, %v3029_v10, %v3025_v34  ;;  %v2690_v34 = vadd.f32 %v6072_v28, %v6079_v47 }
 0x61b   :  { %v3039_v16 = vsub.f32 1.0, %v3030_v17  ;;  %v3041_v60 = vmul.f32 0.0, %v3030_v17 }
 0x621   :  { %v6136_v19 = vpop.f32.mrf.mxu3  ;;  %v6138_v25 = vpop.f32.mrf.mxu0 }
 0x629   :  { %v6140_v56 = vpop.f32.mrf.mxu3  ;;  %v6142_v58 = vpop.f32.mrf.mxu0 }
 0x631   :  { %v6144_v55 = vpop.f32.mrf.mxu3  ;;  %v6146_v42 = vpop.f32.mrf.mxu0 }
 0x665   :  { %v6150_v11 = vpop.f32.mrf.mxu0 }
 0x666   :  { %6332 = vst [vmem:[#allocation23_spill] sm:$0xff] %v6150_v11 }
 0x66a   :  { %v6093_v7 = vpop.f32.mrf.mxu2 }
 0x672   :  { %v6095_v12 = vpop.f32.mrf.mxu2 }
 0x673   :  { %6331 = vst [vmem:[#allocation22_spill] sm:$0xff] %v6095_v12 }
 0x67a   :  { %v2988_v31 = vpop.f32.mrf.mxu2 }
 0x67b   :  { %v3035_v45 = vadd.f32 %v6100_v26, %v2988_v31  ;;  %v6148_v31 = vpop.f32.mrf.mxu3 }
 0x67d   :  { %v3036_v2 = vmul.f32 %v3035_v45, %v3015_v32  ;;  %v6154_v32 = vpop.f32.mrf.mxu0 }
 0x67e   :  { %6334 = vst [vmem:[#allocation25_spill] sm:$0xff] %v6154_v32 }
 0x67f   :  { %v3037_v9 = vadd.f32 %v3036_v2, %v2746_v62  ;;  %v2719_v62 = vadd.f32 %v2718_v23, %v6083_v63 }
 0x681   :  { %5319 = vtanh.f32 %v3037_v9 }
 0x682   :  { %v2990_v39 = vpop.f32.mrf.mxu2 }
 0x683   :  { %v6152_v45 = vpop.f32.mrf.mxu3 }
 0x684   :  { %6333 = vst [vmem:[#allocation24_spill] sm:$0xff] %v6152_v45 }
 0x687   :  { %v5320_v48 = vpop.eup %5319 }
 0x688   :  { %v3040_v52 = vmul.f32 %v5320_v48, %v3039_v16 }
 0x68a   :  { %v6106_v8 = vadd.f32 %v3041_v60, %v3040_v52 }
 0x68b   :  { %v6156_v51 = vpop.f32.mrf.mxu3 }
 0x68c   :  { %v3046_v38 = vpack.c.bf16 %v6106_v8, %v6106_v8  ;;  %6335 = vst [vmem:[#allocation26_spill] sm:$0xff] %v6156_v51 }
 0x68e   :  { %3055 = vmatmul.bf16.vlgmr.msra.gmra.mxu3 %v3046_v38  ;;  %3068 = vmatmul.bf16.vlgmr.msra.gmra.mxu0 %v3046_v38 }
 0x68f   :  { %3081 = vmatmul.bf16.vlgmr.msrb.gmra.mxu1 %v3046_v38  ;;  %3255 = vmatpush.bf16.msra.mxu3 %v5987_v43 }
 0x690   :  { %3320 = vmatpush.bf16.msra.mxu0 %v5875_v57  ;;  %3333 = vmatpush.bf16.msrb.mxu1 %v5920_v53 }
 0x693   :  { %3256 = vmatpush.bf16.msra.mxu3 %v5994_v59 }
 0x694   :  { %3321 = vmatpush.bf16.msra.mxu0 %v5878_v21  ;;  %3334 = vmatpush.bf16.msrb.mxu1 %v5924_v27 }
 0x697   :  { %3257 = vmatpush.bf16.msra.mxu3 %v6000_v14 }
 0x698   :  { %3322 = vmatpush.bf16.msra.mxu0 %v5881_v5  ;;  %3335 = vmatpush.bf16.msrb.mxu1 %v5929_v40 }
 0x69b   :  { %3258 = vmatpush.bf16.msra.mxu3 %v6004_v44 }
 0x69c   :  { %3323 = vmatpush.bf16.msra.mxu0 %v5887_v22  ;;  %3336 = vmatpush.bf16.msrb.mxu1 %v5934_v54 }
 0x69f   :  { %3259 = vmatpush.bf16.msra.mxu3 %v6010_v29 }
 0x6a0   :  { %3324 = vmatpush.bf16.msra.mxu0 %v5890_v30  ;;  %3337 = vmatpush.bf16.msrb.mxu1 %v5939_v49 }
 0x6a3   :  { %3260 = vmatpush.bf16.msra.mxu3 %v6023_v37 }
 0x6a4   :  { %3325 = vmatpush.bf16.msra.mxu0 %v5895_v33  ;;  %3338 = vmatpush.bf16.msrb.mxu1 %v5947_v61 }
 0x6a7   :  { %3261 = vmatpush.bf16.msra.mxu3 %v6034_v41 }
 0x6a8   :  { %3326 = vmatpush.bf16.msra.mxu0 %v5900_v13  ;;  %3339 = vmatpush.bf16.msrb.mxu1 %v5952_v50 }
 0x6ab   :  { %3262 = vmatpush.bf16.msra.mxu3 %v6039_v36 }
 0x6ac   :  { %3327 = vmatpush.bf16.msra.mxu0 %v5904_v15  ;;  %3340 = vmatpush.bf16.msrb.mxu1 %v5957_v1 }
 0x70b   :  { %v3069_v35 = vpop.f32.mrf.mxu0 }
 0x70c   :  { %v3087_v2 = vadd.f32 %v3069_v35, %v2719_v62  ;;  %v3082_v4 = vpop.f32.mrf.mxu1 }
 0x70e   :  { %v4890_v9 = vmul.f32 -1.442695, %v3087_v2 }
 0x710   :  { %5321 = vpow2.f32 %v4890_v9 }
 0x711   :  { %v3056_v10 = vpop.f32.mrf.mxu3 }
 0x712   :  { %v3086_v39 = vadd.f32 %v3056_v10, %v2690_v34 }
 0x713   :  { %v3071_v17 = vpop.f32.mrf.mxu0 }
 0x714   :  { %v4889_v16 = vmul.f32 -1.442695, %v3086_v39  ;;  %v3084_v48 = vpop.f32.mrf.mxu1 }
 0x716   :  { %v5322_v52 = vpop.eup %5321  ;;  %5323 = vpow2.f32 %v4889_v16  ;;  %v3126_v16 = vadd.f32 %v6100_v26, %v3082_v4 }
 0x717   :  { %v3095_v60 = vadd.f32 1.0, %v5322_v52 }
 0x719   :  { %v3058_v38 = vpop.f32.mrf.mxu3  ;;  %5325 = vrcp.f32 %v3095_v60  ;;  %vm3116_vm13 = vweird.f32 %v3095_v60 }
 0x71a   :  { %v2748_v38 = vadd.f32 %v2747_v18, %v6102_v3 }
 0x71c   :  { %v5324_v32 = vpop.eup %5323 }
 0x71d   :  { %v3094_v23 = vadd.f32 1.0, %v5324_v32 }
 0x71f   :  { %5327 = vrcp.f32 %v3094_v23  ;;  %v5326_v62 = vpop.eup %5325  ;;  %v3107_v9 = vand.u32 2147483648, %v3094_v23  ;;  %v3105_v34 = vand.u32 2147483647, %v3094_v23  ;;  %vm3101_vm9 = vweird.f32 %v3094_v23 }
 0x720   :  { %v3112_v35 = vmul.f32 %v5326_v62, %v3095_v60  ;;  %vm3117_vm12 = vweird.f32 %v5326_v62 }
 0x721   :  { %v3108_v17 = vor.u32 1.1754944e-38, %v3107_v9  ;;  %vm3106_vm11 = vcmp.eq.f32.partialorder %v3105_v34, 8.507059e+37  ;;  %vm3118_vm14 = vmor %vm3116_vm13, %vm3117_vm12 }
 0x722   :  { %v3113_v12 = vsub.f32 1.0, %v3112_v35  ;;  %v3122_v35 = vand.u32 2147483648, %v3095_v60 }
 0x724   :  { %v3114_v10 = vmul.f32 %v5326_v62, %v3113_v12 }
 0x725   :  { %v5328_v2 = vpop.eup %5327 }
 0x726   :  { %v3097_v51 = vmul.f32 %v5328_v2, %v3094_v23  ;;  %vm3102_vm8 = vweird.f32 %v5328_v2  ;;  %v3115_v32 = vadd.f32 %v5326_v62, %v3114_v10 }
 0x727   :  { %vm3103_vm10 = vmor %vm3101_vm9, %vm3102_vm8 }
 0x728   :  { %v3098_v28 = vsub.f32 1.0, %v3097_v51  ;;  %v3119_v12 = vsel %vm3118_vm14, %v5326_v62, %v3115_v32 }
 0x72a   :  { %v3099_v11 = vmul.f32 %v5328_v2, %v3098_v28  ;;  %v3120_v28 = vand.u32 2147483647, %v3095_v60  ;;  %v2722_v60 = vadd.f32 %v6136_v19, %v6083_v63 }
 0x72c   :  { %v3100_v39 = vadd.f32 %v5328_v2, %v3099_v11  ;;  %v3123_v11 = vor.u32 1.1754944e-38, %v3122_v35  ;;  %vm3121_vm15 = vcmp.eq.f32.partialorder %v3120_v28, 8.507059e+37 }
 0x72e   :  { %v3104_v48 = vsel %vm3103_vm10, %v5328_v2, %v3100_v39  ;;  %v3124_v23 = vsel %vm3121_vm15, %v3123_v11, %v3119_v12 }
 0x72f   :  { %v3109_v52 = vsel %vm3106_vm11, %v3108_v17, %v3104_v48  ;;  %v3130_v9 = vsub.f32 1.0, %v3124_v23  ;;  %v3132_v34 = vmul.f32 %v3124_v23, %v6106_v8 }
 0x730   :  { %v3127_v51 = vmul.f32 %v3126_v16, %v3109_v52 }
 0x732   :  { %v3128_v45 = vadd.f32 %v3127_v51, %v2748_v38 }
 0x734   :  { %5329 = vtanh.f32 %v3128_v45  ;;  %v2693_v45 = vadd.f32 %v6077_v46, %v6079_v47 }
 0x73a   :  { %v5330_v4 = vpop.eup %5329 }
 0x73b   :  { %v3131_v2 = vmul.f32 %v5330_v4, %v3130_v9 }
 0x73d   :  { %v6164_v10 = vadd.f32 %v3132_v34, %v3131_v2 }
 0x73f   :  { %v3137_v18 = vpack.c.bf16 %v6164_v10, %v6164_v10 }
 0x741   :  { %3146 = vmatmul.bf16.vlgmr.msra.gmra.mxu2 %v3137_v18  ;;  %3159 = vmatmul.bf16.vlgmr.msrb.gmra.mxu3 %v3137_v18 }
 0x742   :  { %3172 = vmatmul.bf16.vlgmr.msrb.gmra.mxu0 %v3137_v18  ;;  %3346 = vmatpush.bf16.msra.mxu2 %v5987_v43 }
 0x743   :  { %3411 = vmatpush.bf16.msrb.mxu3 %v5875_v57  ;;  %3424 = vmatpush.bf16.msrb.mxu0 %v5920_v53 }
 0x746   :  { %3347 = vmatpush.bf16.msra.mxu2 %v5994_v59 }
 0x747   :  { %3412 = vmatpush.bf16.msrb.mxu3 %v5878_v21  ;;  %3425 = vmatpush.bf16.msrb.mxu0 %v5924_v27 }
 0x74a   :  { %3348 = vmatpush.bf16.msra.mxu2 %v6000_v14 }
 0x74b   :  { %3413 = vmatpush.bf16.msrb.mxu3 %v5881_v5  ;;  %3426 = vmatpush.bf16.msrb.mxu0 %v5929_v40 }
 0x74e   :  { %3349 = vmatpush.bf16.msra.mxu2 %v6004_v44 }
 0x74f   :  { %3414 = vmatpush.bf16.msrb.mxu3 %v5887_v22  ;;  %3427 = vmatpush.bf16.msrb.mxu0 %v5934_v54 }
 0x752   :  { %3350 = vmatpush.bf16.msra.mxu2 %v6010_v29 }
 0x753   :  { %3415 = vmatpush.bf16.msrb.mxu3 %v5890_v30  ;;  %3428 = vmatpush.bf16.msrb.mxu0 %v5939_v49 }
 0x756   :  { %3351 = vmatpush.bf16.msra.mxu2 %v6023_v37 }
 0x757   :  { %3416 = vmatpush.bf16.msrb.mxu3 %v5895_v33  ;;  %3429 = vmatpush.bf16.msrb.mxu0 %v5947_v61 }
 0x75a   :  { %3352 = vmatpush.bf16.msra.mxu2 %v6034_v41 }
 0x75b   :  { %3417 = vmatpush.bf16.msrb.mxu3 %v5900_v13  ;;  %3430 = vmatpush.bf16.msrb.mxu0 %v5952_v50 }
 0x75e   :  { %3353 = vmatpush.bf16.msra.mxu2 %v6039_v36 }
 0x75f   :  { %3418 = vmatpush.bf16.msrb.mxu3 %v5904_v15  ;;  %3431 = vmatpush.bf16.msrb.mxu0 %v5957_v1 }
 0x7bf   :  { %v3173_v8 = vpop.f32.mrf.mxu0 }
 0x7c4   :  { %v3147_v62 = vpop.f32.mrf.mxu2  ;;  %v3160_v39 = vpop.f32.mrf.mxu3 }
 0x7c5   :  { %v3177_v17 = vadd.f32 %v3147_v62, %v2693_v45  ;;  %v3178_v16 = vadd.f32 %v3160_v39, %v2722_v60 }
 0x7c7   :  { %v4891_v48 = vmul.f32 -1.442695, %v3177_v17  ;;  %v4892_v32 = vmul.f32 -1.442695, %v3178_v16  ;;  %v3175_v52 = vpop.f32.mrf.mxu0  ;;  %v3217_v17 = vadd.f32 %v6100_v26, %v3173_v8 }
 0x7c8   :  { %v2751_v52 = vadd.f32 %v6134_v6, %v6102_v3 }
 0x7c9   :  { %5331 = vpow2.f32 %v4891_v48 }
 0x7ca   :  { %5333 = vpow2.f32 %v4892_v32 }
 0x7cc   :  { %v3149_v38 = vpop.f32.mrf.mxu2  ;;  %v3162_v35 = vpop.f32.mrf.mxu3 }
 0x7cf   :  { %v5332_v51 = vpop.eup %5331 }
 0x7d0   :  { %v5334_v28 = vpop.eup %5333  ;;  %v3185_v12 = vadd.f32 1.0, %v5332_v51 }
 0x7d1   :  { %v3186_v11 = vadd.f32 1.0, %v5334_v28 }
 0x7d2   :  { %5335 = vrcp.f32 %v3185_v12  ;;  %v3198_v2 = vand.u32 2147483648, %v3185_v12  ;;  %v3196_v45 = vand.u32 2147483647, %v3185_v12  ;;  %vm3192_vm1 = vweird.f32 %v3185_v12 }
 0x7d3   :  { %5337 = vrcp.f32 %v3186_v11  ;;  %v3213_v35 = vand.u32 2147483648, %v3186_v11  ;;  %vm3207_vm5 = vweird.f32 %v3186_v11  ;;  %v3211_v51 = vand.u32 2147483647, %v3186_v11 }
 0x7d4   :  { %v3199_v39 = vor.u32 1.1754944e-38, %v3198_v2  ;;  %vm3197_vm3 = vcmp.eq.f32.partialorder %v3196_v45, 8.507059e+37  ;;  %v2724_v45 = vadd.f32 %v6140_v56, %v6083_v63 }
 0x7d5   :  { %vm3212_vm7 = vcmp.eq.f32.partialorder %v3211_v51, 8.507059e+37 }
 0x7d8   :  { %v5336_v46 = vpop.eup %5335 }
 0x7d9   :  { %v5338_v23 = vpop.eup %5337  ;;  %v3188_v19 = vmul.f32 %v5336_v46, %v3185_v12  ;;  %vm3193_vm0 = vweird.f32 %v5336_v46  ;;  %v3214_v12 = vor.u32 1.1754944e-38, %v3213_v35 }
 0x7da   :  { %v3203_v9 = vmul.f32 %v5338_v23, %v3186_v11  ;;  %vm3194_vm2 = vmor %vm3192_vm1, %vm3193_vm0  ;;  %vm3208_vm4 = vweird.f32 %v5338_v23 }
 0x7db   :  { %v3189_v4 = vsub.f32 1.0, %v3188_v19  ;;  %vm3209_vm6 = vmor %vm3207_vm5, %vm3208_vm4 }
 0x7dc   :  { %v3204_v34 = vsub.f32 1.0, %v3203_v9 }
 0x7dd   :  { %v3190_v18 = vmul.f32 %v5336_v46, %v3189_v4 }
 0x7de   :  { %v3205_v60 = vmul.f32 %v5338_v23, %v3204_v34 }
 0x7df   :  { %v3191_v62 = vadd.f32 %v5336_v46, %v3190_v18 }
 0x7e0   :  { %v3206_v32 = vadd.f32 %v5338_v23, %v3205_v60 }
 0x7e1   :  { %v3195_v16 = vsel %vm3194_vm2, %v5336_v46, %v3191_v62 }
 0x7e2   :  { %v3200_v48 = vsel %vm3197_vm3, %v3199_v39, %v3195_v16  ;;  %v3210_v19 = vsel %vm3209_vm6, %v5338_v23, %v3206_v32 }
 0x7e3   :  { %v3218_v38 = vmul.f32 %v3217_v17, %v3200_v48  ;;  %v3215_v9 = vsel %vm3212_vm7, %v3214_v12, %v3210_v19 }
 0x7e4   :  { %v3221_v8 = vsub.f32 1.0, %v3215_v9  ;;  %v3223_v2 = vmul.f32 %v3215_v9, %v6164_v10  ;;  %v2695_v10 = vadd.f32 %v6085_v0, %v6079_v47 }
 0x7e5   :  { %v3219_v28 = vadd.f32 %v3218_v38, %v2751_v52 }
 0x7e7   :  { %5339 = vtanh.f32 %v3219_v28 }
 0x7ed   :  { %v5340_v46 = vpop.eup %5339 }
 0x7ee   :  { %v3222_v4 = vmul.f32 %v5340_v46, %v3221_v8 }
 0x7f0   :  { %v6200_v34 = vadd.f32 %v3223_v2, %v3222_v4 }
 0x7f2   :  { %v3228_v6 = vpack.c.bf16 %v6200_v34, %v6200_v34 }
 0x7f4   :  { %3237 = vmatmul.bf16.vlgmr.msra.gmra.mxu1 %v3228_v6  ;;  %3250 = vmatmul.bf16.vlgmr.msrb.gmra.mxu2 %v3228_v6 }
 0x7f5   :  { %3263 = vmatmul.bf16.vlgmr.msra.gmra.mxu3 %v3228_v6  ;;  %3437 = vmatpush.bf16.msra.mxu1 %v5987_v43 }
 0x7f6   :  { %3502 = vmatpush.bf16.msrb.mxu2 %v5875_v57  ;;  %3515 = vmatpush.bf16.msra.mxu3 %v5920_v53 }
 0x7f9   :  { %3438 = vmatpush.bf16.msra.mxu1 %v5994_v59 }
 0x7fa   :  { %3503 = vmatpush.bf16.msrb.mxu2 %v5878_v21  ;;  %3516 = vmatpush.bf16.msra.mxu3 %v5924_v27 }
 0x7fd   :  { %3439 = vmatpush.bf16.msra.mxu1 %v6000_v14 }
 0x7fe   :  { %3504 = vmatpush.bf16.msrb.mxu2 %v5881_v5  ;;  %3517 = vmatpush.bf16.msra.mxu3 %v5929_v40 }
 0x801   :  { %3440 = vmatpush.bf16.msra.mxu1 %v6004_v44 }
 0x802   :  { %3505 = vmatpush.bf16.msrb.mxu2 %v5887_v22  ;;  %3518 = vmatpush.bf16.msra.mxu3 %v5934_v54 }
 0x805   :  { %3441 = vmatpush.bf16.msra.mxu1 %v6010_v29 }
 0x806   :  { %3506 = vmatpush.bf16.msrb.mxu2 %v5890_v30  ;;  %3519 = vmatpush.bf16.msra.mxu3 %v5939_v49 }
 0x809   :  { %3442 = vmatpush.bf16.msra.mxu1 %v6023_v37 }
 0x80a   :  { %3507 = vmatpush.bf16.msrb.mxu2 %v5895_v33  ;;  %3520 = vmatpush.bf16.msra.mxu3 %v5947_v61 }
 0x80d   :  { %3443 = vmatpush.bf16.msra.mxu1 %v6034_v41 }
 0x80e   :  { %3508 = vmatpush.bf16.msrb.mxu2 %v5900_v13  ;;  %3521 = vmatpush.bf16.msra.mxu3 %v5952_v50 }
 0x811   :  { %3444 = vmatpush.bf16.msra.mxu1 %v6039_v36 }
 0x812   :  { %3509 = vmatpush.bf16.msrb.mxu2 %v5904_v15  ;;  %3522 = vmatpush.bf16.msra.mxu3 %v5957_v1 }
 0x871   :  { %v3238_v11 = vpop.f32.mrf.mxu1 }
 0x872   :  { %v3268_v23 = vadd.f32 %v3238_v11, %v2695_v10 }
 0x874   :  { %v4893_v18 = vmul.f32 -1.442695, %v3268_v23  ;;  %v2753_v23 = vadd.f32 %v6138_v25, %v6102_v3 }
 0x876   :  { %5341 = vpow2.f32 %v4893_v18 }
 0x877   :  { %v3251_v60 = vpop.f32.mrf.mxu2 }
 0x878   :  { %v3269_v62 = vadd.f32 %v3251_v60, %v2724_v45  ;;  %v3264_v39 = vpop.f32.mrf.mxu3 }
 0x879   :  { %v3240_v17 = vpop.f32.mrf.mxu1  ;;  %v3308_v11 = vadd.f32 %v6100_v26, %v3264_v39 }
 0x87a   :  { %v4894_v16 = vmul.f32 -1.442695, %v3269_v62 }
 0x87c   :  { %v5342_v48 = vpop.eup %5341  ;;  %5343 = vpow2.f32 %v4894_v16 }
 0x87d   :  { %v3276_v32 = vadd.f32 1.0, %v5342_v48 }
 0x87f   :  { %5345 = vrcp.f32 %v3276_v32  ;;  %v3253_v52 = vpop.f32.mrf.mxu2  ;;  %v3289_v12 = vand.u32 2147483648, %v3276_v32  ;;  %v3287_v9 = vand.u32 2147483647, %v3276_v32  ;;  %vm3283_vm9 = vweird.f32 %v3276_v32 }
 0x880   :  { %v3266_v38 = vpop.f32.mrf.mxu3 }
 0x881   :  { %v3290_v2 = vor.u32 1.1754944e-38, %v3289_v12  ;;  %vm3288_vm11 = vcmp.eq.f32.partialorder %v3287_v9, 8.507059e+37 }
 0x882   :  { %v5344_v35 = vpop.eup %5343 }
 0x883   :  { %v3277_v0 = vadd.f32 1.0, %v5344_v35 }
 0x885   :  { %v5346_v51 = vpop.eup %5345  ;;  %5347 = vrcp.f32 %v3277_v0  ;;  %v3304_v60 = vand.u32 2147483648, %v3277_v0  ;;  %v3302_v17 = vand.u32 2147483647, %v3277_v0  ;;  %vm3298_vm13 = vweird.f32 %v3277_v0 }
 0x886   :  { %v3279_v28 = vmul.f32 %v5346_v51, %v3276_v32  ;;  %vm3284_vm8 = vweird.f32 %v5346_v51 }
 0x887   :  { %vm3285_vm10 = vmor %vm3283_vm9, %vm3284_vm8  ;;  %v3305_v32 = vor.u32 1.1754944e-38, %v3304_v60  ;;  %vm3303_vm15 = vcmp.eq.f32.partialorder %v3302_v17, 8.507059e+37 }
 0x888   :  { %v3280_v19 = vsub.f32 1.0, %v3279_v28 }
 0x88a   :  { %v3281_v56 = vmul.f32 %v5346_v51, %v3280_v19 }
 0x88b   :  { %v5348_v8 = vpop.eup %5347 }
 0x88c   :  { %v3294_v46 = vmul.f32 %v5348_v8, %v3277_v0  ;;  %v3282_v4 = vadd.f32 %v5346_v51, %v3281_v56  ;;  %vm3299_vm12 = vweird.f32 %v5348_v8 }
 0x88d   :  { %vm3300_vm14 = vmor %vm3298_vm13, %vm3299_vm12 }
 0x88e   :  { %v3295_v6 = vsub.f32 1.0, %v3294_v46  ;;  %v3286_v10 = vsel %vm3285_vm10, %v5346_v51, %v3282_v4 }
 0x88f   :  { %v3291_v18 = vsel %vm3288_vm11, %v3290_v2, %v3286_v10 }
 0x890   :  { %v3296_v45 = vmul.f32 %v5348_v8, %v3295_v6  ;;  %v3309_v62 = vmul.f32 %v3308_v11, %v3291_v18 }
 0x892   :  { %v3297_v16 = vadd.f32 %v5348_v8, %v3296_v45  ;;  %v3310_v48 = vadd.f32 %v3309_v62, %v2753_v23  ;;  %v2756_v45 = vadd.f32 %v6142_v58, %v6102_v3 }
 0x894   :  { %v3301_v52 = vsel %vm3300_vm14, %v5348_v8, %v3297_v16  ;;  %5349 = vtanh.f32 %v3310_v48 }
 0x895   :  { %v3306_v38 = vsel %vm3303_vm15, %v3305_v32, %v3301_v52 }
 0x896   :  { %v3312_v35 = vsub.f32 1.0, %v3306_v38  ;;  %v3314_v25 = vmul.f32 %v3306_v38, %v6200_v34 }
 0x89a   :  { %v5350_v39 = vpop.eup %5349 }
 0x89b   :  { %v3313_v51 = vmul.f32 %v5350_v39, %v3312_v35 }
 0x89d   :  { %v6236_v28 = vadd.f32 %v3314_v25, %v3313_v51 }
 0x89f   :  { %v3319_v19 = vpack.c.bf16 %v6236_v28, %v6236_v28 }
 0x8a1   :  { %3328 = vmatmul.bf16.vlgmr.msra.gmra.mxu0 %v3319_v19  ;;  %3341 = vmatmul.bf16.vlgmr.msrb.gmra.mxu1 %v3319_v19 }
 0x8a2   :  { %3354 = vmatmul.bf16.vlgmr.msra.gmra.mxu2 %v3319_v19  ;;  %3528 = vmatpush.bf16.msra.mxu0 %v5987_v43 }
 0x8a3   :  { %3593 = vmatpush.bf16.msrb.mxu1 %v5875_v57  ;;  %3606 = vmatpush.bf16.msra.mxu2 %v5920_v53  ;;  %v2698_v57 = vadd.f32 %v6089_v20, %v6079_v47 }
 0x8a6   :  { %3529 = vmatpush.bf16.msra.mxu0 %v5994_v59 }
 0x8a7   :  { %3594 = vmatpush.bf16.msrb.mxu1 %v5878_v21  ;;  %3607 = vmatpush.bf16.msra.mxu2 %v5924_v27  ;;  %v2727_v21 = vadd.f32 %v6144_v55, %v6083_v63 }
 0x8aa   :  { %3530 = vmatpush.bf16.msra.mxu0 %v6000_v14 }
 0x8ab   :  { %3595 = vmatpush.bf16.msrb.mxu1 %v5881_v5  ;;  %3608 = vmatpush.bf16.msra.mxu2 %v5929_v40 }
 0x8ae   :  { %3531 = vmatpush.bf16.msra.mxu0 %v6004_v44 }
 0x8af   :  { %3596 = vmatpush.bf16.msrb.mxu1 %v5887_v22  ;;  %3609 = vmatpush.bf16.msra.mxu2 %v5934_v54 }
 0x8b2   :  { %3532 = vmatpush.bf16.msra.mxu0 %v6010_v29 }
 0x8b3   :  { %3597 = vmatpush.bf16.msrb.mxu1 %v5890_v30  ;;  %3610 = vmatpush.bf16.msra.mxu2 %v5939_v49 }
 0x8b6   :  { %3533 = vmatpush.bf16.msra.mxu0 %v6023_v37 }
 0x8b7   :  { %3598 = vmatpush.bf16.msrb.mxu1 %v5895_v33  ;;  %3611 = vmatpush.bf16.msra.mxu2 %v5947_v61 }
 0x8ba   :  { %3534 = vmatpush.bf16.msra.mxu0 %v6034_v41 }
 0x8bb   :  { %3599 = vmatpush.bf16.msrb.mxu1 %v5900_v13  ;;  %3612 = vmatpush.bf16.msra.mxu2 %v5952_v50 }
 0x8be   :  { %3535 = vmatpush.bf16.msra.mxu0 %v6039_v36 }
 0x8bf   :  { %3600 = vmatpush.bf16.msrb.mxu1 %v5904_v15  ;;  %3613 = vmatpush.bf16.msra.mxu2 %v5957_v1 }
 0x91e   :  { %v3329_v5 = vpop.f32.mrf.mxu0  ;;  %v3342_v22 = vpop.f32.mrf.mxu1 }
 0x91f   :  { %v3359_v30 = vadd.f32 %v3329_v5, %v2698_v57  ;;  %v3360_v33 = vadd.f32 %v3342_v22, %v2727_v21 }
 0x921   :  { %v4895_v53 = vmul.f32 -1.442695, %v3359_v30  ;;  %v4896_v13 = vmul.f32 -1.442695, %v3360_v33 }
 0x923   :  { %5351 = vpow2.f32 %v4895_v53 }
 0x924   :  { %5353 = vpow2.f32 %v4896_v13 }
 0x925   :  { %v3355_v27 = vpop.f32.mrf.mxu2 }
 0x926   :  { %v3331_v40 = vpop.f32.mrf.mxu0  ;;  %v3344_v54 = vpop.f32.mrf.mxu1  ;;  %v3399_v11 = vadd.f32 %v6100_v26, %v3355_v27 }
 0x929   :  { %v5352_v15 = vpop.eup %5351 }
 0x92a   :  { %v5354_v49 = vpop.eup %5353  ;;  %v3367_v61 = vadd.f32 1.0, %v5352_v15 }
 0x92b   :  { %v3368_v50 = vadd.f32 1.0, %v5354_v49 }
 0x92c   :  { %5355 = vrcp.f32 %v3367_v61  ;;  %v3380_v9 = vand.u32 2147483648, %v3367_v61  ;;  %v3378_v46 = vand.u32 2147483647, %v3367_v61  ;;  %vm3374_vm1 = vweird.f32 %v3367_v61 }
 0x92d   :  { %5357 = vrcp.f32 %v3368_v50  ;;  %v3357_v1 = vpop.f32.mrf.mxu2  ;;  %v3395_v60 = vand.u32 2147483648, %v3368_v50  ;;  %vm3389_vm5 = vweird.f32 %v3368_v50  ;;  %v3393_v17 = vand.u32 2147483647, %v3368_v50 }
 0x92e   :  { %v3381_v6 = vor.u32 1.1754944e-38, %v3380_v9  ;;  %vm3379_vm3 = vcmp.eq.f32.partialorder %v3378_v46, 8.507059e+37 }
 0x92f   :  { %v3396_v32 = vor.u32 1.1754944e-38, %v3395_v60  ;;  %vm3394_vm7 = vcmp.eq.f32.partialorder %v3393_v17, 8.507059e+37  ;;  %v6336_v17 = vld [vmem:[#allocation24_spill] sm:$0xff] }
 0x932   :  { %v5356_v20 = vpop.eup %5355 }
 0x933   :  { %v5358_v55 = vpop.eup %5357  ;;  %v3370_v34 = vmul.f32 %v5356_v20, %v3367_v61  ;;  %vm3375_vm0 = vweird.f32 %v5356_v20 }
 0x934   :  { %v3385_v0 = vmul.f32 %v5358_v55, %v3368_v50  ;;  %vm3376_vm2 = vmor %vm3374_vm1, %vm3375_vm0  ;;  %vm3390_vm4 = vweird.f32 %v5358_v55 }
 0x935   :  { %v3371_v12 = vsub.f32 1.0, %v3370_v34  ;;  %vm3391_vm6 = vmor %vm3389_vm5, %vm3390_vm4 }
 0x936   :  { %v3386_v56 = vsub.f32 1.0, %v3385_v0 }
 0x937   :  { %v3372_v8 = vmul.f32 %v5356_v20, %v3371_v12  ;;  %v2758_v12 = vadd.f32 %v6146_v42, %v6102_v3 }
 0x938   :  { %v3387_v4 = vmul.f32 %v5358_v55, %v3386_v56 }
 0x939   :  { %v3373_v2 = vadd.f32 %v5356_v20, %v3372_v8 }
 0x93a   :  { %v3388_v23 = vadd.f32 %v5358_v55, %v3387_v4 }
 0x93b   :  { %v3377_v10 = vsel %vm3376_vm2, %v5356_v20, %v3373_v2 }
 0x93c   :  { %v3382_v18 = vsel %vm3379_vm3, %v3381_v6, %v3377_v10  ;;  %v3392_v48 = vsel %vm3391_vm6, %v5358_v55, %v3388_v23 }
 0x93d   :  { %v3400_v62 = vmul.f32 %v3399_v11, %v3382_v18  ;;  %v3397_v52 = vsel %vm3394_vm7, %v3396_v32, %v3392_v48 }
 0x93e   :  { %v3403_v38 = vsub.f32 1.0, %v3397_v52  ;;  %v3405_v51 = vmul.f32 %v3397_v52, %v6236_v28  ;;  %v2729_v28 = vadd.f32 %v6148_v31, %v6083_v63 }
 0x93f   :  { %v3401_v16 = vadd.f32 %v3400_v62, %v2756_v45  ;;  %v2703_v62 = vadd.f32 %v6093_v7, %v6079_v47 }
 0x941   :  { %5359 = vtanh.f32 %v3401_v16  ;;  %v2732_v16 = vadd.f32 %v6336_v17, %v6083_v63  ;;  %v5209_v17 = vld [vmem:[#allocation15 + $0x10] sm:$0xff] }
 0x947   :  { %v5360_v35 = vpop.eup %5359 }
 0x948   :  { %v3404_v39 = vmul.f32 %v5360_v35, %v3403_v38 }
 0x94a   :  { %v6272_v25 = vadd.f32 %v3405_v51, %v3404_v39 }
 0x94c   :  { %v3410_v58 = vpack.c.bf16 %v6272_v25, %v6272_v25 }
 0x94e   :  { %3419 = vmatmul.bf16.vlgmr.msrb.gmra.mxu3 %v3410_v58  ;;  %3432 = vmatmul.bf16.vlgmr.msrb.gmra.mxu0 %v3410_v58 }
 0x94f   :  { %3445 = vmatmul.bf16.vlgmr.msra.gmra.mxu1 %v3410_v58  ;;  %3619 = vmatpush.bf16.msrb.mxu3 %v5987_v43 }
 0x953   :  { %3620 = vmatpush.bf16.msrb.mxu3 %v5994_v59  ;;  %v2700_v59 = vadd.f32 %v6091_v24, %v6079_v47 }
 0x957   :  { %3621 = vmatpush.bf16.msrb.mxu3 %v6000_v14 }
 0x95b   :  { %3622 = vmatpush.bf16.msrb.mxu3 %v6004_v44 }
 0x95f   :  { %3623 = vmatpush.bf16.msrb.mxu3 %v6010_v29 }
 0x963   :  { %3624 = vmatpush.bf16.msrb.mxu3 %v6023_v37 }
 0x967   :  { %3625 = vmatpush.bf16.msrb.mxu3 %v6034_v41 }
 0x96b   :  { %3626 = vmatpush.bf16.msrb.mxu3 %v6039_v36 }
 0x9cb   :  { %v3433_v19 = vpop.f32.mrf.mxu0 }
 0x9cc   :  { %v3451_v57 = vadd.f32 %v3433_v19, %v2729_v28  ;;  %v3446_v43 = vpop.f32.mrf.mxu1 }
 0x9cd   :  { %v3490_v20 = vadd.f32 %v6100_v26, %v3446_v43 }
 0x9ce   :  { %v4898_v21 = vmul.f32 -1.442695, %v3451_v57 }
 0x9d0   :  { %5361 = vpow2.f32 %v4898_v21 }
 0x9d1   :  { %v3420_v14 = vpop.f32.mrf.mxu3 }
 0x9d2   :  { %v3450_v44 = vadd.f32 %v3420_v14, %v2700_v59 }
 0x9d3   :  { %v3435_v29 = vpop.f32.mrf.mxu0 }
 0x9d4   :  { %v4897_v5 = vmul.f32 -1.442695, %v3450_v44  ;;  %v3448_v37 = vpop.f32.mrf.mxu1 }
 0x9d6   :  { %v5362_v22 = vpop.eup %5361  ;;  %5363 = vpow2.f32 %v4897_v5 }
 0x9d7   :  { %v3459_v41 = vadd.f32 1.0, %v5362_v22 }
 0x9d9   :  { %v3422_v36 = vpop.f32.mrf.mxu3  ;;  %5365 = vrcp.f32 %v3459_v41  ;;  %v3486_v56 = vand.u32 2147483648, %v3459_v41  ;;  %vm3480_vm13 = vweird.f32 %v3459_v41  ;;  %v3484_v8 = vand.u32 2147483647, %v3459_v41 }
 0x9db   :  { %v3487_v2 = vor.u32 1.1754944e-38, %v3486_v56  ;;  %vm3485_vm15 = vcmp.eq.f32.partialorder %v3484_v8, 8.507059e+37  ;;  %v5214_v56 = vld [vmem:[#allocation15 + $0x38] sm:$0xff]  ;;  %v5212_v8 = vld [vmem:[#allocation15 + $0x28] sm:$0xff] }
 0x9dc   :  { %v5364_v30 = vpop.eup %5363  ;;  %3749 = vmatpush.bf16.msrb.mxu0 %v5214_v56 }
 0x9dd   :  { %v3458_v31 = vadd.f32 1.0, %v5364_v30 }
 0x9df   :  { %5367 = vrcp.f32 %v3458_v31  ;;  %v5366_v33 = vpop.eup %5365  ;;  %v3471_v54 = vand.u32 2147483648, %v3458_v31  ;;  %v3469_v49 = vand.u32 2147483647, %v3458_v31  ;;  %vm3465_vm9 = vweird.f32 %v3458_v31 }
 0x9e0   :  { %v3476_v53 = vmul.f32 %v5366_v33, %v3459_v41  ;;  %vm3481_vm12 = vweird.f32 %v5366_v33 }
 0x9e1   :  { %v3472_v1 = vor.u32 1.1754944e-38, %v3471_v54  ;;  %vm3470_vm11 = vcmp.eq.f32.partialorder %v3469_v49, 8.507059e+37  ;;  %vm3482_vm14 = vmor %vm3480_vm13, %vm3481_vm12 }
 0x9e2   :  { %v3477_v40 = vsub.f32 1.0, %v3476_v53 }
 0x9e4   :  { %v3478_v61 = vmul.f32 %v5366_v33, %v3477_v40 }
 0x9e5   :  { %v5368_v13 = vpop.eup %5367 }
 0x9e6   :  { %v3461_v27 = vmul.f32 %v5368_v13, %v3458_v31  ;;  %vm3466_vm8 = vweird.f32 %v5368_v13  ;;  %v3479_v34 = vadd.f32 %v5366_v33, %v3478_v61 }
 0x9e7   :  { %vm3467_vm10 = vmor %vm3465_vm9, %vm3466_vm8 }
 0x9e8   :  { %v3462_v24 = vsub.f32 1.0, %v3461_v27  ;;  %v3483_v4 = vsel %vm3482_vm14, %v5366_v33, %v3479_v34  ;;  %v6337_v27 = vld [vmem:[#allocation23_spill] sm:$0xff] }
 0x9e9   :  { %v3488_v6 = vsel %vm3485_vm15, %v3487_v2, %v3483_v4  ;;  %v2761_v40 = vadd.f32 %v6337_v27, %v6102_v3  ;;  %v5211_v2 = vld [vmem:[#allocation15 + $0x20] sm:$0xff] }
 0x9ea   :  { %v3463_v15 = vmul.f32 %v5368_v13, %v3462_v24  ;;  %v3494_v10 = vsub.f32 1.0, %v3488_v6  ;;  %v3496_v18 = vmul.f32 %v3488_v6, %v6272_v25 }
 0x9ec   :  { %v3464_v50 = vadd.f32 %v5368_v13, %v3463_v15 }
 0x9ee   :  { %v3468_v55 = vsel %vm3467_vm10, %v5368_v13, %v3464_v50 }
 0x9ef   :  { %v3473_v0 = vsel %vm3470_vm11, %v3472_v1, %v3468_v55 }
 0x9f0   :  { %v3491_v9 = vmul.f32 %v3490_v20, %v3473_v0 }
 0x9f2   :  { %v3492_v46 = vadd.f32 %v3491_v9, %v2758_v12  ;;  %v5213_v9 = vld [vmem:[#allocation15 + $0x30] sm:$0xff] }
 0x9f3   :  { %3750 = vmatpush.bf16.msrb.mxu0 %v5213_v9 }
 0x9f4   :  { %5369 = vtanh.f32 %v3492_v46  ;;  %v6338_v46 = vld [vmem:[#allocation22_spill] sm:$0xff] }
 0x9f5   :  { %v2705_v4 = vadd.f32 %v6338_v46, %v6079_v47 }
 0x9f7   :  { %3751 = vmatpush.bf16.msrb.mxu0 %v5212_v8 }
 0x9fa   :  { %v5370_v11 = vpop.eup %5369 }
 0x9fb   :  { %v3495_v23 = vmul.f32 %v5370_v11, %v3494_v10  ;;  %3752 = vmatpush.bf16.msrb.mxu0 %v5211_v2 }
 0x9fd   :  { %v3497_v45 = vadd.f32 %v3496_v18, %v3495_v23  ;;  %v5210_v23 = vld [vmem:[#allocation15 + $0x18] sm:$0xff]  ;;  %v6339_v18 = vld [vmem:[#allocation26_spill] sm:$0xff] }
 0x9ff   :  { %v3501_v60 = vpack.c.bf16 %v3497_v45, %v3497_v45  ;;  %3753 = vmatpush.bf16.msrb.mxu0 %v5210_v23 }
 0xa01   :  { %3510 = vmatmul.bf16.vlgmr.msrb.gmra.mxu2 %v3501_v60  ;;  %3523 = vmatmul.bf16.vlgmr.msra.gmra.mxu3 %v3501_v60 }
 0xa02   :  { %3536 = vmatmul.bf16.vlgmr.msra.gmra.mxu0 %v3501_v60 }
 0xa03   :  { %3754 = vmatpush.bf16.msrb.mxu0 %v5209_v17 }
 0xa7f   :  { %v3537_v42 = vpop.f32.mrf.mxu0 }
 0xa80   :  { %v3581_v31 = vadd.f32 %v6100_v26, %v3537_v42 }
 0xa84   :  { %v3511_v48 = vpop.f32.mrf.mxu2  ;;  %v3524_v32 = vpop.f32.mrf.mxu3 }
 0xa85   :  { %v3541_v52 = vadd.f32 %v3511_v48, %v2703_v62  ;;  %v3542_v38 = vadd.f32 %v3524_v32, %v2732_v16  ;;  %v5208_v32 = vld [vmem:[#allocation15 + $0x8] sm:$0xff] }
 0xa86   :  { %3755 = vmatpush.bf16.msrb.mxu0 %v5208_v32 }
 0xa87   :  { %v4899_v35 = vmul.f32 -1.442695, %v3541_v52  ;;  %v4900_v39 = vmul.f32 -1.442695, %v3542_v38  ;;  %v3539_v51 = vpop.f32.mrf.mxu0  ;;  %v5207_v38 = vld [vmem:[#allocation15] sm:$0xff] }
 0xa89   :  { %5371 = vpow2.f32 %v4899_v35 }
 0xa8a   :  { %5373 = vpow2.f32 %v4900_v39  ;;  %3756 = vmatpush.bf16.msrb.mxu0 %v5207_v38 }
 0xa8c   :  { %v3513_v25 = vpop.f32.mrf.mxu2  ;;  %v3526_v58 = vpop.f32.mrf.mxu3 }
 0xa8f   :  { %v5372_v28 = vpop.eup %5371 }
 0xa90   :  { %v5374_v19 = vpop.eup %5373  ;;  %v3549_v57 = vadd.f32 1.0, %v5372_v28 }
 0xa91   :  { %v3550_v43 = vadd.f32 1.0, %v5374_v19 }
 0xa92   :  { %5375 = vrcp.f32 %v3549_v57  ;;  %v3562_v29 = vand.u32 2147483648, %v3549_v57  ;;  %v3560_v22 = vand.u32 2147483647, %v3549_v57  ;;  %vm3556_vm1 = vweird.f32 %v3549_v57 }
 0xa93   :  { %5377 = vrcp.f32 %v3550_v43  ;;  %v3577_v54 = vand.u32 2147483648, %v3550_v43  ;;  %vm3571_vm5 = vweird.f32 %v3550_v43  ;;  %v3575_v15 = vand.u32 2147483647, %v3550_v43 }
 0xa94   :  { %v3563_v30 = vor.u32 1.1754944e-38, %v3562_v29  ;;  %vm3561_vm3 = vcmp.eq.f32.partialorder %v3560_v22, 8.507059e+37  ;;  %v6340_v22 = vld [vmem:[#allocation25_spill] sm:$0xff] }
 0xa95   :  { %v3578_v50 = vor.u32 1.1754944e-38, %v3577_v54  ;;  %vm3576_vm7 = vcmp.eq.f32.partialorder %v3575_v15, 8.507059e+37 }
 0xa98   :  { %v5376_v7 = vpop.eup %5375 }
 0xa99   :  { %v5378_v21 = vpop.eup %5377  ;;  %v3552_v59 = vmul.f32 %v5376_v7, %v3549_v57  ;;  %vm3557_vm0 = vweird.f32 %v5376_v7 }
 0xa9a   :  { %v3567_v14 = vmul.f32 %v5378_v21, %v3550_v43  ;;  %vm3558_vm2 = vmor %vm3556_vm1, %vm3557_vm0  ;;  %vm3572_vm4 = vweird.f32 %v5378_v21 }
 0xa9b   :  { %v3553_v44 = vsub.f32 1.0, %v3552_v59  ;;  %vm3573_vm6 = vmor %vm3571_vm5, %vm3572_vm4 }
 0xa9c   :  { %v3568_v5 = vsub.f32 1.0, %v3567_v14 }
 0xa9d   :  { %v3554_v37 = vmul.f32 %v5376_v7, %v3553_v44 }
 0xa9e   :  { %v3569_v41 = vmul.f32 %v5378_v21, %v3568_v5  ;;  %v5393_v5 = vld [vmem:[%s6327_s8] ss:$0 sm:$0xff] }
 0xa9f   :  { %v3555_v36 = vadd.f32 %v5376_v7, %v3554_v37 }
 0xaa0   :  { %v3570_v13 = vadd.f32 %v5378_v21, %v3569_v41  ;;  %v2763_v41 = vadd.f32 %v6340_v22, %v6102_v3 }
 0xaa1   :  { %v3559_v33 = vsel %vm3558_vm2, %v5376_v7, %v3555_v36 }
 0xaa2   :  { %v3564_v53 = vsel %vm3561_vm3, %v3563_v30, %v3559_v33  ;;  %v3574_v61 = vsel %vm3573_vm6, %v5378_v21, %v3570_v13 }
 0xaa3   :  { %v3582_v24 = vmul.f32 %v3581_v31, %v3564_v53  ;;  %v3579_v1 = vsel %vm3576_vm7, %v3578_v50, %v3574_v61 }
 0xaa4   :  { %v3585_v26 = vsub.f32 1.0, %v3579_v1  ;;  %v3587_v34 = vmul.f32 %v3579_v1, %v3497_v45  ;;  %v2734_v45 = vadd.f32 %v6339_v18, %v6083_v63 }
 0xaa5   :  { %v3583_v49 = vadd.f32 %v3582_v24, %v2761_v40 }
 0xaa7   :  { %5379 = vtanh.f32 %v3583_v49 }
 0xaad   :  { %v5380_v20 = vpop.eup %5379 }
 0xaae   :  { %v3586_v55 = vmul.f32 %v5380_v20, %v3585_v26  ;;  %v5230_v26 = vld [vmem:[%s6329_s10] ss:$0 sm:$0xff] }
 0xab0   :  { %v6299_v0 = vadd.f32 %v3587_v34, %v3586_v55 }
 0xab2   :  { %v3592_v12 = vpack.c.bf16 %v6299_v0, %v6299_v0 }
 0xab4   :  { %3601 = vmatmul.bf16.vlgmr.msrb.gmra.mxu1 %v3592_v12  ;;  %3614 = vmatmul.bf16.vlgmr.msra.gmra.mxu2 %v3592_v12 }
 0xab5   :  { %3627 = vmatmul.bf16.vlgmr.msrb.gmra.mxu3 %v3592_v12 }
 0xb31   :  { %v3602_v6 = vpop.f32.mrf.mxu1 }
 0xb32   :  { %v3632_v10 = vadd.f32 %v3602_v6, %v2705_v4 }
 0xb34   :  { %v4901_v11 = vmul.f32 -1.442695, %v3632_v10 }
 0xb36   :  { %5381 = vpow2.f32 %v4901_v11 }
 0xb37   :  { %v3615_v60 = vpop.f32.mrf.mxu2 }
 0xb38   :  { %v3633_v42 = vadd.f32 %v3615_v60, %v2734_v45  ;;  %v3628_v62 = vpop.f32.mrf.mxu3 }
 0xb39   :  { %v3604_v16 = vpop.f32.mrf.mxu1  ;;  %v3672_v37 = vadd.f32 %v5393_v5, %v3628_v62 }
 0xb3a   :  { %v4902_v48 = vmul.f32 -1.442695, %v3633_v42 }
 0xb3c   :  { %v5382_v47 = vpop.eup %5381  ;;  %5383 = vpow2.f32 %v4902_v48 }
 0xb3d   :  { %v3640_v52 = vadd.f32 1.0, %v5382_v47 }
 0xb3f   :  { %5385 = vrcp.f32 %v3640_v52  ;;  %v3617_v35 = vpop.f32.mrf.mxu2  ;;  %v3653_v19 = vand.u32 2147483648, %v3640_v52  ;;  %v3651_v43 = vand.u32 2147483647, %v3640_v52  ;;  %vm3647_vm9 = vweird.f32 %v3640_v52 }
 0xb40   :  { %v3630_v39 = vpop.f32.mrf.mxu3 }
 0xb41   :  { %v3654_v14 = vor.u32 1.1754944e-38, %v3653_v19  ;;  %vm3652_vm11 = vcmp.eq.f32.partialorder %v3651_v43, 8.507059e+37 }
 0xb42   :  { %v5384_v51 = vpop.eup %5383 }
 0xb43   :  { %v3641_v63 = vadd.f32 1.0, %v5384_v51 }
 0xb45   :  { %v5386_v25 = vpop.eup %5385  ;;  %5387 = vrcp.f32 %v3641_v63  ;;  %v3668_v31 = vand.u32 2147483648, %v3641_v63  ;;  %v3666_v53 = vand.u32 2147483647, %v3641_v63  ;;  %vm3662_vm13 = vweird.f32 %v3641_v63 }
 0xb46   :  { %v3643_v58 = vmul.f32 %v5386_v25, %v3640_v52  ;;  %vm3648_vm8 = vweird.f32 %v5386_v25 }
 0xb47   :  { %vm3649_vm10 = vmor %vm3647_vm9, %vm3648_vm8  ;;  %v3669_v40 = vor.u32 1.1754944e-38, %v3668_v31  ;;  %vm3667_vm15 = vcmp.eq.f32.partialorder %v3666_v53, 8.507059e+37 }
 0xb48   :  { %v3644_v28 = vsub.f32 1.0, %v3643_v58 }
 0xb4a   :  { %v3645_v57 = vmul.f32 %v5386_v25, %v3644_v28 }
 0xb4b   :  { %v5388_v7 = vpop.eup %5387 }
 0xb4c   :  { %v3658_v21 = vmul.f32 %v5388_v7, %v3641_v63  ;;  %v3646_v59 = vadd.f32 %v5386_v25, %v3645_v57  ;;  %vm3663_vm12 = vweird.f32 %v5388_v7 }
 0xb4d   :  { %vm3664_vm14 = vmor %vm3662_vm13, %vm3663_vm12 }
 0xb4e   :  { %v3659_v44 = vsub.f32 1.0, %v3658_v21  ;;  %v3650_v29 = vsel %vm3649_vm10, %v5386_v25, %v3646_v59 }
 0xb4f   :  { %v3655_v36 = vsel %vm3652_vm11, %v3654_v14, %v3650_v29 }
 0xb50   :  { %v3660_v30 = vmul.f32 %v5388_v7, %v3659_v44  ;;  %v3673_v33 = vmul.f32 %v3672_v37, %v3655_v36 }
 0xb52   :  { %v3661_v13 = vadd.f32 %v5388_v7, %v3660_v30  ;;  %v3674_v27 = vadd.f32 %v3673_v33, %v2763_v41 }
 0xb54   :  { %v3665_v24 = vsel %vm3664_vm14, %v5388_v7, %v3661_v13  ;;  %5389 = vtanh.f32 %v3674_v27 }
 0xb55   :  { %v3670_v54 = vsel %vm3667_vm15, %v3669_v40, %v3665_v24 }
 0xb56   :  { %v3676_v15 = vsub.f32 1.0, %v3670_v54  ;;  %v3678_v3 = vmul.f32 %v3670_v54, %v6299_v0 }
 0xb5a   :  { %v5390_v49 = vpop.eup %5389 }
 0xb5b   :  { %v3677_v61 = vmul.f32 %v5390_v49, %v3676_v15 }
 0xb5d   :  { %v3679_v50 = vadd.f32 %v3678_v3, %v3677_v61 }
 0xb5f   :  { %v3680_v1 = vpack.c.bf16 %v3679_v50, %v3679_v50 }
 0xb61   :  { %3757 = vmatmul.bf16.vlgmr.msrb.gmra.mxu0 %v3680_v1 }
 0xbde   :  { %v3758_v20 = vpop.f32.mrf.mxu0 }
 0xbdf   :  { %v3759_v55 = vadd.f32 %v5230_v26, %v3758_v20 }
 0xbe1   :  { %3762 = vst [vmem:[#allocation16] sm:$0xff] %v3759_v55 }
 0xbe2   :  { %3773 = dma.vmem_to_hbm [thread:$0]  %s3769_s20, 128, %s3771_s22, [#allocation6]  }
 0xbe6   :  { %v3760_v34 = vpop.f32.mrf.mxu0 }
 0xbe7   :  { %5594 = dma.done.wait [#allocation6], 128  }
 0xbe8   :  { %5595 = vsyncadd [#allocation6], 4294967168 }
 0xbe9   :  { %3778 = vsyncpa [#allocation5], 1 }
 0xbea   :  { %3779 = vsyncpa [#allocation8], 1 }
 0xbeb   :  { %3780 = vsyncpa [#allocation11], 1 }
 0xbec   :  { %3781 = vsyncpa [#allocation14], 1 }
 0xbed   :  { %3782 = vsyncpa [#allocation6], 1 }

</bundles_post_ra>
